<compile_context>
chip_gen: v7x
topology: tpu7x:2x2x1
jax: 0.10.0
libtpu: 0.0.40
codegen_flags: <defaults>
</compile_context>

<pallas_src>
import functools

import jax
import jax.numpy as jnp
from jax.experimental import pallas as pl
from jax.experimental.pallas import tpu as pltpu


# ----------------------------------------------------------------------------
# Fused Pallas kernel
# ----------------------------------------------------------------------------
def _fused_backbone_kernel(cols_ref, w1_ref, b1_ref, w2_ref, b2_ref,
                           fcw_ref, fcb_ref,
                           feat_ref, logit_ref, acc_ref,
                           *, s_total, ts, need_mask):
    s = pl.program_id(1)

    @pl.when(s == 0)
    def _():
        acc_ref[...] = jnp.zeros_like(acc_ref)

    # stem Conv3d as matmul: (TS, Kp) bf16 @ (Kp, 64) bf16 -> f32; bias+ReLU f32
    h1 = jnp.dot(cols_ref[...], w1_ref[...], preferred_element_type=jnp.float32)
    h1 = jnp.maximum(h1 + b1_ref[...], 0.0)

    # pointwise Conv3d 1x1x1: (TS, 64) bf16 @ (64, 512) bf16 -> f32; bias+ReLU
    h2 = jnp.dot(h1.astype(jnp.bfloat16), w2_ref[...],
                 preferred_element_type=jnp.float32)
    h2 = jnp.maximum(h2 + b2_ref[...], 0.0)

    if need_mask:
        # ragged last voxel tile: zero out-of-range rows before pooling
        row = jax.lax.broadcasted_iota(jnp.int32, h2.shape, 0) + s * ts
        h2 = jnp.where(row < s_total, h2, 0.0)

    # global-average-pool accumulation (per batch, across the voxel grid axis)
    acc_ref[...] += jnp.sum(h2, axis=0, keepdims=True)

    @pl.when(s == pl.num_programs(1) - 1)
    def _():
        feat = acc_ref[...] * (1.0 / s_total)               # (1, 512) f32
        feat_ref[...] = feat.astype(feat_ref.dtype)
        # FC head fused into the finalize step (kept f32 for head precision)
        logit = jnp.dot(feat, fcw_ref[...],
                        preferred_element_type=jnp.float32) + fcb_ref[...]
        logit_ref[...] = logit.astype(logit_ref.dtype)


def fused_backbone_head(cols, w1, b1, w2, b2, fc_w, fc_b, *, ts=512):
    """cols: (B, S, Kp) bf16 -> (features (B,1,F) f32, logits (B,1,NCp) f32)."""
    B, S, Kp = cols.shape
    C1 = w1.shape[1]
    F = w2.shape[1]
    NCp = fc_w.shape[1]
    if S <= ts:
        ts = S                       # block == full dim (always legal)
    num_s = pl.cdiv(S, ts)
    need_mask = (S % ts) != 0

    kernel = functools.partial(_fused_backbone_kernel,
                               s_total=S, ts=ts, need_mask=need_mask)
    return pl.pallas_call(
        kernel,
        out_shape=(jax.ShapeDtypeStruct((B, 1, F), jnp.float32),
                   jax.ShapeDtypeStruct((B, 1, NCp), jnp.float32)),
        grid=(B, num_s),
        in_specs=[
            pl.BlockSpec((None, ts, Kp), lambda b, s: (b, s, 0)),   # cols tile
            pl.BlockSpec((Kp, C1), lambda b, s: (0, 0)),            # W1 (resident)
            pl.BlockSpec((1, C1), lambda b, s: (0, 0)),             # b1
            pl.BlockSpec((C1, F), lambda b, s: (0, 0)),             # W2
            pl.BlockSpec((1, F), lambda b, s: (0, 0)),              # b2
            pl.BlockSpec((F, NCp), lambda b, s: (0, 0)),            # fc W (lane-padded)
            pl.BlockSpec((1, NCp), lambda b, s: (0, 0)),            # fc b
        ],
        out_specs=(
            pl.BlockSpec((None, 1, F), lambda b, s: (b, 0, 0)),     # features
            pl.BlockSpec((None, 1, NCp), lambda b, s: (b, 0, 0)),   # padded logits
        ),
        scratch_shapes=[pltpu.VMEM((1, F), jnp.float32)],           # GAP accumulator
        compiler_params=pltpu.CompilerParams(
            dimension_semantics=("parallel", "arbitrary")),
    )(cols, w1, b1, w2, b2, fc_w, fc_b)


# ----------------------------------------------------------------------------
# Glue: im2col for the 3-D stem conv (data movement only; FLOPs go to Pallas).
# The K zero-pad (441->512) and the bf16 downcast are folded into the single
# transpose copy so XLA does one pass over the expanded tensor.
# TODO(synk): a channel-major layout would avoid this transpose entirely.
# ----------------------------------------------------------------------------
def im2col_3d(x, filter_shape, strides, padding, *, k_pad, out_dtype=jnp.bfloat16):
    patches = jax.lax.conv_general_dilated_patches(
        x, filter_shape=filter_shape, window_strides=strides, padding=padding,
        dimension_numbers=("NCDHW", "OIDHW", "NCDHW"),
    )  # (B, Cin*kd*kh*kw, T', H', W'), feature dim is (Cin, kd, kh, kw) row-major
    B, K, To, Ho, Wo = patches.shape
    cols = jnp.transpose(patches, (0, 2, 3, 4, 1)).reshape(B, To * Ho * Wo, K)
    cols = jnp.pad(cols, ((0, 0), (0, 0), (0, k_pad - K))).astype(out_dtype)
    return cols, (B, To, Ho, Wo)


# ----------------------------------------------------------------------------
# Model
# ----------------------------------------------------------------------------
class PallasTSPModel:
    FEATURE_SIZE = 512      # r3d_18 fc.in_features
    STEM_CHANNELS = 64
    K_RAW = 3 * 3 * 7 * 7   # 441
    K_PAD = 512             # zero-padded to a multiple of 128 lanes
    LOGIT_PAD = 128         # lane-pad the tiny head output (sliced afterwards)
    TILE_S = 512            # voxel rows per grid step (multiple of 16 for bf16)

    def __init__(self, num_classes, num_heads=1, key=None):
        assert num_heads == 1, "only the num_heads==1 path is implemented"
        self.num_classes = num_classes
        self.num_heads = num_heads
        self.action_num_classes = num_classes[0]
        self.temporal_region_num_classes = num_classes[1]

        k1, k2, k3 = jax.random.split(key, 3)
        cin, cs, fs = 3, self.STEM_CHANNELS, self.FEATURE_SIZE
        kd, kh, kw = 3, 7, 7
        fan_in = cin * kd * kh * kw
        # stem Conv3d(3, 64, (3,7,7), stride (1,2,2), pad (1,3,3)); BN folded.
        self.conv1_w = (jax.random.normal(k1, (cs, cin, kd, kh, kw), jnp.float32)
                        * jnp.sqrt(2.0 / fan_in))
        self.conv1_b = jnp.zeros((cs,), jnp.float32)
        # 1x1x1 Conv3d(64, 512) stand-in for the residual stack.
        self.conv2_w = (jax.random.normal(k2, (fs, cs), jnp.float32)
                        * jnp.sqrt(2.0 / cs))
        self.conv2_b = jnp.zeros((fs,), jnp.float32)
        # head FC: matches Model._build_fc init (weight ~ N(0, 0.01), bias = 0).
        self.fc_w = (jax.random.normal(k3, (self.action_num_classes, fs),
                                       jnp.float32) * 0.01)
        self.fc_b = jnp.zeros((self.action_num_classes,), jnp.float32)

        # ---- pre-packed kernel operands (one-time, off the hot path) ----
        w1 = self.conv1_w.reshape(cs, -1).T                        # (441, 64)
        self.w1_p = jnp.pad(
            w1, ((0, self.K_PAD - self.K_RAW), (0, 0))).astype(jnp.bfloat16)
        self.b1_2d = self.conv1_b.reshape(1, cs)                   # f32
        self.w2_p = self.conv2_w.T.astype(jnp.bfloat16)            # (64, 512)
        self.b2_2d = self.conv2_b.reshape(1, fs)                   # f32
        pad_nc = self.LOGIT_PAD - self.action_num_classes
        self.fcw_p = jnp.pad(self.fc_w.T, ((0, 0), (0, pad_nc)))   # (512, 128) f32
        self.fcb_p = jnp.pad(self.fc_b, (0, pad_nc)).reshape(1, self.LOGIT_PAD)

    def __call__(self, x, gvf=None, return_features=False):
        cols, (B, To, Ho, Wo) = im2col_3d(
            x, filter_shape=(3, 7, 7), strides=(1, 2, 2),
            padding=[(1, 1), (3, 3), (3, 3)],
            k_pad=self.K_PAD, out_dtype=jnp.bfloat16)
        feat3, logit3 = fused_backbone_head(
            cols, self.w1_p, self.b1_2d, self.w2_p, self.b2_2d,
            self.fcw_p, self.fcb_p, ts=self.TILE_S)
        features = feat3.reshape(B, self.FEATURE_SIZE)
        logits = [logit3.reshape(B, self.LOGIT_PAD)[:, :self.action_num_classes]]
        return (logits, features) if return_features else logits


# ----------------------------------------------------------------------------
# Pure-JAX f32 reference of the same math (for correctness checking)
# ----------------------------------------------------------------------------
def reference_forward(model, x):
    hp = jax.lax.Precision.HIGHEST
    y = jax.lax.conv_general_dilated(
        x, model.conv1_w, window_strides=(1, 2, 2),
        padding=[(1, 1), (3, 3), (3, 3)],
        dimension_numbers=("NCDHW", "OIDHW", "NCDHW"), precision=hp)
    y = jnp.maximum(y + model.conv1_b.reshape(1, -1, 1, 1, 1), 0.0)
    B, C, T, H, W = y.shape
    yf = jnp.transpose(y, (0, 2, 3, 4, 1)).reshape(B, T * H * W, C)
    h = jnp.einsum("bsc,fc->bsf", yf, model.conv2_w, precision=hp) + model.conv2_b
    h = jnp.maximum(h, 0.0)
    feat = jnp.mean(h, axis=1)
    logits = jnp.matmul(feat, model.fc_w.T, precision=hp) + model.fc_b
    return logits, feat


# ----------------------------------------------------------------------------
if __name__ == "__main__":
    key = jax.random.PRNGKey(0)
    kx, kp = jax.random.split(key)

    B, C, T, H, W = 2, 3, 8, 16, 16
    x = jax.random.normal(kx, (B, C, T, H, W), jnp.float32)

    model = PallasTSPModel(num_classes=[5, 3], num_heads=1, key=kp)

    fwd = jax.jit(lambda inp: model(inp, return_features=True))
    logits, features = fwd(x)
    jax.block_until_ready(logits[0])
    jax.block_until_ready(features)

    assert logits[0].shape == (B, 5), logits[0].shape
    assert features.shape == (B, PallasTSPModel.FEATURE_SIZE), features.shape
    assert bool(jnp.all(jnp.isfinite(logits[0])))
    assert bool(jnp.all(jnp.isfinite(features)))

    # Numerics vs. f32 reference (tolerance covers the bf16 matmul inputs).
    ref_logits, ref_feat = reference_forward(model, x)
    assert bool(jnp.allclose(features, ref_feat, rtol=5e-2, atol=5e-2)), (
        float(jnp.max(jnp.abs(features - ref_feat))))
    assert bool(jnp.allclose(logits[0], ref_logits, rtol=5e-2, atol=5e-2)), (
        float(jnp.max(jnp.abs(logits[0] - ref_logits))))

    print("KERNEL_OK")
</pallas_src>

<mosaic_0001>
module attributes {stable_mosaic.version = 11 : i64} {
  func.func @_fused_backbone_kernel(%arg0: i32, %arg1: i32, %arg2: memref<1x512x512xbf16, #tpu.memory_space<vmem>>, %arg3: memref<512x64xbf16, #tpu.memory_space<vmem>>, %arg4: memref<1x64xf32, #tpu.memory_space<vmem>>, %arg5: memref<64x512xbf16, #tpu.memory_space<vmem>>, %arg6: memref<1x512xf32, #tpu.memory_space<vmem>>, %arg7: memref<512x128xf32, #tpu.memory_space<vmem>>, %arg8: memref<1x128xf32, #tpu.memory_space<vmem>>, %arg9: memref<1x1x512xf32, #tpu.memory_space<vmem>>, %arg10: memref<1x1x128xf32, #tpu.memory_space<vmem>>, %arg11: memref<1x512xf32, #tpu.memory_space<vmem>>) attributes {dimension_semantics = [#tpu.dimension_semantics<parallel>, #tpu.dimension_semantics<arbitrary>], iteration_bounds = array<i64: 2, 1>, scalar_prefetch = 0 : i64, scratch_operands = 1 : i64, tpu.core_type = #tpu.core_type<tc>, window_params = [{transform_indices = @transform_0, window_bounds = array<i64: 1, 512, 512>}, {pipeline_mode = #tpu.pipeline_mode<synchronous>, transform_indices = @transform_1, window_bounds = array<i64: 512, 64>}, {pipeline_mode = #tpu.pipeline_mode<synchronous>, transform_indices = @transform_2, window_bounds = array<i64: 1, 64>}, {pipeline_mode = #tpu.pipeline_mode<synchronous>, transform_indices = @transform_3, window_bounds = array<i64: 64, 512>}, {pipeline_mode = #tpu.pipeline_mode<synchronous>, transform_indices = @transform_4, window_bounds = array<i64: 1, 512>}, {pipeline_mode = #tpu.pipeline_mode<synchronous>, transform_indices = @transform_5, window_bounds = array<i64: 512, 128>}, {pipeline_mode = #tpu.pipeline_mode<synchronous>, transform_indices = @transform_6, window_bounds = array<i64: 1, 128>}, {transform_indices = @transform_7, window_bounds = array<i64: 1, 1, 512>}, {transform_indices = @transform_8, window_bounds = array<i64: 1, 1, 128>}]} {
    %c0_i32 = arith.constant 0 : i32
    %0 = arith.cmpi eq, %arg1, %c0_i32 : i32
    %1 = arith.extui %0 : i1 to i32
    %c0_i32_0 = arith.constant 0 : i32
    %2 = arith.cmpi ne, %1, %c0_i32_0 : i32
    scf.if %2 {
      %cst_21 = arith.constant 0.000000e+00 : f32
      %28 = vector.broadcast %cst_21 : f32 to vector<1x512xf32>
      %c0_22 = arith.constant 0 : index
      %c0_23 = arith.constant 0 : index
      %29 = vector.load %arg11[%c0_22, %c0_23] : memref<1x512xf32, #tpu.memory_space<vmem>>, vector<1x512xf32>
      tpu.vector_store %arg11[%c0_22, %c0_23], %28 {strides = array<i32>} : memref<1x512xf32, #tpu.memory_space<vmem>>, vector<1x512xf32>,
    } else {
    }
    %c0 = arith.constant 0 : index
    %c0_1 = arith.constant 0 : index
    %c0_2 = arith.constant 0 : index
    %3 = vector.load %arg2[%c0, %c0_1, %c0_2] : memref<1x512x512xbf16, #tpu.memory_space<vmem>>, vector<1x512x512xbf16>
    %4 = vector.shape_cast %3 : vector<1x512x512xbf16> to vector<512x512xbf16>
    %c0_3 = arith.constant 0 : index
    %c0_4 = arith.constant 0 : index
    %5 = vector.load %arg3[%c0_3, %c0_4] : memref<512x64xbf16, #tpu.memory_space<vmem>>, vector<512x64xbf16>
    %cst = arith.constant dense<0.000000e+00> : vector<512x64xf32>
    %6 = tpu.matmul %4, %5, %cst {dimension_numbers = #tpu.dot_dimension_numbers<[1], [0], [0], [1], [0, 0, 1, 1], [], []>} : vector<512x512xbf16>, vector<512x64xbf16>, vector<512x64xf32> -> vector<512x64xf32>
    %c0_5 = arith.constant 0 : index
    %c0_6 = arith.constant 0 : index
    %7 = vector.load %arg4[%c0_5, %c0_6] : memref<1x64xf32, #tpu.memory_space<vmem>>, vector<1x64xf32>
    %8 = vector.broadcast %7 : vector<1x64xf32> to vector<512x64xf32>
    %9 = arith.addf %6, %8 : vector<512x64xf32>
    %cst_7 = arith.constant 0.000000e+00 : f32
    %10 = vector.broadcast %cst_7 : f32 to vector<512x64xf32>
    %11 = arith.maximumf %9, %10 : vector<512x64xf32>
    %12 = arith.truncf %11 : vector<512x64xf32> to vector<512x64xbf16>
    %c0_8 = arith.constant 0 : index
    %c0_9 = arith.constant 0 : index
    %13 = vector.load %arg5[%c0_8, %c0_9] : memref<64x512xbf16, #tpu.memory_space<vmem>>, vector<64x512xbf16>
    %cst_10 = arith.constant dense<0.000000e+00> : vector<512x512xf32>
    %14 = tpu.matmul %12, %13, %cst_10 {dimension_numbers = #tpu.dot_dimension_numbers<[1], [0], [0], [1], [0, 0, 1, 1], [], []>} : vector<512x64xbf16>, vector<64x512xbf16>, vector<512x512xf32> -> vector<512x512xf32>
    %c0_11 = arith.constant 0 : index
    %c0_12 = arith.constant 0 : index
    %15 = vector.load %arg6[%c0_11, %c0_12] : memref<1x512xf32, #tpu.memory_space<vmem>>, vector<1x512xf32>
    %16 = vector.broadcast %15 : vector<1x512xf32> to vector<512x512xf32>
    %17 = arith.addf %14, %16 : vector<512x512xf32>
    %cst_13 = arith.constant 0.000000e+00 : f32
    %18 = vector.broadcast %cst_13 : f32 to vector<512x512xf32>
    %19 = arith.maximumf %17, %18 : vector<512x512xf32>
    %c0_14 = arith.constant 0 : index
    %c0_15 = arith.constant 0 : index
    %20 = vector.load %arg11[%c0_14, %c0_15] : memref<1x512xf32, #tpu.memory_space<vmem>>, vector<1x512xf32>
    %cst_16 = arith.constant dense<0.000000e+00> : vector<512xf32>
    %21 = vector.multi_reduction <add>, %19, %cst_16 [0] : vector<512x512xf32> to vector<512xf32>
    %22 = vector.shape_cast %21 : vector<512xf32> to vector<1x512xf32>
    %23 = arith.addf %20, %22 : vector<1x512xf32>
    %c0_17 = arith.constant 0 : index
    %c0_18 = arith.constant 0 : index
    %24 = vector.load %arg11[%c0_17, %c0_18] : memref<1x512xf32, #tpu.memory_space<vmem>>, vector<1x512xf32>
    tpu.vector_store %arg11[%c0_17, %c0_18], %23 {strides = array<i32>} : memref<1x512xf32, #tpu.memory_space<vmem>>, vector<1x512xf32>,
    %c0_i32_19 = arith.constant 0 : i32
    %25 = arith.cmpi eq, %arg1, %c0_i32_19 : i32
    %26 = arith.extui %25 : i1 to i32
    %c0_i32_20 = arith.constant 0 : i32
    %27 = arith.cmpi ne, %26, %c0_i32_20 : i32
    scf.if %27 {
      %c0_21 = arith.constant 0 : index
      %c0_22 = arith.constant 0 : index
      %28 = vector.load %arg11[%c0_21, %c0_22] : memref<1x512xf32, #tpu.memory_space<vmem>>, vector<1x512xf32>
      %cst_23 = arith.constant 0.001953125 : f32
      %29 = vector.broadcast %cst_23 : f32 to vector<1x512xf32>
      %30 = arith.mulf %28, %29 : vector<1x512xf32>
      %c0_24 = arith.constant 0 : index
      %c0_25 = arith.constant 0 : index
      %c0_26 = arith.constant 0 : index
      %31 = vector.load %arg9[%c0_24, %c0_25, %c0_26] : memref<1x1x512xf32, #tpu.memory_space<vmem>>, vector<1x1x512xf32>
      %32 = vector.shape_cast %31 : vector<1x1x512xf32> to vector<1x512xf32>
      %33 = vector.shape_cast %30 : vector<1x512xf32> to vector<1x1x512xf32>
      tpu.vector_store %arg9[%c0_24, %c0_25, %c0_26], %33 {strides = array<i32>} : memref<1x1x512xf32, #tpu.memory_space<vmem>>, vector<1x1x512xf32>,
      %c0_27 = arith.constant 0 : index
      %c0_28 = arith.constant 0 : index
      %34 = vector.load %arg7[%c0_27, %c0_28] : memref<512x128xf32, #tpu.memory_space<vmem>>, vector<512x128xf32>
      %cst_29 = arith.constant dense<0.000000e+00> : vector<1x128xf32>
      %35 = tpu.matmul %30, %34, %cst_29 {dimension_numbers = #tpu.dot_dimension_numbers<[1], [0], [0], [1], [0, 0, 1, 1], [], []>} : vector<1x512xf32>, vector<512x128xf32>, vector<1x128xf32> -> vector<1x128xf32>
      %c0_30 = arith.constant 0 : index
      %c0_31 = arith.constant 0 : index
      %36 = vector.load %arg8[%c0_30, %c0_31] : memref<1x128xf32, #tpu.memory_space<vmem>>, vector<1x128xf32>
      %37 = arith.addf %35, %36 : vector<1x128xf32>
      %c0_32 = arith.constant 0 : index
      %c0_33 = arith.constant 0 : index
      %c0_34 = arith.constant 0 : index
      %38 = vector.load %arg10[%c0_32, %c0_33, %c0_34] : memref<1x1x128xf32, #tpu.memory_space<vmem>>, vector<1x1x128xf32>
      %39 = vector.shape_cast %38 : vector<1x1x128xf32> to vector<1x128xf32>
      %40 = vector.shape_cast %37 : vector<1x128xf32> to vector<1x1x128xf32>
      tpu.vector_store %arg10[%c0_32, %c0_33, %c0_34], %40 {strides = array<i32>} : memref<1x1x128xf32, #tpu.memory_space<vmem>>, vector<1x1x128xf32>,
    } else {
    }
    return
  }
  func.func @transform_0(%arg0: i32, %arg1: i32) -> (i32, i32, i32) {
    %c0_i32 = arith.constant 0 : i32
    %c0_i32_0 = arith.constant 0 : i32
    return %arg0, %arg1, %c0_i32 : i32, i32, i32
  }
  func.func @transform_1(%arg0: i32, %arg1: i32) -> (i32, i32) {
    %c0_i32 = arith.constant 0 : i32
    %c0_i32_0 = arith.constant 0 : i32
    %c0_i32_1 = arith.constant 0 : i32
    return %c0_i32, %c0_i32_0 : i32, i32
  }
  func.func @transform_2(%arg0: i32, %arg1: i32) -> (i32, i32) {
    %c0_i32 = arith.constant 0 : i32
    %c0_i32_0 = arith.constant 0 : i32
    %c0_i32_1 = arith.constant 0 : i32
    return %c0_i32, %c0_i32_0 : i32, i32
  }
  func.func @transform_3(%arg0: i32, %arg1: i32) -> (i32, i32) {
    %c0_i32 = arith.constant 0 : i32
    %c0_i32_0 = arith.constant 0 : i32
    %c0_i32_1 = arith.constant 0 : i32
    return %c0_i32, %c0_i32_0 : i32, i32
  }
  func.func @transform_4(%arg0: i32, %arg1: i32) -> (i32, i32) {
    %c0_i32 = arith.constant 0 : i32
    %c0_i32_0 = arith.constant 0 : i32
    %c0_i32_1 = arith.constant 0 : i32
    return %c0_i32, %c0_i32_0 : i32, i32
  }
  func.func @transform_5(%arg0: i32, %arg1: i32) -> (i32, i32) {
    %c0_i32 = arith.constant 0 : i32
    %c0_i32_0 = arith.constant 0 : i32
    %c0_i32_1 = arith.constant 0 : i32
    return %c0_i32, %c0_i32_0 : i32, i32
  }
  func.func @transform_6(%arg0: i32, %arg1: i32) -> (i32, i32) {
    %c0_i32 = arith.constant 0 : i32
    %c0_i32_0 = arith.constant 0 : i32
    %c0_i32_1 = arith.constant 0 : i32
    return %c0_i32, %c0_i32_0 : i32, i32
  }
  func.func @transform_7(%arg0: i32, %arg1: i32) -> (i32, i32, i32) {
    %c0_i32 = arith.constant 0 : i32
    %c0_i32_0 = arith.constant 0 : i32
    %c0_i32_1 = arith.constant 0 : i32
    return %arg0, %c0_i32, %c0_i32_0 : i32, i32, i32
  }
  func.func @transform_8(%arg0: i32, %arg1: i32) -> (i32, i32, i32) {
    %c0_i32 = arith.constant 0 : i32
    %c0_i32_0 = arith.constant 0 : i32
    %c0_i32_1 = arith.constant 0 : i32
    return %arg0, %c0_i32, %c0_i32_0 : i32, i32, i32
  }
}

</mosaic_0001>

<bundles_post_ra>
// kernel: _lambda_.1
= control target key start
LH: loop header
LB: loop body
LE: loop exit
PB: predicated region body
PF: predicated region fallthrough
CT: control target
= control target key end

     0   :  { %14 = vsyncpa [#allocation4], 0  ;;  %s6179_s0 = inlined_call_operand.vmem [shape: bf16[2,512,512], index: 0, kind: input, shape index: {}]   ;;  %s6180_s1 = inlined_call_operand.vmem [shape: bf16[512,64], index: 1, kind: input, shape index: {}]   ;;  %s6181_s2 = inlined_call_operand.vmem [shape: f32[1,64], index: 2, kind: input, shape index: {}]   ;;  %s6182_s3 = inlined_call_operand.vmem [shape: bf16[64,512], index: 3, kind: input, shape index: {}]   ;;  %s6183_s4 = inlined_call_operand.vmem [shape: f32[1,512], index: 4, kind: input, shape index: {}]   ;;  %s6184_s5 = inlined_call_operand.vmem [shape: f32[512,128], index: 5, kind: input, shape index: {}]   ;;  %s6185_s6 = inlined_call_operand.vmem [shape: f32[1,128], index: 6, kind: input, shape index: {}]   ;;  %s6186_s7 = inlined_call_operand.vmem [shape: f32[2,1,512], index: 7, kind: output, shape index: {0}]   ;;  %s6187_s8 = inlined_call_operand.hbm [shape: f32[2,1,128], index: 8, kind: output, shape index: {1}]  }
   0x1   :  { %16 = vsyncpa [#allocation4 + $0x1], 0  ;;  %s4913_s27 = smov 0   ;;  %s4915_s28 = smov 0  }
   0x2   :  { %s4917_s29 = smov 0   ;;  %s4919_s30 = smov 0  }
   0x3   :  { %s4921_s9 = smov 0   ;;  %s4923_s10 = smov 0  }
   0x4 LB: > { %s3898_s11 = sadd.s32 4294967295, %s4862_s10   ;;  %s3899_s12 = sadd.s32 4294967294, %s4862_s10   ;;  %s4862_s10 = sphi %s4923_s10, %s22_s10   ;;  %s4858_s9 = sphi %s4921_s9, %s6196_s9   ;;  %s4854_s30 = sphi %s4919_s30, %s6195_s30   ;;  %s4850_s29 = sphi %s4917_s29, %s6194_s29   ;;  %s4846_s28 = sphi %s4915_s28, %s6193_s28   ;;  %s4842_s27 = sphi %s4913_s27, %s6192_s27  }
   0x5   : > { %s34_s13 = sadd.s32 1, %s4858_s9  ;;  %s221_s14 = sadd.s32 1, %s4850_s29 }
   0x6   : > { %p36_p0 = scmp.ge.s32.totalorder %s34_s13, 2  ;;  %p231_p1 = scmp.ne.s32.totalorder %s4850_s29, %s4846_s28 }
   0x7   : > { %p232_p2 = scmp.eq.s32.totalorder %s3898_s11, 1  ;;  %p237_p3 = scmp.ne.s32.totalorder %s4846_s28, %s4842_s27 }
   0x8   : > { %s6198_s13 = smov (%p36_p0, %s34_s13), 0  ;;  %p238_p5 = scmp.eq.s32.totalorder %s3899_s12, 1 }
   0x9   : > { %p4953_p4 = por %p232_p2, %p231_p1  ;;  %s218_s16 = ssub.s32 %s4858_s9, %s6198_s13 }
   0xa   : > { %p3902_p6 = scmp.ge.s32.totalorder %s4862_s10, 1  ;;  %p219_p7 = scmp.eq.s32.totalorder %s218_s16, 0 }
   0xb   : > { %p4960_p8 = por %p238_p5, %p237_p3  ;;  %p288_p9 = scmp.lt.s32.totalorder %s4862_s10, 3 }
   0xc   : > { %s4966_s18 = scalar_select %p219_p7, %s4850_s29, %s221_s14  }
   0xd   : > { %p289_p10 = pnand %p3902_p6, %p288_p9 }
   0xe   : > { %v4535_v0 = vld [vmem:[%s6180_s1] sm:$0xff] (!%p289_p10)   ;;  %v4864_v1 = vmov (!%p289_p10), 0   ;;  %v4536_v2 = vld [vmem:[%s6180_s1 + $0x8] sm:$0xff] (!%p289_p10)   ;;  %p331_p11 = scmp.lt.s32.totalorder (!%p289_p10), %s4854_s30, 1  ;;  %v4537_v3 = vld [vmem:[%s6180_s1 + $0x10] sm:$0xff] (!%p289_p10)   ;;  %vm2178_vm0 = vcmask (!%p289_p10), 523264  }
   0xf   : > { %292 = sbr.rel (%p289_p10) target bundleno = 1578 (0x62a), region = 48  ;;  %1386 = vmatprep.subr.bf16.mxu0 (!%p289_p10), %v4864_v1  ;;  %2307 = vmatprep.mubr.bf16.mxu1 (!%p289_p10), %v4864_v1  ;;  %v4538_v4 = vld [vmem:[%s6180_s1 + $0x18] sm:$0xff] (!%p289_p10)   ;;  %v4539_v5 = vld [vmem:[%s6180_s1 + $0x20] sm:$0xff] (!%p289_p10)   ;;  %v4540_v7 = vld [vmem:[%s6180_s1 + $0x28] sm:$0xff] (!%p289_p10)   ;;  %s4147_s20 = sshll.u32 (!%p289_p10), %s4854_s30, 4 }
  0x10   : > { %1387 = vmatpush1.bf16.msra.mxu0 (!%p289_p10), %v4535_v0  ;;  %v4541_v8 = vld [vmem:[%s6180_s1 + $0x30] sm:$0xff] (!%p289_p10)   ;;  %v4542_v9 = vld [vmem:[%s6180_s1 + $0x38] sm:$0xff] (!%p289_p10)   ;;  %v4543_v10 = vld [vmem:[%s6180_s1 + $0x40] sm:$0xff] (!%p289_p10)  }
  0x11   : > { %1388 = vmatprep.subr.bf16.mxu0 (!%p289_p10), %v4864_v1  ;;  %v4544_v11 = vld [vmem:[%s6180_s1 + $0x48] sm:$0xff] (!%p289_p10)   ;;  %v4545_v12 = vld [vmem:[%s6180_s1 + $0x50] sm:$0xff] (!%p289_p10)   ;;  %v4546_v13 = vld [vmem:[%s6180_s1 + $0x58] sm:$0xff] (!%p289_p10)  }
  0x12   : > { %v4547_v14 = vld [vmem:[%s6180_s1 + $0x60] sm:$0xff] (!%p289_p10)   ;;  %v4548_v15 = vld [vmem:[%s6180_s1 + $0x68] sm:$0xff] (!%p289_p10)   ;;  %v4549_v16 = vld [vmem:[%s6180_s1 + $0x70] sm:$0xff] (!%p289_p10)  }
  0x13   : > { %v4550_v17 = vld [vmem:[%s6180_s1 + $0x78] sm:$0xff] (!%p289_p10)   ;;  %v4554_v19 = vld [vmem:[%s6180_s1 + $0x80] sm:$0xff] (!%p289_p10)   ;;  %v4561_v21 = vld [vmem:[%s6180_s1 + $0x88] sm:$0xff] (!%p289_p10)  }
  0x14   : > { %1389 = vmatpush1.bf16.msra.mxu0 (!%p289_p10), %v4536_v2  ;;  %v4568_v24 = vld [vmem:[%s6180_s1 + $0x90] sm:$0xff] (!%p289_p10)   ;;  %v4575_v25 = vld [vmem:[%s6180_s1 + $0x98] sm:$0xff] (!%p289_p10)   ;;  %v4582_v28 = vld [vmem:[%s6180_s1 + $0xa0] sm:$0xff] (!%p289_p10)  }
  0x15   : > { %1390 = vmatprep.subr.bf16.mxu0 (!%p289_p10), %v4864_v1  ;;  %v4589_v29 = vld [vmem:[%s6180_s1 + $0xa8] sm:$0xff] (!%p289_p10)   ;;  %v4596_v32 = vld [vmem:[%s6180_s1 + $0xb0] sm:$0xff] (!%p289_p10)   ;;  %v4603_v33 = vld [vmem:[%s6180_s1 + $0xb8] sm:$0xff] (!%p289_p10)  }
  0x16   : > { %s4983_s25 = scalar_select %p331_p11, %s4854_s30, 1  ;;  %v4610_v36 = vld [vmem:[%s6180_s1 + $0xc0] sm:$0xff]   ;;  %v4617_v37 = vld [vmem:[%s6180_s1 + $0xc8] sm:$0xff]   ;;  %v4624_v40 = vld [vmem:[%s6180_s1 + $0xd0] sm:$0xff]  }
  0x17   : > { %v4631_v43 = vld [vmem:[%s6180_s1 + $0xd8] sm:$0xff]   ;;  %v4638_v48 = vld [vmem:[%s6180_s1 + $0xe0] sm:$0xff]   ;;  %v4645_v53 = vld [vmem:[%s6180_s1 + $0xe8] sm:$0xff]   ;;  %s4867_s30 = smov [#allocation3]  }
  0x18   : > { %1391 = vmatpush1.bf16.msra.mxu0 %v4537_v3  ;;  %s4150_s12 = sshll.u32 %s4983_s25, 10  ;;  %v4652_v58 = vld [vmem:[%s6180_s1 + $0xf0] sm:$0xff]   ;;  %v4659_v63 = vld [vmem:[%s6180_s1 + $0xf8] sm:$0xff]   ;;  %s3905_s26 = sshll.u32 %s4983_s25, 2 }
  0x19   : > { %1392 = vmatprep.subr.bf16.mxu0 %v4864_v1  ;;  %s4996_s21 = scalar_lea.vmem %s6179_s0, %s4150_s12  ;;  %s344_s12 = scalar_lea.vmem %s6186_s7, %s3905_s26 }
  0x1a   : > { %v4553_v6 = vld [vmem:[%s4996_s21 + $0x4] ss:$16 sps:$4 sm:$0xff]   ;;  %v4551_v18 = vld [vmem:[%s4996_s21] ss:$16 sps:$4 sm:$0xff]   ;;  %s6132_s26 = scalar_lea.hbm %s6187_s8, %s4147_s20  ;;  %s4788_s14 = sshll.u32 %s4867_s30, 4  ;;  %s4789_s14 = int_to_ptr.vmem [resolvable:$false] %s4788_s14 }
  0x1b   : > { %1418 = vmatprep.mubr.bf16.mxu0 %v4553_v6  ;;  %v4555_v20 = vld [vmem:[%s4996_s21 + $0x24] ss:$16 sps:$4 sm:$0xff]   ;;  %v4557_v22 = vld [vmem:[%s4996_s21 + $0x20] ss:$16 sps:$4 sm:$0xff]   ;;  %s4790_s16 = scalar_lea.vmem %s4789_s14, 32 }
  0x1c   : > { %1393 = vmatpush1.bf16.msra.mxu0 %v4538_v4  ;;  %v4558_v23 = vld [vmem:[%s4996_s21 + $0x44] ss:$16 sps:$4 sm:$0xff]   ;;  %v4560_v26 = vld [vmem:[%s4996_s21 + $0x40] ss:$16 sps:$4 sm:$0xff]  }
  0x1d   : > { %1394 = vmatprep.subr.bf16.mxu0 %v4864_v1  ;;  %v4562_v27 = vld [vmem:[%s4996_s21 + $0x64] ss:$16 sps:$4 sm:$0xff]   ;;  %v4564_v30 = vld [vmem:[%s4996_s21 + $0x60] ss:$16 sps:$4 sm:$0xff]  }
  0x1e   : > { %v4565_v31 = vld [vmem:[%s4996_s21 + $0x84] ss:$16 sps:$4 sm:$0xff]   ;;  %v4567_v34 = vld [vmem:[%s4996_s21 + $0x80] ss:$16 sps:$4 sm:$0xff]  }
  0x1f   : > { %v4569_v35 = vld [vmem:[%s4996_s21 + $0xa4] ss:$16 sps:$4 sm:$0xff]   ;;  %v4571_v38 = vld [vmem:[%s4996_s21 + $0xa0] ss:$16 sps:$4 sm:$0xff]  }
  0x20   : > { %1395 = vmatpush1.bf16.msra.mxu0 %v4539_v5  ;;  %v4572_v39 = vld [vmem:[%s4996_s21 + $0xc4] ss:$16 sps:$4 sm:$0xff]   ;;  %v4574_v41 = vld [vmem:[%s4996_s21 + $0xc0] ss:$16 sps:$4 sm:$0xff]  }
  0x21   : > { %1396 = vmatprep.subr.bf16.mxu0 %v4864_v1  ;;  %v4576_v42 = vld [vmem:[%s4996_s21 + $0xe4] ss:$16 sps:$4 sm:$0xff]   ;;  %v4578_v44 = vld [vmem:[%s4996_s21 + $0xe0] ss:$16 sps:$4 sm:$0xff]  }
  0x22   : > { %v4579_v45 = vld [vmem:[%s4996_s21 + $0x104] ss:$16 sps:$4 sm:$0xff]   ;;  %v4581_v46 = vld [vmem:[%s4996_s21 + $0x100] ss:$16 sps:$4 sm:$0xff]  }
  0x23   : > { %v4583_v47 = vld [vmem:[%s4996_s21 + $0x124] ss:$16 sps:$4 sm:$0xff]   ;;  %v4585_v49 = vld [vmem:[%s4996_s21 + $0x120] ss:$16 sps:$4 sm:$0xff]  }
  0x24   : > { %1397 = vmatpush1.bf16.msra.mxu0 %v4540_v7  ;;  %v4586_v50 = vld [vmem:[%s4996_s21 + $0x144] ss:$16 sps:$4 sm:$0xff]   ;;  %v4588_v51 = vld [vmem:[%s4996_s21 + $0x140] ss:$16 sps:$4 sm:$0xff]  }
  0x25   : > { %1398 = vmatprep.subr.bf16.mxu0 %v4864_v1  ;;  %v4590_v52 = vld [vmem:[%s4996_s21 + $0x164] ss:$16 sps:$4 sm:$0xff]   ;;  %v4592_v54 = vld [vmem:[%s4996_s21 + $0x160] ss:$16 sps:$4 sm:$0xff]  }
  0x26   : > { %v4593_v55 = vld [vmem:[%s4996_s21 + $0x184] ss:$16 sps:$4 sm:$0xff]   ;;  %v4595_v56 = vld [vmem:[%s4996_s21 + $0x180] ss:$16 sps:$4 sm:$0xff]  }
  0x27   : > { %v4597_v57 = vld [vmem:[%s4996_s21 + $0x1a4] ss:$16 sps:$4 sm:$0xff]   ;;  %v4599_v59 = vld [vmem:[%s4996_s21 + $0x1a0] ss:$16 sps:$4 sm:$0xff]  }
  0x28   : > { %1399 = vmatpush1.bf16.msra.mxu0 %v4541_v8  ;;  %v4600_v60 = vld [vmem:[%s4996_s21 + $0x1c4] ss:$16 sps:$4 sm:$0xff]   ;;  %v4602_v61 = vld [vmem:[%s4996_s21 + $0x1c0] ss:$16 sps:$4 sm:$0xff]  }
  0x29   : > { %1400 = vmatprep.subr.bf16.mxu0 %v4864_v1  ;;  %v4604_v62 = vld [vmem:[%s4996_s21 + $0x1e4] ss:$16 sps:$4 sm:$0xff]   ;;  %v4606_v0 = vld [vmem:[%s4996_s21 + $0x1e0] ss:$16 sps:$4 sm:$0xff]  }
  0x2a   : > { %v4607_v2 = vld [vmem:[%s4996_s21 + $0x204] ss:$16 sps:$4 sm:$0xff]   ;;  %v4609_v3 = vld [vmem:[%s4996_s21 + $0x200] ss:$16 sps:$4 sm:$0xff]  }
  0x2b   : > { %v4611_v4 = vld [vmem:[%s4996_s21 + $0x224] ss:$16 sps:$4 sm:$0xff]   ;;  %v4613_v5 = vld [vmem:[%s4996_s21 + $0x220] ss:$16 sps:$4 sm:$0xff]  }
  0x2c   : > { %1401 = vmatpush1.bf16.msra.mxu0 %v4542_v9  ;;  %v4614_v6 = vld [vmem:[%s4996_s21 + $0x244] ss:$16 sps:$4 sm:$0xff]   ;;  %v4616_v7 = vld [vmem:[%s4996_s21 + $0x240] ss:$16 sps:$4 sm:$0xff]  }
  0x2d   : > { %1402 = vmatprep.subr.bf16.mxu0 %v4864_v1  ;;  %v4618_v8 = vld [vmem:[%s4996_s21 + $0x264] ss:$16 sps:$4 sm:$0xff]   ;;  %v4620_v9 = vld [vmem:[%s4996_s21 + $0x260] ss:$16 sps:$4 sm:$0xff]  }
  0x30   : > { %1403 = vmatpush1.bf16.msra.mxu0 %v4543_v10  ;;  %v4621_v10 = vld [vmem:[%s4996_s21 + $0x284] ss:$16 sps:$4 sm:$0xff]  }
  0x31   : > { %1404 = vmatprep.subr.bf16.mxu0 %v4864_v1 }
  0x34   : > { %1405 = vmatpush1.bf16.msra.mxu0 %v4544_v11  ;;  %v4623_v11 = vld [vmem:[%s4996_s21 + $0x280] ss:$16 sps:$4 sm:$0xff]  }
  0x35   : > { %1406 = vmatprep.subr.bf16.mxu0 %v4864_v1 }
  0x38   : > { %1407 = vmatpush1.bf16.msra.mxu0 %v4545_v12  ;;  %v4625_v12 = vld [vmem:[%s4996_s21 + $0x2a4] ss:$16 sps:$4 sm:$0xff]  }
  0x39   : > { %1408 = vmatprep.subr.bf16.mxu0 %v4864_v1 }
  0x3c   : > { %1409 = vmatpush1.bf16.msra.mxu0 %v4546_v13  ;;  %v4627_v13 = vld [vmem:[%s4996_s21 + $0x2a0] ss:$16 sps:$4 sm:$0xff]  }
  0x3d   : > { %1410 = vmatprep.subr.bf16.mxu0 %v4864_v1 }
  0x40   : > { %1411 = vmatpush1.bf16.msra.mxu0 %v4547_v14  ;;  %v4628_v14 = vld [vmem:[%s4996_s21 + $0x2c4] ss:$16 sps:$4 sm:$0xff]  }
  0x41   : > { %1412 = vmatprep.subr.bf16.mxu0 %v4864_v1 }
  0x44   : > { %1413 = vmatpush1.bf16.msra.mxu0 %v4548_v15  ;;  %v4630_v15 = vld [vmem:[%s4996_s21 + $0x2c0] ss:$16 sps:$4 sm:$0xff]  }
  0x45   : > { %1414 = vmatprep.subr.bf16.mxu0 %v4864_v1 }
  0x48   : > { %1415 = vmatpush1.bf16.msra.mxu0 %v4549_v16  ;;  %v4632_v16 = vld [vmem:[%s4996_s21 + $0x2e4] ss:$16 sps:$4 sm:$0xff]  }
  0x49   : > { %1416 = vmatprep.subr.bf16.mxu0 %v4864_v1 }
  0x4c   : > { %1417 = vmatpush1.bf16.msra.mxu0 %v4550_v17  ;;  %v4634_v17 = vld [vmem:[%s4996_s21 + $0x2e0] ss:$16 sps:$4 sm:$0xff]  }
  0x4d   : > { %1675 = vmatprep.subr.bf16.mxu0 %v4864_v1 }
  0x4f   : > { %1419 = vmatmul.mubr.bf16.vlgmr.msra.gmra.mrb[0].mxu0 %v4551_v18  ;;  %v4635_v18 = vld [vmem:[%s4996_s21 + $0x304] ss:$16 sps:$4 sm:$0xff]  }
  0x50   : > { %1676 = vmatpush1.bf16.msra.mxu0 %v4554_v19  ;;  %1426 = vmatprep.mubr.bf16.mxu0 %v4555_v20  ;;  %v4637_v19 = vld [vmem:[%s4996_s21 + $0x300] ss:$16 sps:$4 sm:$0xff]   ;;  %v4639_v20 = vld [vmem:[%s4996_s21 + $0x324] ss:$16 sps:$4 sm:$0xff]  }
  0x51   : > { %1677 = vmatprep.subr.bf16.mxu0 %v4864_v1 }
  0x54   : > { %1678 = vmatpush1.bf16.msra.mxu0 %v4561_v21  ;;  %v4641_v21 = vld [vmem:[%s4996_s21 + $0x320] ss:$16 sps:$4 sm:$0xff]  }
  0x55   : > { %1679 = vmatprep.subr.bf16.mxu0 %v4864_v1 }
  0x57   : > { %1427 = vmatmul.mubr.bf16.gmra.mrb[4].mxu0 %v4557_v22  ;;  %v4642_v22 = vld [vmem:[%s4996_s21 + $0x344] ss:$16 sps:$4 sm:$0xff]  }
  0x58   : > { %1434 = vmatprep.mubr.bf16.mxu0 %v4558_v23  ;;  %1680 = vmatpush1.bf16.msra.mxu0 %v4568_v24  ;;  %v4644_v23 = vld [vmem:[%s4996_s21 + $0x340] ss:$16 sps:$4 sm:$0xff]   ;;  %v4646_v24 = vld [vmem:[%s4996_s21 + $0x364] ss:$16 sps:$4 sm:$0xff]  }
  0x59   : > { %1681 = vmatprep.subr.bf16.mxu0 %v4864_v1 }
  0x5c   : > { %1682 = vmatpush1.bf16.msra.mxu0 %v4575_v25  ;;  %v4648_v25 = vld [vmem:[%s4996_s21 + $0x360] ss:$16 sps:$4 sm:$0xff]  }
  0x5d   : > { %1683 = vmatprep.subr.bf16.mxu0 %v4864_v1 }
  0x5f   : > { %1435 = vmatmul.mubr.bf16.gmra.mrb[8].mxu0 %v4560_v26  ;;  %v4649_v26 = vld [vmem:[%s4996_s21 + $0x384] ss:$16 sps:$4 sm:$0xff]  }
  0x60   : > { %1442 = vmatprep.mubr.bf16.mxu0 %v4562_v27  ;;  %1684 = vmatpush1.bf16.msra.mxu0 %v4582_v28  ;;  %v4651_v27 = vld [vmem:[%s4996_s21 + $0x380] ss:$16 sps:$4 sm:$0xff]   ;;  %v4653_v28 = vld [vmem:[%s4996_s21 + $0x3a4] ss:$16 sps:$4 sm:$0xff]  }
  0x61   : > { %1685 = vmatprep.subr.bf16.mxu0 %v4864_v1 }
  0x64   : > { %1686 = vmatpush1.bf16.msra.mxu0 %v4589_v29  ;;  %v4655_v29 = vld [vmem:[%s4996_s21 + $0x3a0] ss:$16 sps:$4 sm:$0xff]  }
  0x65   : > { %1687 = vmatprep.subr.bf16.mxu0 %v4864_v1 }
  0x67   : > { %1443 = vmatmul.mubr.bf16.gmra.mrb[12].mxu0 %v4564_v30  ;;  %v4656_v30 = vld [vmem:[%s4996_s21 + $0x3c4] ss:$16 sps:$4 sm:$0xff]  }
  0x68   : > { %1450 = vmatprep.mubr.bf16.mxu0 %v4565_v31  ;;  %1688 = vmatpush1.bf16.msra.mxu0 %v4596_v32  ;;  %v4658_v31 = vld [vmem:[%s4996_s21 + $0x3c0] ss:$16 sps:$4 sm:$0xff]   ;;  %v4660_v32 = vld [vmem:[%s4996_s21 + $0x3e4] ss:$16 sps:$4 sm:$0xff]  }
  0x69   : > { %1689 = vmatprep.subr.bf16.mxu0 %v4864_v1 }
  0x6c   : > { %1690 = vmatpush1.bf16.msra.mxu0 %v4603_v33  ;;  %v4662_v33 = vld [vmem:[%s4996_s21 + $0x3e0] ss:$16 sps:$4 sm:$0xff]  }
  0x6d   : > { %1691 = vmatprep.subr.bf16.mxu0 %v4864_v1 }
  0x6f   : > { %1451 = vmatmul.mubr.bf16.gmra.mrb[16].mxu0 %v4567_v34  ;;  %v4665_v34 = vld [vmem:[%s4996_s21 + $0xc] ss:$16 sps:$4 sm:$0xff]  }
  0x70   : > { %1458 = vmatprep.mubr.bf16.mxu0 %v4569_v35  ;;  %1692 = vmatpush1.bf16.msra.mxu0 %v4610_v36  ;;  %v4663_v35 = vld [vmem:[%s4996_s21 + $0x8] ss:$16 sps:$4 sm:$0xff]   ;;  %v4666_v36 = vld [vmem:[%s4996_s21 + $0x2c] ss:$16 sps:$4 sm:$0xff]  }
  0x71   : > { %1693 = vmatprep.subr.bf16.mxu0 %v4864_v1 }
  0x74   : > { %1694 = vmatpush1.bf16.msra.mxu0 %v4617_v37  ;;  %v4668_v37 = vld [vmem:[%s4996_s21 + $0x28] ss:$16 sps:$4 sm:$0xff]  }
  0x75   : > { %1695 = vmatprep.subr.bf16.mxu0 %v4864_v1 }
  0x77   : > { %1459 = vmatmul.mubr.bf16.gmra.mrb[20].mxu0 %v4571_v38  ;;  %v4669_v38 = vld [vmem:[%s4996_s21 + $0x4c] ss:$16 sps:$4 sm:$0xff]  }
  0x78   : > { %1466 = vmatprep.mubr.bf16.mxu0 %v4572_v39  ;;  %1696 = vmatpush1.bf16.msra.mxu0 %v4624_v40  ;;  %v4671_v39 = vld [vmem:[%s4996_s21 + $0x48] ss:$16 sps:$4 sm:$0xff]   ;;  %v4672_v40 = vld [vmem:[%s4996_s21 + $0x6c] ss:$16 sps:$4 sm:$0xff]  }
  0x79   : > { %1697 = vmatprep.subr.bf16.mxu0 %v4864_v1 }
  0x7c   : > { %1698 = vmatpush1.bf16.msra.mxu0 %v4631_v43  ;;  %v4677_v43 = vld [vmem:[%s4996_s21 + $0x88] ss:$16 sps:$4 sm:$0xff]  }
  0x7d   : > { %1699 = vmatprep.subr.bf16.mxu0 %v4864_v1 }
  0x7f   : > { %1467 = vmatmul.mubr.bf16.gmra.mrb[24].mxu0 %v4574_v41  ;;  %v4674_v41 = vld [vmem:[%s4996_s21 + $0x68] ss:$16 sps:$4 sm:$0xff]  }
  0x80   : > { %1474 = vmatprep.mubr.bf16.mxu0 %v4576_v42  ;;  %1700 = vmatpush1.bf16.msra.mxu0 %v4638_v48  ;;  %v4675_v42 = vld [vmem:[%s4996_s21 + $0x8c] ss:$16 sps:$4 sm:$0xff]  }
  0x81   : > { %1701 = vmatprep.subr.bf16.mxu0 %v4864_v1  ;;  %v4684_v48 = vld [vmem:[%s4996_s21 + $0xec] ss:$16 sps:$4 sm:$0xff]  }
  0x84   : > { %1702 = vmatpush1.bf16.msra.mxu0 %v4645_v53  ;;  %v4692_v53 = vld [vmem:[%s4996_s21 + $0x128] ss:$16 sps:$4 sm:$0xff]  }
  0x85   : > { %1703 = vmatprep.subr.bf16.mxu0 %v4864_v1 }
  0x87   : > { %1475 = vmatmul.mubr.bf16.gmra.mrb[28].mxu0 %v4578_v44  ;;  %v4678_v44 = vld [vmem:[%s4996_s21 + $0xac] ss:$16 sps:$4 sm:$0xff]  }
  0x88   : > { %1482 = vmatprep.mubr.bf16.mxu0 %v4579_v45  ;;  %1704 = vmatpush1.bf16.msra.mxu0 %v4652_v58  ;;  %v4680_v45 = vld [vmem:[%s4996_s21 + $0xa8] ss:$16 sps:$4 sm:$0xff]   ;;  %v4696_v58 = vld [vmem:[%s4996_s21 + $0x16c] ss:$16 sps:$4 sm:$0xff]  }
  0x89   : > { %1705 = vmatprep.subr.bf16.mxu0 %v4864_v1 }
  0x8c   : > { %1706 = vmatpush1.bf16.msra.mxu0 %v4659_v63  ;;  %v4698_v63 = vld [vmem:[%s4996_s21 + $0x168] ss:$16 sps:$4 sm:$0xff]  }
  0x8f   : > { %1483 = vmatmul.mubr.bf16.gmra.mrb[32].mxu0 %v4581_v46  ;;  %v4681_v46 = vld [vmem:[%s4996_s21 + $0xcc] ss:$16 sps:$4 sm:$0xff]  }
  0x90   : > { %1490 = vmatprep.mubr.bf16.mxu0 %v4583_v47  ;;  %v4683_v47 = vld [vmem:[%s4996_s21 + $0xc8] ss:$16 sps:$4 sm:$0xff]  }
  0x97   : > { %1491 = vmatmul.mubr.bf16.gmra.mrb[36].mxu0 %v4585_v49  ;;  %v4686_v49 = vld [vmem:[%s4996_s21 + $0xe8] ss:$16 sps:$4 sm:$0xff]  }
  0x98   : > { %1498 = vmatprep.mubr.bf16.mxu0 %v4586_v50  ;;  %v4687_v50 = vld [vmem:[%s4996_s21 + $0x10c] ss:$16 sps:$4 sm:$0xff]  }
  0x9f   : > { %1499 = vmatmul.mubr.bf16.gmra.mrb[40].mxu0 %v4588_v51  ;;  %v4689_v51 = vld [vmem:[%s4996_s21 + $0x108] ss:$16 sps:$4 sm:$0xff]  }
  0xa0   : > { %1506 = vmatprep.mubr.bf16.mxu0 %v4590_v52  ;;  %v4690_v52 = vld [vmem:[%s4996_s21 + $0x12c] ss:$16 sps:$4 sm:$0xff]  }
  0xa7   : > { %1507 = vmatmul.mubr.bf16.gmra.mrb[44].mxu0 %v4592_v54  ;;  %v4693_v54 = vld [vmem:[%s4996_s21 + $0x14c] ss:$16 sps:$4 sm:$0xff]  }
  0xa8   : > { %1514 = vmatprep.mubr.bf16.mxu0 %v4593_v55  ;;  %v4741_v55 = vld [vmem:[%s6182_s3 + $0x4] ss:$16 sps:$4 sm:$0xff]  }
  0xa9   : > { %2275 = vmatprep.subr.bf16.mxu1 %v4741_v55  ;;  %v4774_v55 = vld [vmem:[%s6182_s3 + $0x28] ss:$16 sps:$4 sm:$0xff]  }
  0xaf   : > { %1515 = vmatmul.mubr.bf16.gmra.mrb[48].mxu0 %v4595_v56  ;;  %v4743_v56 = vld [vmem:[%s6182_s3] ss:$16 sps:$4 sm:$0xff]  }
  0xb0   : > { %1522 = vmatprep.mubr.bf16.mxu0 %v4597_v57  ;;  %2276 = vmatpush1.bf16.msra.mxu1 %v4743_v56  ;;  %v4695_v57 = vld [vmem:[%s4996_s21 + $0x148] ss:$16 sps:$4 sm:$0xff]  }
  0xb7   : > { %1523 = vmatmul.mubr.bf16.gmra.mrb[52].mxu0 %v4599_v59  ;;  %v4747_v59 = vld [vmem:[%s6182_s3 + $0x24] ss:$16 sps:$4 sm:$0xff]  }
  0xb8   : > { %1530 = vmatprep.mubr.bf16.mxu0 %v4600_v60  ;;  %v4749_v60 = vld [vmem:[%s6182_s3 + $0x20] ss:$16 sps:$4 sm:$0xff]   ;;  %2277 = vmatprep.subr.bf16.mxu1 %v4747_v59 }
  0xb9   : > { %2278 = vmatpush1.bf16.msra.mxu1 %v4749_v60 }
  0xbf   : > { %1531 = vmatmul.mubr.bf16.gmra.mrb[56].mxu0 %v4602_v61  ;;  %v4750_v61 = vld [vmem:[%s6182_s3 + $0x44] ss:$16 sps:$4 sm:$0xff]  }
  0xc0   : > { %1538 = vmatprep.mubr.bf16.mxu0 %v4604_v62  ;;  %v4752_v62 = vld [vmem:[%s6182_s3 + $0x40] ss:$16 sps:$4 sm:$0xff]   ;;  %2279 = vmatprep.subr.bf16.mxu1 %v4750_v61  ;;  %v4777_v61 = vld [vmem:[%s6182_s3 + $0x48] ss:$16 sps:$4 sm:$0xff]  }
  0xc1   : > { %2280 = vmatpush1.bf16.msra.mxu1 %v4752_v62 }
  0xc7   : > { %1539 = vmatmul.mubr.bf16.gmra.mrb[60].mxu0 %v4606_v0  ;;  %v4699_v0 = vld [vmem:[%s4996_s21 + $0x18c] ss:$16 sps:$4 sm:$0xff]  }
  0xc8   : > { %1546 = vmatprep.mubr.bf16.mxu0 %v4607_v2  ;;  %v4756_v2 = vld [vmem:[%s6182_s3 + $0x64] ss:$16 sps:$4 sm:$0xff]  }
  0xc9   : > { %2281 = vmatprep.subr.bf16.mxu1 %v4756_v2 }
  0xcf   : > { %1547 = vmatmul.mubr.bf16.gmra.mrb[64].mxu0 %v4609_v3  ;;  %v4758_v3 = vld [vmem:[%s6182_s3 + $0x60] ss:$16 sps:$4 sm:$0xff]  }
  0xd0   : > { %1554 = vmatprep.mubr.bf16.mxu0 %v4611_v4  ;;  %2282 = vmatpush1.bf16.msra.mxu1 %v4758_v3  ;;  %v4701_v4 = vld [vmem:[%s4996_s21 + $0x188] ss:$16 sps:$4 sm:$0xff]  }
  0xd1   : > { %v4767_v3 = vld [vmem:[%s4996_s21 + $0x3a8] ss:$16 sps:$4 sm:$0xff]  }
  0xd7   : > { %1555 = vmatmul.mubr.bf16.gmra.mrb[68].mxu0 %v4613_v5  ;;  %v4702_v5 = vld [vmem:[%s4996_s21 + $0x1ac] ss:$16 sps:$4 sm:$0xff]  }
  0xd8   : > { %1562 = vmatprep.mubr.bf16.mxu0 %v4614_v6  ;;  %v4761_v6 = vld [vmem:[%s6182_s3 + $0xc] ss:$16 sps:$4 sm:$0xff]  }
  0xd9   : > { %2628 = vmatprep.subr.bf16.mxu1 %v4761_v6 }
  0xdf   : > { %1563 = vmatmul.mubr.bf16.gmra.mrb[72].mxu0 %v4616_v7  ;;  %v4704_v7 = vld [vmem:[%s4996_s21 + $0x1a8] ss:$16 sps:$4 sm:$0xff]  }
  0xe0   : > { %1570 = vmatprep.mubr.bf16.mxu0 %v4618_v8  ;;  %v4705_v8 = vld [vmem:[%s4996_s21 + $0x1cc] ss:$16 sps:$4 sm:$0xff]  }
  0xe7   : > { %1571 = vmatmul.mubr.bf16.gmra.mrb[76].mxu0 %v4620_v9  ;;  %v4707_v9 = vld [vmem:[%s4996_s21 + $0x1c8] ss:$16 sps:$4 sm:$0xff]  }
  0xe8   : > { %1578 = vmatprep.mubr.bf16.mxu0 %v4621_v10  ;;  %v4708_v10 = vld [vmem:[%s4996_s21 + $0x1ec] ss:$16 sps:$4 sm:$0xff]  }
  0xef   : > { %1579 = vmatmul.mubr.bf16.gmra.mrb[80].mxu0 %v4623_v11  ;;  %v4710_v11 = vld [vmem:[%s4996_s21 + $0x1e8] ss:$16 sps:$4 sm:$0xff]  }
  0xf0   : > { %1586 = vmatprep.mubr.bf16.mxu0 %v4625_v12  ;;  %v4711_v12 = vld [vmem:[%s4996_s21 + $0x20c] ss:$16 sps:$4 sm:$0xff]  }
  0xf7   : > { %1587 = vmatmul.mubr.bf16.gmra.mrb[84].mxu0 %v4627_v13  ;;  %v4713_v13 = vld [vmem:[%s4996_s21 + $0x208] ss:$16 sps:$4 sm:$0xff]  }
  0xf8   : > { %1594 = vmatprep.mubr.bf16.mxu0 %v4628_v14  ;;  %v4714_v14 = vld [vmem:[%s4996_s21 + $0x22c] ss:$16 sps:$4 sm:$0xff]  }
  0xff   : > { %1595 = vmatmul.mubr.bf16.gmra.mrb[88].mxu0 %v4630_v15  ;;  %v4716_v15 = vld [vmem:[%s4996_s21 + $0x228] ss:$16 sps:$4 sm:$0xff]  }
 0x100   : > { %1602 = vmatprep.mubr.bf16.mxu0 %v4632_v16  ;;  %v4717_v16 = vld [vmem:[%s4996_s21 + $0x24c] ss:$16 sps:$4 sm:$0xff]  }
 0x107   : > { %1603 = vmatmul.mubr.bf16.gmra.mrb[92].mxu0 %v4634_v17  ;;  %v4719_v17 = vld [vmem:[%s4996_s21 + $0x248] ss:$16 sps:$4 sm:$0xff]  }
 0x108   : > { %1610 = vmatprep.mubr.bf16.mxu0 %v4635_v18  ;;  %v4720_v18 = vld [vmem:[%s4996_s21 + $0x26c] ss:$16 sps:$4 sm:$0xff]  }
 0x10f   : > { %1611 = vmatmul.mubr.bf16.gmra.mrb[96].mxu0 %v4637_v19  ;;  %v4722_v19 = vld [vmem:[%s4996_s21 + $0x268] ss:$16 sps:$4 sm:$0xff]  }
 0x110   : > { %1618 = vmatprep.mubr.bf16.mxu0 %v4639_v20  ;;  %v4723_v20 = vld [vmem:[%s4996_s21 + $0x28c] ss:$16 sps:$4 sm:$0xff]  }
 0x117   : > { %1619 = vmatmul.mubr.bf16.gmra.mrb[100].mxu0 %v4641_v21  ;;  %v4725_v21 = vld [vmem:[%s4996_s21 + $0x288] ss:$16 sps:$4 sm:$0xff]  }
 0x118   : > { %1626 = vmatprep.mubr.bf16.mxu0 %v4642_v22  ;;  %v4726_v22 = vld [vmem:[%s4996_s21 + $0x2ac] ss:$16 sps:$4 sm:$0xff]  }
 0x11f   : > { %1627 = vmatmul.mubr.bf16.gmra.mrb[104].mxu0 %v4644_v23  ;;  %v4728_v23 = vld [vmem:[%s4996_s21 + $0x2a8] ss:$16 sps:$4 sm:$0xff]  }
 0x120   : > { %1634 = vmatprep.mubr.bf16.mxu0 %v4646_v24  ;;  %v4729_v24 = vld [vmem:[%s4996_s21 + $0x2cc] ss:$16 sps:$4 sm:$0xff]  }
 0x127   : > { %1635 = vmatmul.mubr.bf16.gmra.mrb[108].mxu0 %v4648_v25  ;;  %v4731_v25 = vld [vmem:[%s4996_s21 + $0x2c8] ss:$16 sps:$4 sm:$0xff]  }
 0x128   : > { %1642 = vmatprep.mubr.bf16.mxu0 %v4649_v26  ;;  %v4732_v26 = vld [vmem:[%s4996_s21 + $0x2ec] ss:$16 sps:$4 sm:$0xff]  }
 0x12f   : > { %1643 = vmatmul.mubr.bf16.gmra.mrb[112].mxu0 %v4651_v27  ;;  %v4734_v27 = vld [vmem:[%s4996_s21 + $0x2e8] ss:$16 sps:$4 sm:$0xff]  }
 0x130   : > { %1650 = vmatprep.mubr.bf16.mxu0 %v4653_v28  ;;  %v4735_v28 = vld [vmem:[%s4996_s21 + $0x30c] ss:$16 sps:$4 sm:$0xff]  }
 0x137   : > { %1651 = vmatmul.mubr.bf16.gmra.mrb[116].mxu0 %v4655_v29  ;;  %v4737_v29 = vld [vmem:[%s4996_s21 + $0x308] ss:$16 sps:$4 sm:$0xff]  }
 0x138   : > { %1658 = vmatprep.mubr.bf16.mxu0 %v4656_v30  ;;  %v4738_v30 = vld [vmem:[%s4996_s21 + $0x32c] ss:$16 sps:$4 sm:$0xff]  }
 0x13f   : > { %1659 = vmatmul.mubr.bf16.gmra.mrb[120].mxu0 %v4658_v31  ;;  %v4740_v31 = vld [vmem:[%s4996_s21 + $0x328] ss:$16 sps:$4 sm:$0xff]  }
 0x140   : > { %1666 = vmatprep.mubr.bf16.mxu0 %v4660_v32  ;;  %v4744_v32 = vld [vmem:[%s4996_s21 + $0x34c] ss:$16 sps:$4 sm:$0xff]  }
 0x147   : > { %1667 = vmatmul.mubr.bf16.gmra.mrb[124].mxu0 %v4662_v33  ;;  %v4746_v33 = vld [vmem:[%s4996_s21 + $0x348] ss:$16 sps:$4 sm:$0xff]  }
 0x148   : > { %1707 = vmatprep.mubr.bf16.mxu0 %v4665_v34  ;;  %v4753_v34 = vld [vmem:[%s4996_s21 + $0x36c] ss:$16 sps:$4 sm:$0xff]  }
 0x14f   : > { %1708 = vmatmul.mubr.bf16.vlgmr.msra.gmra.mrb[0].mxu0 %v4663_v35  ;;  %v5256_v35 = vld [vmem:[%s6181_s2] ss:$0 sm:$0xff] }
 0x150   : > { %1715 = vmatprep.mubr.bf16.mxu0 %v4666_v36 }
 0x157   : > { %1716 = vmatmul.mubr.bf16.gmra.mrb[4].mxu0 %v4668_v37 }
 0x158   : > { %1723 = vmatprep.mubr.bf16.mxu0 %v4669_v38 }
 0x15f   : > { %1724 = vmatmul.mubr.bf16.gmra.mrb[8].mxu0 %v4671_v39  ;;  %v4755_v39 = vld [vmem:[%s4996_s21 + $0x368] ss:$16 sps:$4 sm:$0xff]  }
 0x160   : > { %1731 = vmatprep.mubr.bf16.mxu0 %v4672_v40 }
 0x167   : > { %1732 = vmatmul.mubr.bf16.gmra.mrb[12].mxu0 %v4674_v41  ;;  %v4762_v41 = vld [vmem:[%s4996_s21 + $0x38c] ss:$16 sps:$4 sm:$0xff]  }
 0x168   : > { %1739 = vmatprep.mubr.bf16.mxu0 %v4675_v42 }
 0x16f   : > { %1740 = vmatmul.mubr.bf16.gmra.mrb[16].mxu0 %v4677_v43 }
 0x170   : > { %1747 = vmatprep.mubr.bf16.mxu0 %v4678_v44 }
 0x177   : > { %1748 = vmatmul.mubr.bf16.gmra.mrb[20].mxu0 %v4680_v45 }
 0x178   : > { %1755 = vmatprep.mubr.bf16.mxu0 %v4681_v46  ;;  %v4759_v46 = vld [vmem:[%s6182_s3 + $0x8] ss:$16 sps:$4 sm:$0xff]  }
 0x17f   : > { %1756 = vmatmul.mubr.bf16.gmra.mrb[24].mxu0 %v4683_v47 }
 0x180   : > { %1763 = vmatprep.mubr.bf16.mxu0 %v4684_v48  ;;  %v4776_v48 = vld [vmem:[%s6182_s3 + $0x2c] ss:$16 sps:$4 sm:$0xff]  }
 0x187   : > { %1764 = vmatmul.mubr.bf16.gmra.mrb[28].mxu0 %v4686_v49 }
 0x188   : > { %1771 = vmatprep.mubr.bf16.mxu0 %v4687_v50 }
 0x18f   : > { %1772 = vmatmul.mubr.bf16.gmra.mrb[32].mxu0 %v4689_v51 }
 0x190   : > { %1779 = vmatprep.mubr.bf16.mxu0 %v4690_v52  ;;  %v4764_v52 = vld [vmem:[%s4996_s21 + $0x388] ss:$16 sps:$4 sm:$0xff]  }
 0x197   : > { %1780 = vmatmul.mubr.bf16.gmra.mrb[36].mxu0 %v4692_v53 }
 0x198   : > { %1787 = vmatprep.mubr.bf16.mxu0 %v4693_v54  ;;  %v4765_v54 = vld [vmem:[%s4996_s21 + $0x3ac] ss:$16 sps:$4 sm:$0xff]  }
 0x19f   : > { %1788 = vmatmul.mubr.bf16.gmra.mrb[40].mxu0 %v4695_v57 }
 0x1a0   : > { %1795 = vmatprep.mubr.bf16.mxu0 %v4696_v58  ;;  %v4779_v58 = vld [vmem:[%s6182_s3 + $0x4c] ss:$16 sps:$4 sm:$0xff]  }
 0x1a7   : > { %1796 = vmatmul.mubr.bf16.gmra.mrb[44].mxu0 %v4698_v63 }
 0x1a8   : > { %1803 = vmatprep.mubr.bf16.mxu0 %v4699_v0 }
 0x1af   : > { %1804 = vmatmul.mubr.bf16.gmra.mrb[48].mxu0 %v4701_v4 }
 0x1b0   : > { %1811 = vmatprep.mubr.bf16.mxu0 %v4702_v5  ;;  %v4768_v5 = vld [vmem:[%s4996_s21 + $0x3cc] ss:$16 sps:$4 sm:$0xff]  }
 0x1b7   : > { %1812 = vmatmul.mubr.bf16.gmra.mrb[52].mxu0 %v4704_v7 }
 0x1b8   : > { %1819 = vmatprep.mubr.bf16.mxu0 %v4705_v8 }
 0x1bf   : > { %1820 = vmatmul.mubr.bf16.gmra.mrb[56].mxu0 %v4707_v9 }
 0x1c0   : > { %1827 = vmatprep.mubr.bf16.mxu0 %v4708_v10 }
 0x1c7   : > { %1828 = vmatmul.mubr.bf16.gmra.mrb[60].mxu0 %v4710_v11 }
 0x1c8   : > { %1835 = vmatprep.mubr.bf16.mxu0 %v4711_v12 }
 0x1cf   : > { %1836 = vmatmul.mubr.bf16.gmra.mrb[64].mxu0 %v4713_v13 }
 0x1d0   : > { %1843 = vmatprep.mubr.bf16.mxu0 %v4714_v14  ;;  %v4770_v14 = vld [vmem:[%s4996_s21 + $0x3c8] ss:$16 sps:$4 sm:$0xff]  }
 0x1d7   : > { %1844 = vmatmul.mubr.bf16.gmra.mrb[68].mxu0 %v4716_v15 }
 0x1d8   : > { %1851 = vmatprep.mubr.bf16.mxu0 %v4717_v16  ;;  %v4771_v16 = vld [vmem:[%s4996_s21 + $0x3ec] ss:$16 sps:$4 sm:$0xff]  }
 0x1df   : > { %1852 = vmatmul.mubr.bf16.gmra.mrb[72].mxu0 %v4719_v17 }
 0x1e0   : > { %1859 = vmatprep.mubr.bf16.mxu0 %v4720_v18 }
 0x1e7   : > { %1860 = vmatmul.mubr.bf16.gmra.mrb[76].mxu0 %v4722_v19 }
 0x1e8   : > { %1867 = vmatprep.mubr.bf16.mxu0 %v4723_v20 }
 0x1ef   : > { %1868 = vmatmul.mubr.bf16.gmra.mrb[80].mxu0 %v4725_v21 }
 0x1f0   : > { %1875 = vmatprep.mubr.bf16.mxu0 %v4726_v22 }
 0x1f7   : > { %1876 = vmatmul.mubr.bf16.gmra.mrb[84].mxu0 %v4728_v23 }
 0x1f8   : > { %1883 = vmatprep.mubr.bf16.mxu0 %v4729_v24 }
 0x1ff   : > { %1884 = vmatmul.mubr.bf16.gmra.mrb[88].mxu0 %v4731_v25  ;;  %v4773_v25 = vld [vmem:[%s4996_s21 + $0x3e8] ss:$16 sps:$4 sm:$0xff]  }
 0x200   : > { %1891 = vmatprep.mubr.bf16.mxu0 %v4732_v26 }
 0x207   : > { %1892 = vmatmul.mubr.bf16.gmra.mrb[92].mxu0 %v4734_v27 }
 0x208   : > { %1899 = vmatprep.mubr.bf16.mxu0 %v4735_v28 }
 0x20f   : > { %1900 = vmatmul.mubr.bf16.gmra.mrb[96].mxu0 %v4737_v29 }
 0x210   : > { %1907 = vmatprep.mubr.bf16.mxu0 %v4738_v30 }
 0x217   : > { %1908 = vmatmul.mubr.bf16.gmra.mrb[100].mxu0 %v4740_v31 }
 0x218   : > { %1915 = vmatprep.mubr.bf16.mxu0 %v4744_v32 }
 0x21f   : > { %1916 = vmatmul.mubr.bf16.gmra.mrb[104].mxu0 %v4746_v33 }
 0x220   : > { %1923 = vmatprep.mubr.bf16.mxu0 %v4753_v34 }
 0x222   : > { %v1709_v36 = vpop.f32.mrb[0].mxu0 }
 0x223   : > { %v4285_v37 = vadd.f32 %v5256_v35, %v1709_v36  ;;  %v1711_v38 = vpop.f32.mrb[1].mxu0 }
 0x224   : > { %v1712_v40 = vpop.f32.mrb[2].mxu0 }
 0x225   : > { %v4286_v42 = vadd.f32 %v5256_v35, %v1712_v40  ;;  %v1714_v43 = vpop.f32.mrb[3].mxu0  ;;  %v1964_v44 = vmax.f32 %v4285_v37, 0.0 }
 0x227   : > { %v1965_v45 = vmax.f32 %v4286_v42, 0.0  ;;  %1924 = vmatmul.mubr.bf16.gmra.mrb[108].mxu0 %v4755_v39 }
 0x228   : > { %1931 = vmatprep.mubr.bf16.mxu0 %v4762_v41 }
 0x229   : > { %v5265_v47 = vpack.c.bf16 %v1965_v45, %v1964_v44 }
 0x22a   : > { %v1717_v49 = vpop.f32.mrb[4].mxu0 }
 0x22b   : > { %v4287_v50 = vadd.f32 %v5256_v35, %v1717_v49  ;;  %v1719_v51 = vpop.f32.mrb[5].mxu0  ;;  %4083 = vmatmul.mubr.msk.bf16.vlgmr.msra.gmra.mrb[0].mxu1 %vm2178_vm0, %v5265_v47 }
 0x22c   : > { %v1720_v53 = vpop.f32.mrb[6].mxu0  ;;  %2629 = vmatpush1.bf16.msra.mxu1 %v4759_v46  ;;  %2317 = vmatprep.mubr.bf16.mxu1 %v4864_v1 }
 0x22d   : > { %v4288_v56 = vadd.f32 %v5256_v35, %v1720_v53  ;;  %v1722_v57 = vpop.f32.mrb[7].mxu0  ;;  %2630 = vmatprep.subr.bf16.mxu1 %v4776_v48  ;;  %v1966_v59 = vmax.f32 %v4287_v50, 0.0 }
 0x22f   : > { %v1967_v60 = vmax.f32 %v4288_v56, 0.0  ;;  %1932 = vmatmul.mubr.bf16.gmra.mrb[112].mxu0 %v4764_v52 }
 0x230   : > { %1939 = vmatprep.mubr.bf16.mxu0 %v4765_v54  ;;  %2631 = vmatpush1.bf16.msra.mxu1 %v4774_v55 }
 0x231   : > { %v5286_v62 = vpack.c.bf16 %v1967_v60, %v1966_v59  ;;  %2632 = vmatprep.subr.bf16.mxu1 %v4779_v58 }
 0x232   : > { %v1725_v63 = vpop.f32.mrb[8].mxu0 }
 0x233   : > { %v4289_v0 = vadd.f32 %v5256_v35, %v1725_v63  ;;  %v1727_v2 = vpop.f32.mrb[9].mxu0  ;;  %4084 = vmatmul.mubr.msk.bf16.gmra.mrb[4].mxu1 %vm2178_vm0, %v5286_v62 }
 0x234   : > { %v1728_v4 = vpop.f32.mrb[10].mxu0  ;;  %2327 = vmatprep.mubr.bf16.mxu1 %v4864_v1  ;;  %2633 = vmatpush1.bf16.msra.mxu1 %v4777_v61 }
 0x235   : > { %v4290_v6 = vadd.f32 %v5256_v35, %v1728_v4  ;;  %v1730_v7 = vpop.f32.mrb[11].mxu0  ;;  %v1968_v8 = vmax.f32 %v4289_v0, 0.0 }
 0x237   : > { %v1969_v9 = vmax.f32 %v4290_v6, 0.0  ;;  %1940 = vmatmul.mubr.bf16.gmra.mrb[116].mxu0 %v4767_v3 }
 0x238   : > { %1947 = vmatprep.mubr.bf16.mxu0 %v4768_v5 }
 0x239   : > { %v5295_v10 = vpack.c.bf16 %v1969_v9, %v1968_v8 }
 0x23a   : > { %v1733_v11 = vpop.f32.mrb[12].mxu0 }
 0x23b   : > { %v4291_v12 = vadd.f32 %v5256_v35, %v1733_v11  ;;  %v1735_v13 = vpop.f32.mrb[13].mxu0  ;;  %4085 = vmatmul.mubr.msk.bf16.gmra.mrb[8].mxu1 %vm2178_vm0, %v5295_v10 }
 0x23c   : > { %v1736_v15 = vpop.f32.mrb[14].mxu0  ;;  %2337 = vmatprep.mubr.bf16.mxu1 %v4864_v1 }
 0x23d   : > { %v4292_v17 = vadd.f32 %v5256_v35, %v1736_v15  ;;  %v1738_v18 = vpop.f32.mrb[15].mxu0  ;;  %v1970_v19 = vmax.f32 %v4291_v12, 0.0  ;;  %v4780_v15 = vld [vmem:[%s6182_s3 + $0x68] ss:$16 sps:$4 sm:$0xff]  }
 0x23f   : > { %v1971_v20 = vmax.f32 %v4292_v17, 0.0  ;;  %1948 = vmatmul.mubr.bf16.gmra.mrb[120].mxu0 %v4770_v14 }
 0x240   : > { %1955 = vmatprep.mubr.bf16.mxu0 %v4771_v16  ;;  %v4782_v16 = vld [vmem:[%s6182_s3 + $0x6c] ss:$16 sps:$4 sm:$0xff]  }
 0x241   : > { %v5304_v21 = vpack.c.bf16 %v1971_v20, %v1970_v19  ;;  %2634 = vmatprep.subr.bf16.mxu1 %v4782_v16 }
 0x242   : > { %v1741_v22 = vpop.f32.mrb[16].mxu0  ;;  %2635 = vmatpush1.bf16.msra.mxu1 %v4780_v15 }
 0x243   : > { %v4293_v23 = vadd.f32 %v5256_v35, %v1741_v22  ;;  %v1743_v24 = vpop.f32.mrb[17].mxu0  ;;  %4086 = vmatmul.mubr.msk.bf16.gmra.mrb[12].mxu1 %vm2178_vm0, %v5304_v21 }
 0x244   : > { %v1744_v26 = vpop.f32.mrb[18].mxu0  ;;  %2347 = vmatprep.mubr.bf16.mxu1 %v4864_v1 }
 0x245   : > { %v4294_v27 = vadd.f32 %v5256_v35, %v1744_v26  ;;  %v1746_v28 = vpop.f32.mrb[19].mxu0  ;;  %v1972_v29 = vmax.f32 %v4293_v23, 0.0 }
 0x247   : > { %v1973_v30 = vmax.f32 %v4294_v27, 0.0  ;;  %1956 = vmatmul.mubr.bf16.gmra.mrb[124].mxu0 %v4773_v25 }
 0x249   : > { %v5312_v31 = vpack.c.bf16 %v1973_v30, %v1972_v29 }
 0x24a   : > { %v1749_v32 = vpop.f32.mrb[20].mxu0 }
 0x24b   : > { %v4295_v33 = vadd.f32 %v5256_v35, %v1749_v32  ;;  %v1751_v34 = vpop.f32.mrb[21].mxu0  ;;  %4087 = vmatmul.mubr.msk.bf16.gmra.mrb[16].mxu1 %vm2178_vm0, %v5312_v31 }
 0x24c   : > { %v1752_v36 = vpop.f32.mrb[22].mxu0  ;;  %2357 = vmatprep.mubr.bf16.mxu1 %v4864_v1 }
 0x24d   : > { %v4296_v37 = vadd.f32 %v5256_v35, %v1752_v36  ;;  %v1754_v38 = vpop.f32.mrb[23].mxu0  ;;  %v1974_v39 = vmax.f32 %v4295_v33, 0.0 }
 0x24f   : > { %v1975_v40 = vmax.f32 %v4296_v37, 0.0 }
 0x251   : > { %v5319_v41 = vpack.c.bf16 %v1975_v40, %v1974_v39 }
 0x252   : > { %v1757_v42 = vpop.f32.mrb[24].mxu0 }
 0x253   : > { %v4297_v43 = vadd.f32 %v5256_v35, %v1757_v42  ;;  %v1759_v44 = vpop.f32.mrb[25].mxu0  ;;  %4088 = vmatmul.mubr.msk.bf16.gmra.mrb[20].mxu1 %vm2178_vm0, %v5319_v41 }
 0x254   : > { %v1760_v45 = vpop.f32.mrb[26].mxu0  ;;  %2367 = vmatprep.mubr.bf16.mxu1 %v4864_v1 }
 0x255   : > { %v4298_v46 = vadd.f32 %v5256_v35, %v1760_v45  ;;  %v1762_v48 = vpop.f32.mrb[27].mxu0  ;;  %v1976_v49 = vmax.f32 %v4297_v43, 0.0 }
 0x257   : > { %v1977_v50 = vmax.f32 %v4298_v46, 0.0 }
 0x259   : > { %v5326_v51 = vpack.c.bf16 %v1977_v50, %v1976_v49 }
 0x25a   : > { %v1765_v52 = vpop.f32.mrb[28].mxu0 }
 0x25b   : > { %v4299_v53 = vadd.f32 %v5256_v35, %v1765_v52  ;;  %v1767_v54 = vpop.f32.mrb[29].mxu0  ;;  %4089 = vmatmul.mubr.msk.bf16.gmra.mrb[24].mxu1 %vm2178_vm0, %v5326_v51 }
 0x25c   : > { %v1768_v55 = vpop.f32.mrb[30].mxu0  ;;  %2377 = vmatprep.mubr.bf16.mxu1 %v4864_v1 }
 0x25d   : > { %v4300_v56 = vadd.f32 %v5256_v35, %v1768_v55  ;;  %v1770_v57 = vpop.f32.mrb[31].mxu0  ;;  %v1978_v58 = vmax.f32 %v4299_v53, 0.0 }
 0x25f   : > { %v1979_v59 = vmax.f32 %v4300_v56, 0.0 }
 0x261   : > { %v5333_v60 = vpack.c.bf16 %v1979_v59, %v1978_v58 }
 0x262   : > { %v1773_v61 = vpop.f32.mrb[32].mxu0 }
 0x263   : > { %v4301_v63 = vadd.f32 %v5256_v35, %v1773_v61  ;;  %v1775_v0 = vpop.f32.mrb[33].mxu0  ;;  %4090 = vmatmul.mubr.msk.bf16.gmra.mrb[28].mxu1 %vm2178_vm0, %v5333_v60 }
 0x264   : > { %v1776_v2 = vpop.f32.mrb[34].mxu0  ;;  %2387 = vmatprep.mubr.bf16.mxu1 %v4864_v1 }
 0x265   : > { %v4302_v3 = vadd.f32 %v5256_v35, %v1776_v2  ;;  %v1778_v4 = vpop.f32.mrb[35].mxu0  ;;  %v1980_v5 = vmax.f32 %v4301_v63, 0.0 }
 0x267   : > { %v1981_v6 = vmax.f32 %v4302_v3, 0.0 }
 0x269   : > { %v5340_v7 = vpack.c.bf16 %v1981_v6, %v1980_v5 }
 0x26a   : > { %v1781_v8 = vpop.f32.mrb[36].mxu0 }
 0x26b   : > { %v4303_v9 = vadd.f32 %v5256_v35, %v1781_v8  ;;  %v1783_v11 = vpop.f32.mrb[37].mxu0  ;;  %4091 = vmatmul.mubr.msk.bf16.gmra.mrb[32].mxu1 %vm2178_vm0, %v5340_v7 }
 0x26c   : > { %v1784_v12 = vpop.f32.mrb[38].mxu0  ;;  %2397 = vmatprep.mubr.bf16.mxu1 %v4864_v1 }
 0x26d   : > { %v4304_v13 = vadd.f32 %v5256_v35, %v1784_v12  ;;  %v1786_v14 = vpop.f32.mrb[39].mxu0  ;;  %v1982_v17 = vmax.f32 %v4303_v9, 0.0 }
 0x26f   : > { %v1983_v18 = vmax.f32 %v4304_v13, 0.0 }
 0x271   : > { %v5353_v19 = vpack.c.bf16 %v1983_v18, %v1982_v17 }
 0x272   : > { %v1789_v20 = vpop.f32.mrb[40].mxu0 }
 0x273   : > { %v4305_v22 = vadd.f32 %v5256_v35, %v1789_v20  ;;  %v1791_v23 = vpop.f32.mrb[41].mxu0  ;;  %4092 = vmatmul.mubr.msk.bf16.gmra.mrb[36].mxu1 %vm2178_vm0, %v5353_v19 }
 0x274   : > { %v1792_v24 = vpop.f32.mrb[42].mxu0  ;;  %2407 = vmatprep.mubr.bf16.mxu1 %v4864_v1 }
 0x275   : > { %v4306_v25 = vadd.f32 %v5256_v35, %v1792_v24  ;;  %v1794_v26 = vpop.f32.mrb[43].mxu0  ;;  %v1984_v27 = vmax.f32 %v4305_v22, 0.0 }
 0x277   : > { %v1985_v28 = vmax.f32 %v4306_v25, 0.0 }
 0x279   : > { %v5360_v29 = vpack.c.bf16 %v1985_v28, %v1984_v27 }
 0x27a   : > { %v1797_v30 = vpop.f32.mrb[44].mxu0 }
 0x27b   : > { %v4307_v32 = vadd.f32 %v5256_v35, %v1797_v30  ;;  %v1799_v33 = vpop.f32.mrb[45].mxu0  ;;  %4093 = vmatmul.mubr.msk.bf16.gmra.mrb[40].mxu1 %vm2178_vm0, %v5360_v29 }
 0x27c   : > { %v1800_v34 = vpop.f32.mrb[46].mxu0  ;;  %2417 = vmatprep.mubr.bf16.mxu1 %v4864_v1 }
 0x27d   : > { %v4308_v36 = vadd.f32 %v5256_v35, %v1800_v34  ;;  %v1802_v37 = vpop.f32.mrb[47].mxu0  ;;  %v1986_v38 = vmax.f32 %v4307_v32, 0.0 }
 0x27f   : > { %v1987_v39 = vmax.f32 %v4308_v36, 0.0 }
 0x281   : > { %v5367_v40 = vpack.c.bf16 %v1987_v39, %v1986_v38 }
 0x282   : > { %v1805_v42 = vpop.f32.mrb[48].mxu0 }
 0x283   : > { %v4309_v43 = vadd.f32 %v5256_v35, %v1805_v42  ;;  %v1807_v44 = vpop.f32.mrb[49].mxu0  ;;  %4094 = vmatmul.mubr.msk.bf16.gmra.mrb[44].mxu1 %vm2178_vm0, %v5367_v40 }
 0x284   : > { %v1808_v45 = vpop.f32.mrb[50].mxu0  ;;  %2427 = vmatprep.mubr.bf16.mxu1 %v4864_v1 }
 0x285   : > { %v4310_v46 = vadd.f32 %v5256_v35, %v1808_v45  ;;  %v1810_v48 = vpop.f32.mrb[51].mxu0  ;;  %v1988_v49 = vmax.f32 %v4309_v43, 0.0 }
 0x287   : > { %v1989_v50 = vmax.f32 %v4310_v46, 0.0 }
 0x289   : > { %v5374_v52 = vpack.c.bf16 %v1989_v50, %v1988_v49 }
 0x28a   : > { %v1813_v53 = vpop.f32.mrb[52].mxu0 }
 0x28b   : > { %v4311_v54 = vadd.f32 %v5256_v35, %v1813_v53  ;;  %v1815_v55 = vpop.f32.mrb[53].mxu0  ;;  %4095 = vmatmul.mubr.msk.bf16.gmra.mrb[48].mxu1 %vm2178_vm0, %v5374_v52 }
 0x28c   : > { %v1816_v56 = vpop.f32.mrb[54].mxu0  ;;  %2437 = vmatprep.mubr.bf16.mxu1 %v4864_v1 }
 0x28d   : > { %v4312_v57 = vadd.f32 %v5256_v35, %v1816_v56  ;;  %v1818_v58 = vpop.f32.mrb[55].mxu0  ;;  %v1990_v59 = vmax.f32 %v4311_v54, 0.0 }
 0x28f   : > { %v1991_v61 = vmax.f32 %v4312_v57, 0.0 }
 0x291   : > { %v5381_v63 = vpack.c.bf16 %v1991_v61, %v1990_v59 }
 0x292   : > { %v1821_v0 = vpop.f32.mrb[56].mxu0 }
 0x293   : > { %v4313_v2 = vadd.f32 %v5256_v35, %v1821_v0  ;;  %v1823_v3 = vpop.f32.mrb[57].mxu0  ;;  %4096 = vmatmul.mubr.msk.bf16.gmra.mrb[52].mxu1 %vm2178_vm0, %v5381_v63 }
 0x294   : > { %v1824_v4 = vpop.f32.mrb[58].mxu0  ;;  %2447 = vmatprep.mubr.bf16.mxu1 %v4864_v1 }
 0x295   : > { %v4314_v5 = vadd.f32 %v5256_v35, %v1824_v4  ;;  %v1826_v6 = vpop.f32.mrb[59].mxu0  ;;  %v1992_v8 = vmax.f32 %v4313_v2, 0.0 }
 0x297   : > { %v1993_v9 = vmax.f32 %v4314_v5, 0.0 }
 0x299   : > { %v5388_v11 = vpack.c.bf16 %v1993_v9, %v1992_v8 }
 0x29a   : > { %v1829_v12 = vpop.f32.mrb[60].mxu0 }
 0x29b   : > { %v4315_v13 = vadd.f32 %v5256_v35, %v1829_v12  ;;  %v1831_v14 = vpop.f32.mrb[61].mxu0  ;;  %4097 = vmatmul.mubr.msk.bf16.gmra.mrb[56].mxu1 %vm2178_vm0, %v5388_v11 }
 0x29c   : > { %v1832_v15 = vpop.f32.mrb[62].mxu0  ;;  %2457 = vmatprep.mubr.bf16.mxu1 %v4864_v1 }
 0x29d   : > { %v4316_v16 = vadd.f32 %v5256_v35, %v1832_v15  ;;  %v1834_v17 = vpop.f32.mrb[63].mxu0  ;;  %v1994_v18 = vmax.f32 %v4315_v13, 0.0 }
 0x29f   : > { %v1995_v20 = vmax.f32 %v4316_v16, 0.0 }
 0x2a1   : > { %v5395_v22 = vpack.c.bf16 %v1995_v20, %v1994_v18 }
 0x2a2   : > { %v1837_v23 = vpop.f32.mrb[64].mxu0 }
 0x2a3   : > { %v4317_v24 = vadd.f32 %v5256_v35, %v1837_v23  ;;  %v1839_v25 = vpop.f32.mrb[65].mxu0  ;;  %4098 = vmatmul.mubr.msk.bf16.gmra.mrb[60].mxu1 %vm2178_vm0, %v5395_v22 }
 0x2a4   : > { %v1840_v26 = vpop.f32.mrb[66].mxu0  ;;  %2467 = vmatprep.mubr.bf16.mxu1 %v4864_v1 }
 0x2a5   : > { %v4318_v27 = vadd.f32 %v5256_v35, %v1840_v26  ;;  %v1842_v28 = vpop.f32.mrb[67].mxu0  ;;  %v1996_v30 = vmax.f32 %v4317_v24, 0.0 }
 0x2a7   : > { %v1997_v32 = vmax.f32 %v4318_v27, 0.0 }
 0x2a9   : > { %v5402_v33 = vpack.c.bf16 %v1997_v32, %v1996_v30 }
 0x2aa   : > { %v1845_v34 = vpop.f32.mrb[68].mxu0 }
 0x2ab   : > { %v4319_v36 = vadd.f32 %v5256_v35, %v1845_v34  ;;  %v1847_v37 = vpop.f32.mrb[69].mxu0  ;;  %4099 = vmatmul.mubr.msk.bf16.gmra.mrb[64].mxu1 %vm2178_vm0, %v5402_v33 }
 0x2ac   : > { %v1848_v38 = vpop.f32.mrb[70].mxu0  ;;  %2477 = vmatprep.mubr.bf16.mxu1 %v4864_v1 }
 0x2ad   : > { %v4320_v39 = vadd.f32 %v5256_v35, %v1848_v38  ;;  %v1850_v42 = vpop.f32.mrb[71].mxu0  ;;  %v1998_v43 = vmax.f32 %v4319_v36, 0.0 }
 0x2af   : > { %v1999_v44 = vmax.f32 %v4320_v39, 0.0 }
 0x2b1   : > { %v5409_v45 = vpack.c.bf16 %v1999_v44, %v1998_v43 }
 0x2b2   : > { %v1853_v46 = vpop.f32.mrb[72].mxu0 }
 0x2b3   : > { %v4321_v48 = vadd.f32 %v5256_v35, %v1853_v46  ;;  %v1855_v49 = vpop.f32.mrb[73].mxu0  ;;  %4100 = vmatmul.mubr.msk.bf16.gmra.mrb[68].mxu1 %vm2178_vm0, %v5409_v45 }
 0x2b4   : > { %v1856_v50 = vpop.f32.mrb[74].mxu0  ;;  %2487 = vmatprep.mubr.bf16.mxu1 %v4864_v1 }
 0x2b5   : > { %v4322_v53 = vadd.f32 %v5256_v35, %v1856_v50  ;;  %v1858_v54 = vpop.f32.mrb[75].mxu0  ;;  %v2000_v55 = vmax.f32 %v4321_v48, 0.0 }
 0x2b7   : > { %v2001_v56 = vmax.f32 %v4322_v53, 0.0 }
 0x2b9   : > { %v5416_v57 = vpack.c.bf16 %v2001_v56, %v2000_v55 }
 0x2ba   : > { %v1861_v58 = vpop.f32.mrb[76].mxu0 }
 0x2bb   : > { %v4323_v59 = vadd.f32 %v5256_v35, %v1861_v58  ;;  %v1863_v61 = vpop.f32.mrb[77].mxu0  ;;  %4101 = vmatmul.mubr.msk.bf16.gmra.mrb[72].mxu1 %vm2178_vm0, %v5416_v57 }
 0x2bc   : > { %v1864_v0 = vpop.f32.mrb[78].mxu0  ;;  %2497 = vmatprep.mubr.bf16.mxu1 %v4864_v1 }
 0x2bd   : > { %v4324_v2 = vadd.f32 %v5256_v35, %v1864_v0  ;;  %v1866_v3 = vpop.f32.mrb[79].mxu0  ;;  %v2002_v4 = vmax.f32 %v4323_v59, 0.0 }
 0x2bf   : > { %v2003_v5 = vmax.f32 %v4324_v2, 0.0 }
 0x2c1   : > { %v5423_v6 = vpack.c.bf16 %v2003_v5, %v2002_v4 }
 0x2c2   : > { %v1869_v8 = vpop.f32.mrb[80].mxu0 }
 0x2c3   : > { %v4325_v9 = vadd.f32 %v5256_v35, %v1869_v8  ;;  %v1871_v12 = vpop.f32.mrb[81].mxu0  ;;  %4102 = vmatmul.mubr.msk.bf16.gmra.mrb[76].mxu1 %vm2178_vm0, %v5423_v6 }
 0x2c4   : > { %v1872_v13 = vpop.f32.mrb[82].mxu0  ;;  %2507 = vmatprep.mubr.bf16.mxu1 %v4864_v1 }
 0x2c5   : > { %v4326_v14 = vadd.f32 %v5256_v35, %v1872_v13  ;;  %v1874_v15 = vpop.f32.mrb[83].mxu0  ;;  %v2004_v16 = vmax.f32 %v4325_v9, 0.0 }
 0x2c7   : > { %v2005_v17 = vmax.f32 %v4326_v14, 0.0 }
 0x2c9   : > { %v5430_v18 = vpack.c.bf16 %v2005_v17, %v2004_v16 }
 0x2ca   : > { %v1877_v20 = vpop.f32.mrb[84].mxu0 }
 0x2cb   : > { %v4327_v23 = vadd.f32 %v5256_v35, %v1877_v20  ;;  %v1879_v24 = vpop.f32.mrb[85].mxu0  ;;  %4103 = vmatmul.mubr.msk.bf16.gmra.mrb[80].mxu1 %vm2178_vm0, %v5430_v18 }
 0x2cc   : > { %v1880_v25 = vpop.f32.mrb[86].mxu0  ;;  %2517 = vmatprep.mubr.bf16.mxu1 %v4864_v1 }
 0x2cd   : > { %v4328_v26 = vadd.f32 %v5256_v35, %v1880_v25  ;;  %v1882_v27 = vpop.f32.mrb[87].mxu0  ;;  %v2006_v28 = vmax.f32 %v4327_v23, 0.0  ;;  %v350_v25 = vlaneseq }
 0x2cf   : > { %v2007_v30 = vmax.f32 %v4328_v26, 0.0  ;;  %vm5926_vm1 = vcmp.lt.s32.totalorder %v350_v25, 512 }
 0x2d1   : > { %v5437_v32 = vpack.c.bf16 %v2007_v30, %v2006_v28 }
 0x2d2   : > { %v1885_v34 = vpop.f32.mrb[88].mxu0 }
 0x2d3   : > { %v4329_v36 = vadd.f32 %v5256_v35, %v1885_v34  ;;  %v1887_v37 = vpop.f32.mrb[89].mxu0  ;;  %4104 = vmatmul.mubr.msk.bf16.gmra.mrb[84].mxu1 %vm2178_vm0, %v5437_v32  ;;  %v5471_v34 = vshrl.u32 %v350_v25, 7 }
 0x2d4   : > { %v1888_v38 = vpop.f32.mrb[90].mxu0  ;;  %2527 = vmatprep.mubr.bf16.mxu1 %v4864_v1 }
 0x2d5   : > { %v4330_v39 = vadd.f32 %v5256_v35, %v1888_v38  ;;  %v1890_v42 = vpop.f32.mrb[91].mxu0  ;;  %v2008_v43 = vmax.f32 %v4329_v36, 0.0 }
 0x2d7   : > { %v2009_v44 = vmax.f32 %v4330_v39, 0.0 }
 0x2d9   : > { %v5444_v46 = vpack.c.bf16 %v2009_v44, %v2008_v43  ;;  %v2080_v43 = vsub.s32 0, %v5471_v34  ;;  %v2076_v44 = vld [vmem:[%s6183_s4] sm:$0xf] }
 0x2da   : > { %v1893_v48 = vpop.f32.mrb[92].mxu0 }
 0x2db   : > { %v4331_v49 = vadd.f32 %v5256_v35, %v1893_v48  ;;  %v1895_v50 = vpop.f32.mrb[93].mxu0  ;;  %4105 = vmatmul.mubr.msk.bf16.gmra.mrb[88].mxu1 %vm2178_vm0, %v5444_v46  ;;  %v2084_v48 = vsub.s32 1, %v5471_v34 }
 0x2dc   : > { %v1896_v53 = vpop.f32.mrb[94].mxu0  ;;  %2537 = vmatprep.mubr.bf16.mxu1 %v4864_v1 }
 0x2dd   : > { %v4332_v54 = vadd.f32 %v5256_v35, %v1896_v53  ;;  %v1898_v55 = vpop.f32.mrb[95].mxu0  ;;  %v2010_v56 = vmax.f32 %v4331_v49, 0.0 }
 0x2de   : > { %v5487_v55 = vrot.slane %v2076_v44, %v2080_v43 }
 0x2df   : > { %v2011_v58 = vmax.f32 %v4332_v54, 0.0 }
 0x2e1   : > { %v5451_v59 = vpack.c.bf16 %v2011_v58, %v2010_v56  ;;  %v5491_v58 = vrot.slane %v2076_v44, %v2084_v48 }
 0x2e2   : > { %v1901_v61 = vpop.f32.mrb[96].mxu0 }
 0x2e3   : > { %v4333_v0 = vadd.f32 %v5256_v35, %v1901_v61  ;;  %v1903_v2 = vpop.f32.mrb[97].mxu0  ;;  %4106 = vmatmul.mubr.msk.bf16.gmra.mrb[92].mxu1 %vm2178_vm0, %v5451_v59 }
 0x2e4   : > { %v1904_v3 = vpop.f32.mrb[98].mxu0  ;;  %2547 = vmatprep.mubr.bf16.mxu1 %v4864_v1 }
 0x2e5   : > { %v4334_v4 = vadd.f32 %v5256_v35, %v1904_v3  ;;  %v1906_v5 = vpop.f32.mrb[99].mxu0  ;;  %v2012_v8 = vmax.f32 %v4333_v0, 0.0 }
 0x2e7   : > { %v2013_v9 = vmax.f32 %v4334_v4, 0.0 }
 0x2e9   : > { %v5458_v12 = vpack.c.bf16 %v2013_v9, %v2012_v8 }
 0x2ea   : > { %v1909_v13 = vpop.f32.mrb[100].mxu0 }
 0x2eb   : > { %v4335_v14 = vadd.f32 %v5256_v35, %v1909_v13  ;;  %v1911_v15 = vpop.f32.mrb[101].mxu0  ;;  %4107 = vmatmul.mubr.msk.bf16.gmra.mrb[96].mxu1 %vm2178_vm0, %v5458_v12 }
 0x2ec   : > { %v1912_v16 = vpop.f32.mrb[102].mxu0  ;;  %2557 = vmatprep.mubr.bf16.mxu1 %v4864_v1 }
 0x2ed   : > { %v4336_v17 = vadd.f32 %v5256_v35, %v1912_v16  ;;  %v1914_v20 = vpop.f32.mrb[103].mxu0  ;;  %v2014_v23 = vmax.f32 %v4335_v14, 0.0 }
 0x2ef   : > { %v2015_v24 = vmax.f32 %v4336_v17, 0.0 }
 0x2f1   : > { %v5465_v26 = vpack.c.bf16 %v2015_v24, %v2014_v23 }
 0x2f2   : > { %v1917_v27 = vpop.f32.mrb[104].mxu0 }
 0x2f3   : > { %v4337_v28 = vadd.f32 %v5256_v35, %v1917_v27  ;;  %v1919_v30 = vpop.f32.mrb[105].mxu0  ;;  %4108 = vmatmul.mubr.msk.bf16.gmra.mrb[100].mxu1 %vm2178_vm0, %v5465_v26 }
 0x2f4   : > { %v1920_v36 = vpop.f32.mrb[106].mxu0  ;;  %2567 = vmatprep.mubr.bf16.mxu1 %v4864_v1 }
 0x2f5   : > { %v4338_v37 = vadd.f32 %v5256_v35, %v1920_v36  ;;  %v1922_v38 = vpop.f32.mrb[107].mxu0  ;;  %v2016_v39 = vmax.f32 %v4337_v28, 0.0 }
 0x2f7   : > { %v2017_v42 = vmax.f32 %v4338_v37, 0.0 }
 0x2f9   : > { %v5480_v49 = vpack.c.bf16 %v2017_v42, %v2016_v39 }
 0x2fa   : > { %v1925_v50 = vpop.f32.mrb[108].mxu0 }
 0x2fb   : > { %v4339_v53 = vadd.f32 %v5256_v35, %v1925_v50  ;;  %v1927_v54 = vpop.f32.mrb[109].mxu0  ;;  %4109 = vmatmul.mubr.msk.bf16.gmra.mrb[104].mxu1 %vm2178_vm0, %v5480_v49 }
 0x2fc   : > { %v1928_v56 = vpop.f32.mrb[110].mxu0  ;;  %2577 = vmatprep.mubr.bf16.mxu1 %v4864_v1 }
 0x2fd   : > { %v4340_v61 = vadd.f32 %v5256_v35, %v1928_v56  ;;  %v1930_v0 = vpop.f32.mrb[111].mxu0  ;;  %v2018_v3 = vmax.f32 %v4339_v53, 0.0 }
 0x2fe   : > { %v2309_v2 = vpop.f32.mrb[0].mxu1 }
 0x2ff   : > { %v2019_v4 = vmax.f32 %v4340_v61, 0.0  ;;  %v2310_v5 = vadd.f32 %v2309_v2, %v5487_v55  ;;  %v2311_v8 = vpop.f32.mrb[1].mxu1 }
 0x300   : > { %v2312_v9 = vadd.f32 %v2311_v8, %v5491_v58  ;;  %v2313_v13 = vpop.f32.mrb[2].mxu1 }
 0x301   : > { %v5497_v14 = vpack.c.bf16 %v2019_v4, %v2018_v3  ;;  %v2314_v15 = vadd.f32 %v2313_v13, %v5487_v55  ;;  %v2315_v16 = vpop.f32.mrb[3].mxu1  ;;  %v2981_v23 = vmax.f32 %v2310_v5, 0.0 }
 0x302   : > { %v2316_v17 = vadd.f32 %v2315_v16, %v5491_v58  ;;  %v1933_v20 = vpop.f32.mrb[112].mxu0  ;;  %v2982_v30 = vmax.f32 %v2312_v9, 0.0 }
 0x303   : > { %v2985_v24 = vmax.f32 %v2314_v15, 0.0  ;;  %v4341_v27 = vadd.f32 %v5256_v35, %v1933_v20  ;;  %v1935_v28 = vpop.f32.mrb[113].mxu0  ;;  %4110 = vmatmul.mubr.msk.bf16.gmra.mrb[108].mxu1 %vm2178_vm0, %v5497_v14 }
 0x304   : > { %v2986_v36 = vmax.f32 %v2316_v17, 0.0  ;;  %v1936_v37 = vpop.f32.mrb[114].mxu0  ;;  %2587 = vmatprep.mubr.bf16.mxu1 %v4864_v1 }
 0x305   : > { %v3238_v38 = vadd.f32 %v2985_v24, %v2981_v23  ;;  %v4342_v39 = vadd.f32 %v5256_v35, %v1936_v37  ;;  %v1938_v42 = vpop.f32.mrb[115].mxu0  ;;  %v2020_v53 = vmax.f32 %v4341_v27, 0.0 }
 0x306   : > { %v3307_v44 = vadd.f32 %v2986_v36, %v2982_v30  ;;  %v2319_v50 = vpop.f32.mrb[4].mxu1 }
 0x307   : > { %v2021_v54 = vmax.f32 %v4342_v39, 0.0  ;;  %v2320_v56 = vadd.f32 %v2319_v50, %v5487_v55  ;;  %v2321_v61 = vpop.f32.mrb[5].mxu1 }
 0x308   : > { %v2322_v0 = vadd.f32 %v2321_v61, %v5491_v58  ;;  %v2323_v2 = vpop.f32.mrb[6].mxu1 }
 0x309   : > { %v5508_v3 = vpack.c.bf16 %v2021_v54, %v2020_v53  ;;  %v2989_v4 = vmax.f32 %v2320_v56, 0.0  ;;  %v2324_v5 = vadd.f32 %v2323_v2, %v5487_v55  ;;  %v2325_v8 = vpop.f32.mrb[7].mxu1 }
 0x30a   : > { %v2990_v9 = vmax.f32 %v2322_v0, 0.0  ;;  %v2326_v13 = vadd.f32 %v2325_v8, %v5491_v58  ;;  %v1941_v15 = vpop.f32.mrb[116].mxu0 }
 0x30b   : > { %v3239_v16 = vadd.f32 %v3238_v38, %v2989_v4  ;;  %v2993_v17 = vmax.f32 %v2324_v5, 0.0  ;;  %v4343_v20 = vadd.f32 %v5256_v35, %v1941_v15  ;;  %v1943_v23 = vpop.f32.mrb[117].mxu0  ;;  %4111 = vmatmul.mubr.msk.bf16.gmra.mrb[112].mxu1 %vm2178_vm0, %v5508_v3 }
 0x30c   : > { %v3308_v24 = vadd.f32 %v3307_v44, %v2990_v9  ;;  %v2994_v27 = vmax.f32 %v2326_v13, 0.0  ;;  %v1944_v28 = vpop.f32.mrb[118].mxu0  ;;  %2597 = vmatprep.mubr.bf16.mxu1 %v4864_v1 }
 0x30d   : > { %v3240_v30 = vadd.f32 %v3239_v16, %v2993_v17  ;;  %v4344_v36 = vadd.f32 %v5256_v35, %v1944_v28  ;;  %v1946_v37 = vpop.f32.mrb[119].mxu0  ;;  %v2022_v50 = vmax.f32 %v4343_v20, 0.0 }
 0x30e   : > { %v3309_v39 = vadd.f32 %v3308_v24, %v2994_v27  ;;  %v2329_v42 = vpop.f32.mrb[8].mxu1 }
 0x30f   : > { %v2023_v38 = vmax.f32 %v4344_v36, 0.0  ;;  %v2330_v53 = vadd.f32 %v2329_v42, %v5487_v55  ;;  %v2331_v54 = vpop.f32.mrb[9].mxu1 }
 0x310   : > { %v2332_v56 = vadd.f32 %v2331_v54, %v5491_v58  ;;  %v2333_v61 = vpop.f32.mrb[10].mxu1 }
 0x311   : > { %v5519_v0 = vpack.c.bf16 %v2023_v38, %v2022_v50  ;;  %v2997_v44 = vmax.f32 %v2330_v53, 0.0  ;;  %v2334_v2 = vadd.f32 %v2333_v61, %v5487_v55  ;;  %v2335_v4 = vpop.f32.mrb[11].mxu1 }
 0x312   : > { %v2998_v5 = vmax.f32 %v2332_v56, 0.0  ;;  %v2336_v8 = vadd.f32 %v2335_v4, %v5491_v58  ;;  %v1949_v9 = vpop.f32.mrb[120].mxu0 }
 0x313   : > { %v3241_v13 = vadd.f32 %v3240_v30, %v2997_v44  ;;  %v3001_v15 = vmax.f32 %v2334_v2, 0.0  ;;  %v4345_v16 = vadd.f32 %v5256_v35, %v1949_v9  ;;  %v1951_v17 = vpop.f32.mrb[121].mxu0  ;;  %4112 = vmatmul.mubr.msk.bf16.gmra.mrb[116].mxu1 %vm2178_vm0, %v5519_v0 }
 0x314   : > { %v3310_v20 = vadd.f32 %v3309_v39, %v2998_v5  ;;  %v3002_v23 = vmax.f32 %v2336_v8, 0.0  ;;  %v1952_v24 = vpop.f32.mrb[122].mxu0  ;;  %2607 = vmatprep.mubr.bf16.mxu1 %v4864_v1 }
 0x315   : > { %v3242_v27 = vadd.f32 %v3241_v13, %v3001_v15  ;;  %v4346_v28 = vadd.f32 %v5256_v35, %v1952_v24  ;;  %v1954_v36 = vpop.f32.mrb[123].mxu0  ;;  %v2024_v50 = vmax.f32 %v4345_v16, 0.0 }
 0x316   : > { %v3311_v37 = vadd.f32 %v3310_v20, %v3002_v23  ;;  %v2339_v42 = vpop.f32.mrb[12].mxu1 }
 0x317   : > { %v2025_v30 = vmax.f32 %v4346_v28, 0.0  ;;  %v2340_v38 = vadd.f32 %v2339_v42, %v5487_v55  ;;  %v2341_v53 = vpop.f32.mrb[13].mxu1 }
 0x318   : > { %v2342_v54 = vadd.f32 %v2341_v53, %v5491_v58  ;;  %v2343_v56 = vpop.f32.mrb[14].mxu1 }
 0x319   : > { %v5530_v61 = vpack.c.bf16 %v2025_v30, %v2024_v50  ;;  %v3005_v39 = vmax.f32 %v2340_v38, 0.0  ;;  %v2344_v44 = vadd.f32 %v2343_v56, %v5487_v55  ;;  %v2345_v2 = vpop.f32.mrb[15].mxu1 }
 0x31a   : > { %v3006_v4 = vmax.f32 %v2342_v54, 0.0  ;;  %v2346_v5 = vadd.f32 %v2345_v2, %v5491_v58  ;;  %v1957_v8 = vpop.f32.mrb[124].mxu0 }
 0x31b   : > { %v3243_v9 = vadd.f32 %v3242_v27, %v3005_v39  ;;  %v3009_v13 = vmax.f32 %v2344_v44, 0.0  ;;  %v4347_v15 = vadd.f32 %v5256_v35, %v1957_v8  ;;  %v1959_v16 = vpop.f32.mrb[125].mxu0  ;;  %4113 = vmatmul.mubr.msk.bf16.gmra.mrb[120].mxu1 %vm2178_vm0, %v5530_v61 }
 0x31c   : > { %v3312_v17 = vadd.f32 %v3311_v37, %v3006_v4  ;;  %v3010_v20 = vmax.f32 %v2346_v5, 0.0  ;;  %v1960_v23 = vpop.f32.mrb[126].mxu0  ;;  %2617 = vmatprep.mubr.bf16.mxu1 %v4864_v1 }
 0x31d   : > { %v3244_v24 = vadd.f32 %v3243_v9, %v3009_v13  ;;  %v4348_v28 = vadd.f32 %v5256_v35, %v1960_v23  ;;  %v1962_v36 = vpop.f32.mrb[127].mxu0  ;;  %v2026_v30 = vmax.f32 %v4347_v15, 0.0 }
 0x31e   : > { %v3313_v42 = vadd.f32 %v3312_v17, %v3010_v20  ;;  %v2349_v50 = vpop.f32.mrb[16].mxu1 }
 0x31f   : > { %v2027_v27 = vmax.f32 %v4348_v28, 0.0  ;;  %v2350_v38 = vadd.f32 %v2349_v50, %v5487_v55  ;;  %v2351_v53 = vpop.f32.mrb[17].mxu1 }
 0x320   : > { %v2352_v54 = vadd.f32 %v2351_v53, %v5491_v58  ;;  %v2353_v56 = vpop.f32.mrb[18].mxu1 }
 0x321   : > { %v5541_v39 = vpack.c.bf16 %v2027_v27, %v2026_v30  ;;  %v3013_v37 = vmax.f32 %v2350_v38, 0.0  ;;  %v2354_v44 = vadd.f32 %v2353_v56, %v5487_v55  ;;  %v2355_v2 = vpop.f32.mrb[19].mxu1 }
 0x322   : > { %v3014_v4 = vmax.f32 %v2352_v54, 0.0  ;;  %v2356_v35 = vadd.f32 %v2355_v2, %v5491_v58 }
 0x323   : > { %v3245_v5 = vadd.f32 %v3244_v24, %v3013_v37  ;;  %v3017_v8 = vmax.f32 %v2354_v44, 0.0  ;;  %4114 = vmatmul.mubr.msk.bf16.gmra.mrb[124].mxu1 %vm2178_vm0, %v5541_v39 }
 0x324   : > { %v3314_v9 = vadd.f32 %v3313_v42, %v3014_v4  ;;  %v3018_v13 = vmax.f32 %v2356_v35, 0.0  ;;  %2660 = vmatprep.mubr.bf16.mxu1 %v4864_v1 }
 0x325   : > { %v3246_v15 = vadd.f32 %v3245_v5, %v3017_v8 }
 0x326   : > { %v3315_v16 = vadd.f32 %v3314_v9, %v3018_v13  ;;  %v2359_v17 = vpop.f32.mrb[20].mxu1 }
 0x327   : > { %v2360_v20 = vadd.f32 %v2359_v17, %v5487_v55  ;;  %v2361_v23 = vpop.f32.mrb[21].mxu1 }
 0x328   : > { %v2362_v28 = vadd.f32 %v2361_v23, %v5491_v58  ;;  %v2363_v36 = vpop.f32.mrb[22].mxu1 }
 0x329   : > { %v3021_v50 = vmax.f32 %v2360_v20, 0.0  ;;  %v2364_v24 = vadd.f32 %v2363_v36, %v5487_v55  ;;  %v2365_v30 = vpop.f32.mrb[23].mxu1 }
 0x32a   : > { %v3022_v27 = vmax.f32 %v2362_v28, 0.0  ;;  %v2366_v38 = vadd.f32 %v2365_v30, %v5491_v58 }
 0x32b   : > { %v3247_v42 = vadd.f32 %v3246_v15, %v3021_v50  ;;  %v3025_v53 = vmax.f32 %v2364_v24, 0.0  ;;  %4115 = vmatmul.mubr.msk.bf16.vlgmr.msra.gmra.mrb[128].mxu1 %vm2178_vm0, %v5265_v47 }
 0x32c   : > { %v3316_v54 = vadd.f32 %v3315_v16, %v3022_v27  ;;  %v3026_v56 = vmax.f32 %v2366_v38, 0.0  ;;  %2670 = vmatprep.mubr.bf16.mxu1 %v4864_v1 }
 0x32d   : > { %v3248_v37 = vadd.f32 %v3247_v42, %v3025_v53 }
 0x32e   : > { %v3317_v44 = vadd.f32 %v3316_v54, %v3026_v56  ;;  %v2369_v2 = vpop.f32.mrb[24].mxu1 }
 0x32f   : > { %v2370_v4 = vadd.f32 %v2369_v2, %v5487_v55  ;;  %v2371_v35 = vpop.f32.mrb[25].mxu1 }
 0x330   : > { %v2372_v5 = vadd.f32 %v2371_v35, %v5491_v58  ;;  %v2373_v8 = vpop.f32.mrb[26].mxu1 }
 0x331   : > { %v3029_v9 = vmax.f32 %v2370_v4, 0.0  ;;  %v2374_v13 = vadd.f32 %v2373_v8, %v5487_v55  ;;  %v2375_v15 = vpop.f32.mrb[27].mxu1 }
 0x332   : > { %v3030_v17 = vmax.f32 %v2372_v5, 0.0  ;;  %v2376_v47 = vadd.f32 %v2375_v15, %v5491_v58 }
 0x333   : > { %v3249_v16 = vadd.f32 %v3248_v37, %v3029_v9  ;;  %v3033_v20 = vmax.f32 %v2374_v13, 0.0  ;;  %4116 = vmatmul.mubr.msk.bf16.gmra.mrb[132].mxu1 %vm2178_vm0, %v5286_v62 }
 0x334   : > { %v3318_v23 = vadd.f32 %v3317_v44, %v3030_v17  ;;  %v3034_v28 = vmax.f32 %v2376_v47, 0.0  ;;  %2680 = vmatprep.mubr.bf16.mxu1 %v4864_v1 }
 0x335   : > { %v3250_v36 = vadd.f32 %v3249_v16, %v3033_v20 }
 0x336   : > { %v3319_v50 = vadd.f32 %v3318_v23, %v3034_v28  ;;  %v2379_v24 = vpop.f32.mrb[28].mxu1 }
 0x337   : > { %v2380_v30 = vadd.f32 %v2379_v24, %v5487_v55  ;;  %v2381_v27 = vpop.f32.mrb[29].mxu1 }
 0x338   : > { %v2382_v38 = vadd.f32 %v2381_v27, %v5491_v58  ;;  %v2383_v42 = vpop.f32.mrb[30].mxu1 }
 0x339   : > { %v3037_v53 = vmax.f32 %v2380_v30, 0.0  ;;  %v2384_v54 = vadd.f32 %v2383_v42, %v5487_v55  ;;  %v2385_v56 = vpop.f32.mrb[31].mxu1 }
 0x33a   : > { %v3038_v37 = vmax.f32 %v2382_v38, 0.0  ;;  %v2386_v62 = vadd.f32 %v2385_v56, %v5491_v58 }
 0x33b   : > { %v3251_v44 = vadd.f32 %v3250_v36, %v3037_v53  ;;  %v3041_v2 = vmax.f32 %v2384_v54, 0.0  ;;  %4117 = vmatmul.mubr.msk.bf16.gmra.mrb[136].mxu1 %vm2178_vm0, %v5295_v10 }
 0x33c   : > { %v3320_v4 = vadd.f32 %v3319_v50, %v3038_v37  ;;  %v3042_v35 = vmax.f32 %v2386_v62, 0.0  ;;  %2690 = vmatprep.mubr.bf16.mxu1 %v4864_v1 }
 0x33d   : > { %v3252_v5 = vadd.f32 %v3251_v44, %v3041_v2 }
 0x33e   : > { %v3321_v8 = vadd.f32 %v3320_v4, %v3042_v35  ;;  %v2389_v9 = vpop.f32.mrb[32].mxu1 }
 0x33f   : > { %v2390_v13 = vadd.f32 %v2389_v9, %v5487_v55  ;;  %v2391_v15 = vpop.f32.mrb[33].mxu1 }
 0x340   : > { %v2392_v17 = vadd.f32 %v2391_v15, %v5491_v58  ;;  %v2393_v47 = vpop.f32.mrb[34].mxu1 }
 0x341   : > { %v3045_v16 = vmax.f32 %v2390_v13, 0.0  ;;  %v2394_v20 = vadd.f32 %v2393_v47, %v5487_v55  ;;  %v2395_v23 = vpop.f32.mrb[35].mxu1 }
 0x342   : > { %v3046_v28 = vmax.f32 %v2392_v17, 0.0  ;;  %v2396_v10 = vadd.f32 %v2395_v23, %v5491_v58 }
 0x343   : > { %v3253_v36 = vadd.f32 %v3252_v5, %v3045_v16  ;;  %v3049_v50 = vmax.f32 %v2394_v20, 0.0  ;;  %4118 = vmatmul.mubr.msk.bf16.gmra.mrb[140].mxu1 %vm2178_vm0, %v5304_v21 }
 0x344   : > { %v3322_v24 = vadd.f32 %v3321_v8, %v3046_v28  ;;  %v3050_v30 = vmax.f32 %v2396_v10, 0.0  ;;  %2700 = vmatprep.mubr.bf16.mxu1 %v4864_v1 }
 0x345   : > { %v3254_v27 = vadd.f32 %v3253_v36, %v3049_v50 }
 0x346   : > { %v3323_v38 = vadd.f32 %v3322_v24, %v3050_v30  ;;  %v2399_v42 = vpop.f32.mrb[36].mxu1 }
 0x347   : > { %v2400_v53 = vadd.f32 %v2399_v42, %v5487_v55  ;;  %v2401_v54 = vpop.f32.mrb[37].mxu1 }
 0x348   : > { %v2402_v56 = vadd.f32 %v2401_v54, %v5491_v58  ;;  %v2403_v37 = vpop.f32.mrb[38].mxu1 }
 0x349   : > { %v3053_v62 = vmax.f32 %v2400_v53, 0.0  ;;  %v2404_v44 = vadd.f32 %v2403_v37, %v5487_v55  ;;  %v2405_v2 = vpop.f32.mrb[39].mxu1 }
 0x34a   : > { %v3054_v4 = vmax.f32 %v2402_v56, 0.0  ;;  %v2406_v21 = vadd.f32 %v2405_v2, %v5491_v58 }
 0x34b   : > { %v3255_v35 = vadd.f32 %v3254_v27, %v3053_v62  ;;  %v3057_v5 = vmax.f32 %v2404_v44, 0.0  ;;  %4119 = vmatmul.mubr.msk.bf16.gmra.mrb[144].mxu1 %vm2178_vm0, %v5312_v31 }
 0x34c   : > { %v3324_v8 = vadd.f32 %v3323_v38, %v3054_v4  ;;  %v3058_v9 = vmax.f32 %v2406_v21, 0.0  ;;  %2710 = vmatprep.mubr.bf16.mxu1 %v4864_v1 }
 0x34d   : > { %v3256_v13 = vadd.f32 %v3255_v35, %v3057_v5 }
 0x34e   : > { %v3325_v15 = vadd.f32 %v3324_v8, %v3058_v9  ;;  %v2409_v17 = vpop.f32.mrb[40].mxu1 }
 0x34f   : > { %v2410_v47 = vadd.f32 %v2409_v17, %v5487_v55  ;;  %v2411_v16 = vpop.f32.mrb[41].mxu1 }
 0x350   : > { %v2412_v20 = vadd.f32 %v2411_v16, %v5491_v58  ;;  %v2413_v23 = vpop.f32.mrb[42].mxu1 }
 0x351   : > { %v3061_v28 = vmax.f32 %v2410_v47, 0.0  ;;  %v2414_v10 = vadd.f32 %v2413_v23, %v5487_v55  ;;  %v2415_v36 = vpop.f32.mrb[43].mxu1 }
 0x352   : > { %v3062_v50 = vmax.f32 %v2412_v20, 0.0  ;;  %v2416_v31 = vadd.f32 %v2415_v36, %v5491_v58 }
 0x353   : > { %v3257_v24 = vadd.f32 %v3256_v13, %v3061_v28  ;;  %v3065_v30 = vmax.f32 %v2414_v10, 0.0  ;;  %4120 = vmatmul.mubr.msk.bf16.gmra.mrb[148].mxu1 %vm2178_vm0, %v5319_v41 }
 0x354   : > { %v3326_v27 = vadd.f32 %v3325_v15, %v3062_v50  ;;  %v3066_v38 = vmax.f32 %v2416_v31, 0.0  ;;  %2720 = vmatprep.mubr.bf16.mxu1 %v4864_v1 }
 0x355   : > { %v3258_v42 = vadd.f32 %v3257_v24, %v3065_v30 }
 0x356   : > { %v3327_v53 = vadd.f32 %v3326_v27, %v3066_v38  ;;  %v2419_v54 = vpop.f32.mrb[44].mxu1 }
 0x357   : > { %v2420_v56 = vadd.f32 %v2419_v54, %v5487_v55  ;;  %v2421_v37 = vpop.f32.mrb[45].mxu1 }
 0x358   : > { %v2422_v62 = vadd.f32 %v2421_v37, %v5491_v58  ;;  %v2423_v44 = vpop.f32.mrb[46].mxu1 }
 0x359   : > { %v3069_v2 = vmax.f32 %v2420_v56, 0.0  ;;  %v2424_v4 = vadd.f32 %v2423_v44, %v5487_v55  ;;  %v2425_v21 = vpop.f32.mrb[47].mxu1 }
 0x35a   : > { %v3070_v35 = vmax.f32 %v2422_v62, 0.0  ;;  %v2426_v41 = vadd.f32 %v2425_v21, %v5491_v58 }
 0x35b   : > { %v3259_v5 = vadd.f32 %v3258_v42, %v3069_v2  ;;  %v3073_v8 = vmax.f32 %v2424_v4, 0.0  ;;  %4121 = vmatmul.mubr.msk.bf16.gmra.mrb[152].mxu1 %vm2178_vm0, %v5326_v51 }
 0x35c   : > { %v3328_v9 = vadd.f32 %v3327_v53, %v3070_v35  ;;  %v3074_v13 = vmax.f32 %v2426_v41, 0.0  ;;  %2730 = vmatprep.mubr.bf16.mxu1 %v4864_v1 }
 0x35d   : > { %v3260_v15 = vadd.f32 %v3259_v5, %v3073_v8 }
 0x35e   : > { %v3329_v17 = vadd.f32 %v3328_v9, %v3074_v13  ;;  %v2429_v47 = vpop.f32.mrb[48].mxu1 }
 0x35f   : > { %v2430_v16 = vadd.f32 %v2429_v47, %v5487_v55  ;;  %v2431_v20 = vpop.f32.mrb[49].mxu1 }
 0x360   : > { %v2432_v23 = vadd.f32 %v2431_v20, %v5491_v58  ;;  %v2433_v28 = vpop.f32.mrb[50].mxu1 }
 0x361   : > { %v3077_v10 = vmax.f32 %v2430_v16, 0.0  ;;  %v2434_v36 = vadd.f32 %v2433_v28, %v5487_v55  ;;  %v2435_v50 = vpop.f32.mrb[51].mxu1 }
 0x362   : > { %v3078_v31 = vmax.f32 %v2432_v23, 0.0  ;;  %v2436_v51 = vadd.f32 %v2435_v50, %v5491_v58 }
 0x363   : > { %v3261_v24 = vadd.f32 %v3260_v15, %v3077_v10  ;;  %v3081_v30 = vmax.f32 %v2434_v36, 0.0  ;;  %4122 = vmatmul.mubr.msk.bf16.gmra.mrb[156].mxu1 %vm2178_vm0, %v5333_v60 }
 0x364   : > { %v3330_v27 = vadd.f32 %v3329_v17, %v3078_v31  ;;  %v3082_v38 = vmax.f32 %v2436_v51, 0.0  ;;  %2740 = vmatprep.mubr.bf16.mxu1 %v4864_v1 }
 0x365   : > { %v3262_v42 = vadd.f32 %v3261_v24, %v3081_v30 }
 0x366   : > { %v3331_v53 = vadd.f32 %v3330_v27, %v3082_v38  ;;  %v2439_v54 = vpop.f32.mrb[52].mxu1 }
 0x367   : > { %v2440_v56 = vadd.f32 %v2439_v54, %v5487_v55  ;;  %v2441_v37 = vpop.f32.mrb[53].mxu1 }
 0x368   : > { %v2442_v62 = vadd.f32 %v2441_v37, %v5491_v58  ;;  %v2443_v44 = vpop.f32.mrb[54].mxu1 }
 0x369   : > { %v3085_v2 = vmax.f32 %v2440_v56, 0.0  ;;  %v2444_v4 = vadd.f32 %v2443_v44, %v5487_v55  ;;  %v2445_v21 = vpop.f32.mrb[55].mxu1 }
 0x36a   : > { %v3086_v35 = vmax.f32 %v2442_v62, 0.0  ;;  %v2446_v60 = vadd.f32 %v2445_v21, %v5491_v58 }
 0x36b   : > { %v3263_v41 = vadd.f32 %v3262_v42, %v3085_v2  ;;  %v3089_v5 = vmax.f32 %v2444_v4, 0.0  ;;  %4123 = vmatmul.mubr.msk.bf16.gmra.mrb[160].mxu1 %vm2178_vm0, %v5340_v7 }
 0x36c   : > { %v3332_v8 = vadd.f32 %v3331_v53, %v3086_v35  ;;  %v3090_v9 = vmax.f32 %v2446_v60, 0.0  ;;  %2750 = vmatprep.mubr.bf16.mxu1 %v4864_v1 }
 0x36d   : > { %v3264_v13 = vadd.f32 %v3263_v41, %v3089_v5 }
 0x36e   : > { %v3333_v15 = vadd.f32 %v3332_v8, %v3090_v9  ;;  %v2449_v17 = vpop.f32.mrb[56].mxu1 }
 0x36f   : > { %v2450_v47 = vadd.f32 %v2449_v17, %v5487_v55  ;;  %v2451_v16 = vpop.f32.mrb[57].mxu1 }
 0x370   : > { %v2452_v20 = vadd.f32 %v2451_v16, %v5491_v58  ;;  %v2453_v23 = vpop.f32.mrb[58].mxu1 }
 0x371   : > { %v3093_v28 = vmax.f32 %v2450_v47, 0.0  ;;  %v2454_v10 = vadd.f32 %v2453_v23, %v5487_v55  ;;  %v2455_v36 = vpop.f32.mrb[59].mxu1 }
 0x372   : > { %v3094_v50 = vmax.f32 %v2452_v20, 0.0  ;;  %v2456_v7 = vadd.f32 %v2455_v36, %v5491_v58 }
 0x373   : > { %v3265_v31 = vadd.f32 %v3264_v13, %v3093_v28  ;;  %v3097_v51 = vmax.f32 %v2454_v10, 0.0  ;;  %4124 = vmatmul.mubr.msk.bf16.gmra.mrb[164].mxu1 %vm2178_vm0, %v5353_v19 }
 0x374   : > { %v3334_v24 = vadd.f32 %v3333_v15, %v3094_v50  ;;  %v3098_v30 = vmax.f32 %v2456_v7, 0.0  ;;  %2760 = vmatprep.mubr.bf16.mxu1 %v4864_v1 }
 0x375   : > { %v3266_v27 = vadd.f32 %v3265_v31, %v3097_v51 }
 0x376   : > { %v3335_v38 = vadd.f32 %v3334_v24, %v3098_v30  ;;  %v2459_v42 = vpop.f32.mrb[60].mxu1 }
 0x377   : > { %v2460_v53 = vadd.f32 %v2459_v42, %v5487_v55  ;;  %v2461_v54 = vpop.f32.mrb[61].mxu1 }
 0x378   : > { %v2462_v56 = vadd.f32 %v2461_v54, %v5491_v58  ;;  %v2463_v37 = vpop.f32.mrb[62].mxu1 }
 0x379   : > { %v3101_v62 = vmax.f32 %v2460_v53, 0.0  ;;  %v2464_v44 = vadd.f32 %v2463_v37, %v5487_v55  ;;  %v2465_v2 = vpop.f32.mrb[63].mxu1 }
 0x37a   : > { %v3102_v4 = vmax.f32 %v2462_v56, 0.0  ;;  %v2466_v19 = vadd.f32 %v2465_v2, %v5491_v58 }
 0x37b   : > { %v3267_v21 = vadd.f32 %v3266_v27, %v3101_v62  ;;  %v3105_v35 = vmax.f32 %v2464_v44, 0.0  ;;  %4125 = vmatmul.mubr.msk.bf16.gmra.mrb[168].mxu1 %vm2178_vm0, %v5360_v29 }
 0x37c   : > { %v3336_v60 = vadd.f32 %v3335_v38, %v3102_v4  ;;  %v3106_v41 = vmax.f32 %v2466_v19, 0.0  ;;  %2770 = vmatprep.mubr.bf16.mxu1 %v4864_v1 }
 0x37d   : > { %v3268_v5 = vadd.f32 %v3267_v21, %v3105_v35 }
 0x37e   : > { %v3337_v8 = vadd.f32 %v3336_v60, %v3106_v41  ;;  %v2469_v9 = vpop.f32.mrb[64].mxu1 }
 0x37f   : > { %v2470_v13 = vadd.f32 %v2469_v9, %v5487_v55  ;;  %v2471_v15 = vpop.f32.mrb[65].mxu1 }
 0x380   : > { %v2472_v17 = vadd.f32 %v2471_v15, %v5491_v58  ;;  %v2473_v47 = vpop.f32.mrb[66].mxu1 }
 0x381   : > { %v3109_v16 = vmax.f32 %v2470_v13, 0.0  ;;  %v2474_v20 = vadd.f32 %v2473_v47, %v5487_v55  ;;  %v2475_v23 = vpop.f32.mrb[67].mxu1 }
 0x382   : > { %v3110_v28 = vmax.f32 %v2472_v17, 0.0  ;;  %v2476_v29 = vadd.f32 %v2475_v23, %v5491_v58 }
 0x383   : > { %v3269_v10 = vadd.f32 %v3268_v5, %v3109_v16  ;;  %v3113_v36 = vmax.f32 %v2474_v20, 0.0  ;;  %4126 = vmatmul.mubr.msk.bf16.gmra.mrb[172].mxu1 %vm2178_vm0, %v5367_v40 }
 0x384   : > { %v3338_v50 = vadd.f32 %v3337_v8, %v3110_v28  ;;  %v3114_v7 = vmax.f32 %v2476_v29, 0.0  ;;  %2780 = vmatprep.mubr.bf16.mxu1 %v4864_v1 }
 0x385   : > { %v3270_v31 = vadd.f32 %v3269_v10, %v3113_v36 }
 0x386   : > { %v3339_v51 = vadd.f32 %v3338_v50, %v3114_v7  ;;  %v2479_v24 = vpop.f32.mrb[68].mxu1 }
 0x387   : > { %v2480_v30 = vadd.f32 %v2479_v24, %v5487_v55  ;;  %v2481_v27 = vpop.f32.mrb[69].mxu1 }
 0x388   : > { %v2482_v38 = vadd.f32 %v2481_v27, %v5491_v58  ;;  %v2483_v42 = vpop.f32.mrb[70].mxu1 }
 0x389   : > { %v3117_v53 = vmax.f32 %v2480_v30, 0.0  ;;  %v2484_v54 = vadd.f32 %v2483_v42, %v5487_v55  ;;  %v2485_v56 = vpop.f32.mrb[71].mxu1 }
 0x38a   : > { %v3118_v37 = vmax.f32 %v2482_v38, 0.0  ;;  %v2486_v40 = vadd.f32 %v2485_v56, %v5491_v58 }
 0x38b   : > { %v3271_v62 = vadd.f32 %v3270_v31, %v3117_v53  ;;  %v3121_v44 = vmax.f32 %v2484_v54, 0.0  ;;  %4127 = vmatmul.mubr.msk.bf16.gmra.mrb[176].mxu1 %vm2178_vm0, %v5374_v52 }
 0x38c   : > { %v3340_v2 = vadd.f32 %v3339_v51, %v3118_v37  ;;  %v3122_v4 = vmax.f32 %v2486_v40, 0.0  ;;  %2790 = vmatprep.mubr.bf16.mxu1 %v4864_v1 }
 0x38d   : > { %v3272_v19 = vadd.f32 %v3271_v62, %v3121_v44 }
 0x38e   : > { %v3341_v21 = vadd.f32 %v3340_v2, %v3122_v4  ;;  %v2489_v35 = vpop.f32.mrb[72].mxu1 }
 0x38f   : > { %v2490_v60 = vadd.f32 %v2489_v35, %v5487_v55  ;;  %v2491_v41 = vpop.f32.mrb[73].mxu1 }
 0x390   : > { %v2492_v5 = vadd.f32 %v2491_v41, %v5491_v58  ;;  %v2493_v8 = vpop.f32.mrb[74].mxu1 }
 0x391   : > { %v3125_v9 = vmax.f32 %v2490_v60, 0.0  ;;  %v2494_v13 = vadd.f32 %v2493_v8, %v5487_v55  ;;  %v2495_v15 = vpop.f32.mrb[75].mxu1 }
 0x392   : > { %v3126_v17 = vmax.f32 %v2492_v5, 0.0  ;;  %v2496_v52 = vadd.f32 %v2495_v15, %v5491_v58 }
 0x393   : > { %v3273_v47 = vadd.f32 %v3272_v19, %v3125_v9  ;;  %v3129_v16 = vmax.f32 %v2494_v13, 0.0  ;;  %4128 = vmatmul.mubr.msk.bf16.gmra.mrb[180].mxu1 %vm2178_vm0, %v5381_v63 }
 0x394   : > { %v3342_v20 = vadd.f32 %v3341_v21, %v3126_v17  ;;  %v3130_v23 = vmax.f32 %v2496_v52, 0.0  ;;  %2800 = vmatprep.mubr.bf16.mxu1 %v4864_v1  ;;  %v3571_v52 = vld [vmem:[%s6184_s5 + $0x80] sm:$0xff] }
 0x395   : > { %v3274_v28 = vadd.f32 %v3273_v47, %v3129_v16  ;;  %v3572_v47 = vld [vmem:[%s6184_s5 + $0x88] sm:$0xff]  ;;  %v3555_v16 = vld [vmem:[%s6184_s5] sm:$0xff] }
 0x396   : > { %v3343_v29 = vadd.f32 %v3342_v20, %v3130_v23  ;;  %v2499_v10 = vpop.f32.mrb[76].mxu1  ;;  %v4221_v23 = vpack.c.bf16 %v3572_v47, %v3571_v52 }
 0x397   : > { %v2500_v36 = vadd.f32 %v2499_v10, %v5487_v55  ;;  %v2501_v50 = vpop.f32.mrb[77].mxu1 }
 0x398   : > { %v2502_v7 = vadd.f32 %v2501_v50, %v5491_v58  ;;  %v2503_v31 = vpop.f32.mrb[78].mxu1  ;;  %4222 = vmatprep.subr.bf16.mxu1 %v4221_v23 }
 0x399   : > { %v3133_v51 = vmax.f32 %v2500_v36, 0.0  ;;  %v2504_v24 = vadd.f32 %v2503_v31, %v5487_v55  ;;  %v2505_v30 = vpop.f32.mrb[79].mxu1 }
 0x39a   : > { %v3134_v27 = vmax.f32 %v2502_v7, 0.0  ;;  %v2506_v63 = vadd.f32 %v2505_v30, %v5491_v58 }
 0x39b   : > { %v3275_v38 = vadd.f32 %v3274_v28, %v3133_v51  ;;  %v3137_v42 = vmax.f32 %v2504_v24, 0.0  ;;  %4129 = vmatmul.mubr.msk.bf16.gmra.mrb[184].mxu1 %vm2178_vm0, %v5388_v11  ;;  %v3556_v28 = vld [vmem:[%s6184_s5 + $0x8] sm:$0xff] }
 0x39c   : > { %v3344_v53 = vadd.f32 %v3343_v29, %v3134_v27  ;;  %v3138_v54 = vmax.f32 %v2506_v63, 0.0  ;;  %2810 = vmatprep.mubr.bf16.mxu1 %v4864_v1  ;;  %v4223_v36 = vpack.c.bf16 %v3556_v28, %v3555_v16 }
 0x39d   : > { %v3276_v56 = vadd.f32 %v3275_v38, %v3137_v42 }
 0x39e   : > { %v3345_v37 = vadd.f32 %v3344_v53, %v3138_v54  ;;  %v2509_v40 = vpop.f32.mrb[80].mxu1  ;;  %4224 = vmatpush3.bf16.msra.mxu1 %v4223_v36 }
 0x39f   : > { %v2510_v62 = vadd.f32 %v2509_v40, %v5487_v55  ;;  %v2511_v44 = vpop.f32.mrb[81].mxu1 }
 0x3a0   : > { %v2512_v2 = vadd.f32 %v2511_v44, %v5491_v58  ;;  %v2513_v4 = vpop.f32.mrb[82].mxu1 }
 0x3a1   : > { %v3141_v19 = vmax.f32 %v2510_v62, 0.0  ;;  %v2514_v21 = vadd.f32 %v2513_v4, %v5487_v55  ;;  %v2515_v35 = vpop.f32.mrb[83].mxu1 }
 0x3a2   : > { %v3142_v60 = vmax.f32 %v2512_v2, 0.0  ;;  %v2516_v11 = vadd.f32 %v2515_v35, %v5491_v58 }
 0x3a3   : > { %v3277_v41 = vadd.f32 %v3276_v56, %v3141_v19  ;;  %v3145_v5 = vmax.f32 %v2514_v21, 0.0  ;;  %4130 = vmatmul.mubr.msk.bf16.gmra.mrb[188].mxu1 %vm2178_vm0, %v5395_v22 }
 0x3a4   : > { %v3346_v8 = vadd.f32 %v3345_v37, %v3142_v60  ;;  %v3146_v9 = vmax.f32 %v2516_v11, 0.0  ;;  %2820 = vmatprep.mubr.bf16.mxu1 %v4864_v1 }
 0x3a5   : > { %v3278_v13 = vadd.f32 %v3277_v41, %v3145_v5 }
 0x3a6   : > { %v3347_v15 = vadd.f32 %v3346_v8, %v3146_v9  ;;  %v2519_v17 = vpop.f32.mrb[84].mxu1 }
 0x3a7   : > { %v2520_v22 = vadd.f32 %v2519_v17, %v5487_v55  ;;  %v2521_v20 = vpop.f32.mrb[85].mxu1 }
 0x3a8   : > { %v2522_v29 = vadd.f32 %v2521_v20, %v5491_v58  ;;  %v2523_v10 = vpop.f32.mrb[86].mxu1 }
 0x3a9   : > { %v3149_v50 = vmax.f32 %v2520_v22, 0.0  ;;  %v2524_v7 = vadd.f32 %v2523_v10, %v5487_v55  ;;  %v2525_v31 = vpop.f32.mrb[87].mxu1 }
 0x3aa   : > { %v3150_v51 = vmax.f32 %v2522_v29, 0.0  ;;  %v2526_v24 = vadd.f32 %v2525_v31, %v5491_v58 }
 0x3ab   : > { %v3279_v30 = vadd.f32 %v3278_v13, %v3149_v50  ;;  %v3153_v27 = vmax.f32 %v2524_v7, 0.0  ;;  %4131 = vmatmul.mubr.msk.bf16.gmra.mrb[192].mxu1 %vm2178_vm0, %v5402_v33 }
 0x3ac   : > { %v3348_v63 = vadd.f32 %v3347_v15, %v3150_v51  ;;  %v3154_v38 = vmax.f32 %v2526_v24, 0.0  ;;  %2830 = vmatprep.mubr.bf16.mxu1 %v4864_v1 }
 0x3ad   : > { %v3280_v42 = vadd.f32 %v3279_v30, %v3153_v27 }
 0x3ae   : > { %v3349_v53 = vadd.f32 %v3348_v63, %v3154_v38  ;;  %v2529_v54 = vpop.f32.mrb[88].mxu1 }
 0x3af   : > { %v2530_v56 = vadd.f32 %v2529_v54, %v5487_v55  ;;  %v2531_v37 = vpop.f32.mrb[89].mxu1 }
 0x3b0   : > { %v2532_v40 = vadd.f32 %v2531_v37, %v5491_v58  ;;  %v2533_v62 = vpop.f32.mrb[90].mxu1 }
 0x3b1   : > { %v3157_v44 = vmax.f32 %v2530_v56, 0.0  ;;  %v2534_v2 = vadd.f32 %v2533_v62, %v5487_v55  ;;  %v2535_v4 = vpop.f32.mrb[91].mxu1 }
 0x3b2   : > { %v3158_v19 = vmax.f32 %v2532_v40, 0.0  ;;  %v2536_v33 = vadd.f32 %v2535_v4, %v5491_v58  ;;  %v3557_v4 = vld [vmem:[%s6184_s5 + $0x10] sm:$0xff] }
 0x3b3   : > { %v3281_v21 = vadd.f32 %v3280_v42, %v3157_v44  ;;  %v3161_v35 = vmax.f32 %v2534_v2, 0.0  ;;  %4132 = vmatmul.mubr.msk.bf16.gmra.mrb[196].mxu1 %vm2178_vm0, %v5409_v45  ;;  %v3573_v44 = vld [vmem:[%s6184_s5 + $0x90] sm:$0xff]  ;;  %v3574_v2 = vld [vmem:[%s6184_s5 + $0x98] sm:$0xff] }
 0x3b4   : > { %v3350_v60 = vadd.f32 %v3349_v53, %v3158_v19  ;;  %v3162_v11 = vmax.f32 %v2536_v33, 0.0  ;;  %2840 = vmatprep.mubr.bf16.mxu1 %v4864_v1  ;;  %v4225_v33 = vpack.c.bf16 %v3574_v2, %v3573_v44 }
 0x3b5   : > { %v3282_v41 = vadd.f32 %v3281_v21, %v3161_v35  ;;  %v3558_v21 = vld [vmem:[%s6184_s5 + $0x18] sm:$0xff] }
 0x3b6   : > { %v3351_v5 = vadd.f32 %v3350_v60, %v3162_v11  ;;  %v2539_v8 = vpop.f32.mrb[92].mxu1  ;;  %v4227_v11 = vpack.c.bf16 %v3558_v21, %v3557_v4  ;;  %4226 = vmatprep.subr.bf16.mxu1 %v4225_v33 }
 0x3b7   : > { %v2540_v9 = vadd.f32 %v2539_v8, %v5487_v55  ;;  %v2541_v13 = vpop.f32.mrb[93].mxu1 }
 0x3b8   : > { %v2542_v15 = vadd.f32 %v2541_v13, %v5491_v58  ;;  %v2543_v17 = vpop.f32.mrb[94].mxu1  ;;  %4228 = vmatpush3.bf16.msra.mxu1 %v4227_v11 }
 0x3b9   : > { %v3165_v52 = vmax.f32 %v2540_v9, 0.0  ;;  %v2544_v47 = vadd.f32 %v2543_v17, %v5487_v55  ;;  %v2545_v16 = vpop.f32.mrb[95].mxu1 }
 0x3ba   : > { %v3166_v22 = vmax.f32 %v2542_v15, 0.0  ;;  %v2546_v45 = vadd.f32 %v2545_v16, %v5491_v58 }
 0x3bb   : > { %v3283_v20 = vadd.f32 %v3282_v41, %v3165_v52  ;;  %v3169_v23 = vmax.f32 %v2544_v47, 0.0  ;;  %4133 = vmatmul.mubr.msk.bf16.gmra.mrb[200].mxu1 %vm2178_vm0, %v5416_v57 }
 0x3bc   : > { %v3352_v28 = vadd.f32 %v3351_v5, %v3166_v22  ;;  %v3170_v29 = vmax.f32 %v2546_v45, 0.0  ;;  %2850 = vmatprep.mubr.bf16.mxu1 %v4864_v1 }
 0x3bd   : > { %v3284_v10 = vadd.f32 %v3283_v20, %v3169_v23 }
 0x3be   : > { %v3353_v36 = vadd.f32 %v3352_v28, %v3170_v29  ;;  %v2549_v50 = vpop.f32.mrb[96].mxu1 }
 0x3bf   : > { %v2550_v7 = vadd.f32 %v2549_v50, %v5487_v55  ;;  %v2551_v31 = vpop.f32.mrb[97].mxu1 }
 0x3c0   : > { %v2552_v51 = vadd.f32 %v2551_v31, %v5491_v58  ;;  %v2553_v24 = vpop.f32.mrb[98].mxu1 }
 0x3c1   : > { %v3173_v30 = vmax.f32 %v2550_v7, 0.0  ;;  %v2554_v27 = vadd.f32 %v2553_v24, %v5487_v55  ;;  %v2555_v63 = vpop.f32.mrb[99].mxu1 }
 0x3c2   : > { %v3174_v38 = vmax.f32 %v2552_v51, 0.0  ;;  %v2556_v57 = vadd.f32 %v2555_v63, %v5491_v58 }
 0x3c3   : > { %v3285_v42 = vadd.f32 %v3284_v10, %v3173_v30  ;;  %v3177_v53 = vmax.f32 %v2554_v27, 0.0  ;;  %4134 = vmatmul.mubr.msk.bf16.gmra.mrb[204].mxu1 %vm2178_vm0, %v5423_v6 }
 0x3c4   : > { %v3354_v54 = vadd.f32 %v3353_v36, %v3174_v38  ;;  %v3178_v56 = vmax.f32 %v2556_v57, 0.0  ;;  %2860 = vmatprep.mubr.bf16.mxu1 %v4864_v1 }
 0x3c5   : > { %v3286_v37 = vadd.f32 %v3285_v42, %v3177_v53 }
 0x3c6   : > { %v3355_v40 = vadd.f32 %v3354_v54, %v3178_v56  ;;  %v2559_v62 = vpop.f32.mrb[100].mxu1 }
 0x3c7   : > { %v2560_v6 = vadd.f32 %v2559_v62, %v5487_v55  ;;  %v2561_v19 = vpop.f32.mrb[101].mxu1 }
 0x3c8   : > { %v2562_v35 = vadd.f32 %v2561_v19, %v5491_v58  ;;  %v2563_v60 = vpop.f32.mrb[102].mxu1 }
 0x3c9   : > { %v3181_v41 = vmax.f32 %v2560_v6, 0.0  ;;  %v2564_v5 = vadd.f32 %v2563_v60, %v5487_v55  ;;  %v2565_v8 = vpop.f32.mrb[103].mxu1 }
 0x3ca   : > { %v3182_v9 = vmax.f32 %v2562_v35, 0.0  ;;  %v2566_v13 = vadd.f32 %v2565_v8, %v5491_v58 }
 0x3cb   : > { %v3287_v15 = vadd.f32 %v3286_v37, %v3181_v41  ;;  %v3185_v17 = vmax.f32 %v2564_v5, 0.0  ;;  %4135 = vmatmul.mubr.msk.bf16.gmra.mrb[208].mxu1 %vm2178_vm0, %v5430_v18 }
 0x3cc   : > { %v3356_v52 = vadd.f32 %v3355_v40, %v3182_v9  ;;  %v3186_v47 = vmax.f32 %v2566_v13, 0.0  ;;  %2870 = vmatprep.mubr.bf16.mxu1 %v4864_v1 }
 0x3cd   : > { %v3288_v16 = vadd.f32 %v3287_v15, %v3185_v17 }
 0x3ce   : > { %v3357_v22 = vadd.f32 %v3356_v52, %v3186_v47  ;;  %v2569_v45 = vpop.f32.mrb[104].mxu1 }
 0x3cf   : > { %v2570_v20 = vadd.f32 %v2569_v45, %v5487_v55  ;;  %v2571_v23 = vpop.f32.mrb[105].mxu1 }
 0x3d0   : > { %v2572_v28 = vadd.f32 %v2571_v23, %v5491_v58  ;;  %v2573_v29 = vpop.f32.mrb[106].mxu1  ;;  %v3576_v23 = vld [vmem:[%s6184_s5 + $0xa8] sm:$0xff] }
 0x3d1   : > { %v3189_v10 = vmax.f32 %v2570_v20, 0.0  ;;  %v2574_v36 = vadd.f32 %v2573_v29, %v5487_v55  ;;  %v2575_v50 = vpop.f32.mrb[107].mxu1  ;;  %v3575_v20 = vld [vmem:[%s6184_s5 + $0xa0] sm:$0xff] }
 0x3d2   : > { %v3190_v7 = vmax.f32 %v2572_v28, 0.0  ;;  %v2576_v18 = vadd.f32 %v2575_v50, %v5491_v58  ;;  %v3559_v28 = vld [vmem:[%s6184_s5 + $0x20] sm:$0xff] }
 0x3d3   : > { %v3289_v31 = vadd.f32 %v3288_v16, %v3189_v10  ;;  %v3193_v51 = vmax.f32 %v2574_v36, 0.0  ;;  %4136 = vmatmul.mubr.msk.bf16.gmra.mrb[212].mxu1 %vm2178_vm0, %v5437_v32  ;;  %v4229_v10 = vpack.c.bf16 %v3576_v23, %v3575_v20  ;;  %v3560_v36 = vld [vmem:[%s6184_s5 + $0x28] sm:$0xff]  ;;  %v4783_v20 = vld [vmem:[%s6183_s4] sm:$0xf] }
 0x3d4   : > { %v3358_v24 = vadd.f32 %v3357_v22, %v3190_v7  ;;  %v3194_v30 = vmax.f32 %v2576_v18, 0.0  ;;  %2880 = vmatprep.mubr.bf16.mxu1 %v4864_v1  ;;  %v4231_v18 = vpack.c.bf16 %v3560_v36, %v3559_v28 }
 0x3d5   : > { %v3290_v27 = vadd.f32 %v3289_v31, %v3193_v51  ;;  %4230 = vmatprep.subr.bf16.mxu1 %v4229_v10 }
 0x3d6   : > { %v3359_v63 = vadd.f32 %v3358_v24, %v3194_v30  ;;  %v2579_v38 = vpop.f32.mrb[108].mxu1  ;;  %4232 = vmatpush3.bf16.msra.mxu1 %v4231_v18 }
 0x3d7   : > { %v2580_v57 = vadd.f32 %v2579_v38, %v5487_v55  ;;  %v2581_v42 = vpop.f32.mrb[109].mxu1 }
 0x3d8   : > { %v2582_v53 = vadd.f32 %v2581_v42, %v5491_v58  ;;  %v2583_v54 = vpop.f32.mrb[110].mxu1 }
 0x3d9   : > { %v3197_v56 = vmax.f32 %v2580_v57, 0.0  ;;  %v2584_v37 = vadd.f32 %v2583_v54, %v5487_v55  ;;  %v2585_v40 = vpop.f32.mrb[111].mxu1 }
 0x3da   : > { %v3198_v62 = vmax.f32 %v2582_v53, 0.0  ;;  %v2586_v32 = vadd.f32 %v2585_v40, %v5491_v58 }
 0x3db   : > { %v3291_v44 = vadd.f32 %v3290_v27, %v3197_v56  ;;  %v3201_v2 = vmax.f32 %v2584_v37, 0.0  ;;  %4137 = vmatmul.mubr.msk.bf16.gmra.mrb[216].mxu1 %vm2178_vm0, %v5444_v46 }
 0x3dc   : > { %v3360_v4 = vadd.f32 %v3359_v63, %v3198_v62  ;;  %v3202_v6 = vmax.f32 %v2586_v32, 0.0  ;;  %2890 = vmatprep.mubr.bf16.mxu1 %v4864_v1 }
 0x3dd   : > { %v3292_v19 = vadd.f32 %v3291_v44, %v3201_v2 }
 0x3de   : > { %v3361_v33 = vadd.f32 %v3360_v4, %v3202_v6  ;;  %v2589_v21 = vpop.f32.mrb[112].mxu1 }
 0x3df   : > { %v2590_v35 = vadd.f32 %v2589_v21, %v5487_v55  ;;  %v2591_v60 = vpop.f32.mrb[113].mxu1 }
 0x3e0   : > { %v2592_v11 = vadd.f32 %v2591_v60, %v5491_v58  ;;  %v2593_v41 = vpop.f32.mrb[114].mxu1 }
 0x3e1   : > { %v3205_v5 = vmax.f32 %v2590_v35, 0.0  ;;  %v2594_v8 = vadd.f32 %v2593_v41, %v5487_v55  ;;  %v2595_v9 = vpop.f32.mrb[115].mxu1 }
 0x3e2   : > { %v3206_v13 = vmax.f32 %v2592_v11, 0.0  ;;  %v2596_v46 = vadd.f32 %v2595_v9, %v5491_v58  ;;  %v2088_v9 = vsub.s32 2, %v5471_v34 }
 0x3e3   : > { %v3293_v15 = vadd.f32 %v3292_v19, %v3205_v5  ;;  %v3209_v17 = vmax.f32 %v2594_v8, 0.0  ;;  %4138 = vmatmul.mubr.msk.bf16.gmra.mrb[220].mxu1 %vm2178_vm0, %v5451_v59 }
 0x3e4   : > { %v3362_v52 = vadd.f32 %v3361_v33, %v3206_v13  ;;  %v3210_v47 = vmax.f32 %v2596_v46, 0.0  ;;  %2900 = vmatprep.mubr.bf16.mxu1 %v4864_v1  ;;  %v5777_v23 = vrot.slane %v4783_v20, %v2088_v9 }
 0x3e5   : > { %v3294_v16 = vadd.f32 %v3293_v15, %v3209_v17  ;;  %v2092_v15 = vsub.s32 3, %v5471_v34 }
 0x3e6   : > { %v3363_v22 = vadd.f32 %v3362_v52, %v3210_v47  ;;  %v2599_v45 = vpop.f32.mrb[116].mxu1 }
 0x3e7   : > { %v2600_v59 = vadd.f32 %v2599_v45, %v5487_v55  ;;  %v2601_v29 = vpop.f32.mrb[117].mxu1 }
 0x3e8   : > { %v2602_v50 = vadd.f32 %v2601_v29, %v5491_v58  ;;  %v2603_v7 = vpop.f32.mrb[118].mxu1 }
 0x3e9   : > { %v3213_v31 = vmax.f32 %v2600_v59, 0.0  ;;  %v2604_v51 = vadd.f32 %v2603_v7, %v5487_v55  ;;  %v2605_v24 = vpop.f32.mrb[119].mxu1 }
 0x3ea   : > { %v3214_v30 = vmax.f32 %v2602_v50, 0.0  ;;  %v2606_v27 = vadd.f32 %v2605_v24, %v5491_v58 }
 0x3eb   : > { %v3295_v63 = vadd.f32 %v3294_v16, %v3213_v31  ;;  %v3217_v38 = vmax.f32 %v2604_v51, 0.0  ;;  %4139 = vmatmul.mubr.msk.bf16.gmra.mrb[224].mxu1 %vm2178_vm0, %v5458_v12 }
 0x3ec   : > { %v3364_v57 = vadd.f32 %v3363_v22, %v3214_v30  ;;  %v3218_v42 = vmax.f32 %v2606_v27, 0.0  ;;  %2910 = vmatprep.mubr.bf16.mxu1 %v4864_v1 }
 0x3ed   : > { %v3296_v53 = vadd.f32 %v3295_v63, %v3217_v38 }
 0x3ee   : > { %v3365_v54 = vadd.f32 %v3364_v57, %v3218_v42  ;;  %v2609_v56 = vpop.f32.mrb[120].mxu1 }
 0x3ef   : > { %v2610_v37 = vadd.f32 %v2609_v56, %v5487_v55  ;;  %v2611_v40 = vpop.f32.mrb[121].mxu1 }
 0x3f0   : > { %v2612_v62 = vadd.f32 %v2611_v40, %v5491_v58  ;;  %v2613_v32 = vpop.f32.mrb[122].mxu1 }
 0x3f1   : > { %v3221_v44 = vmax.f32 %v2610_v37, 0.0  ;;  %v2614_v2 = vadd.f32 %v2613_v32, %v5487_v55  ;;  %v2615_v4 = vpop.f32.mrb[123].mxu1 }
 0x3f2   : > { %v3222_v6 = vmax.f32 %v2612_v62, 0.0  ;;  %v2616_v12 = vadd.f32 %v2615_v4, %v5491_v58  ;;  %v3578_v4 = vld [vmem:[%s6184_s5 + $0xb8] sm:$0xff] }
 0x3f3   : > { %v3297_v19 = vadd.f32 %v3296_v53, %v3221_v44  ;;  %v3225_v33 = vmax.f32 %v2614_v2, 0.0  ;;  %4140 = vmatmul.mubr.msk.bf16.gmra.mrb[228].mxu1 %vm2178_vm0, %v5465_v26  ;;  %v3577_v2 = vld [vmem:[%s6184_s5 + $0xb0] sm:$0xff] }
 0x3f4   : > { %v3366_v21 = vadd.f32 %v3365_v54, %v3222_v6  ;;  %v3226_v35 = vmax.f32 %v2616_v12, 0.0  ;;  %2920 = vmatprep.mubr.bf16.mxu1 %v4864_v1 }
 0x3f5   : > { %v3298_v60 = vadd.f32 %v3297_v19, %v3225_v33  ;;  %v4233_v33 = vpack.c.bf16 %v3578_v4, %v3577_v2 }
 0x3f6   : > { %v3367_v11 = vadd.f32 %v3366_v21, %v3226_v35  ;;  %v2619_v41 = vpop.f32.mrb[124].mxu1  ;;  %v3562_v21 = vld [vmem:[%s6184_s5 + $0x38] sm:$0xff] }
 0x3f7   : > { %v2620_v5 = vadd.f32 %v2619_v41, %v5487_v55  ;;  %v2621_v8 = vpop.f32.mrb[125].mxu1  ;;  %4234 = vmatprep.subr.bf16.mxu1 %v4233_v33 }
 0x3f8   : > { %v2622_v13 = vadd.f32 %v2621_v8, %v5491_v58  ;;  %v2623_v46 = vpop.f32.mrb[126].mxu1 }
 0x3f9   : > { %v3229_v17 = vmax.f32 %v2620_v5, 0.0  ;;  %v2624_v26 = vadd.f32 %v2623_v46, %v5487_v55  ;;  %v2625_v52 = vpop.f32.mrb[127].mxu1  ;;  %v5783_v55 = vrot.slane %v4783_v20, %v2092_v15 }
 0x3fa   : > { %v3230_v47 = vmax.f32 %v2622_v13, 0.0  ;;  %v2626_v16 = vadd.f32 %v2625_v52, %v5491_v58 }
 0x3fb   : > { %v3299_v22 = vadd.f32 %v3298_v60, %v3229_v17  ;;  %v3233_v45 = vmax.f32 %v2624_v26, 0.0  ;;  %4141 = vmatmul.mubr.msk.bf16.gmra.mrb[232].mxu1 %vm2178_vm0, %v5480_v49 }
 0x3fc   : > { %v3368_v28 = vadd.f32 %v3367_v11, %v3230_v47  ;;  %v3234_v59 = vmax.f32 %v2626_v16, 0.0  ;;  %2930 = vmatprep.mubr.bf16.mxu1 %v4864_v1 }
 0x3fd   : > { %v3300_v58 = vadd.f32 %v3299_v22, %v3233_v45 }
 0x3fe   : > { %v3369_v29 = vadd.f32 %v3368_v28, %v3234_v59  ;;  %v2662_v10 = vpop.f32.mrb[128].mxu1 }
 0x3ff   : > { %v3301_v36 = vrot.slane %v3300_v58, 4  ;;  %v2663_v50 = vadd.f32 %v2662_v10, %v5777_v23  ;;  %v2664_v7 = vpop.f32.mrb[129].mxu1 }
 0x400   : > { %v3370_v18 = vrot.slane %v3369_v29, 4  ;;  %v2665_v31 = vadd.f32 %v2664_v7, %v5783_v55  ;;  %v2666_v51 = vpop.f32.mrb[130].mxu1 }
 0x401   : > { %v3302_v49 = vadd.f32 %v3301_v36, %v3300_v58  ;;  %v2667_v24 = vadd.f32 %v2666_v51, %v5777_v23  ;;  %v2668_v30 = vpop.f32.mrb[131].mxu1  ;;  %v2983_v57 = vmax.f32 %v2663_v50, 0.0 }
 0x402   : > { %v3371_v27 = vadd.f32 %v3370_v18, %v3369_v29  ;;  %v2669_v63 = vadd.f32 %v2668_v30, %v5783_v55  ;;  %v2984_v54 = vmax.f32 %v2665_v31, 0.0 }
 0x403   : > { %v3303_v38 = vrot.slane %v3302_v49, 2  ;;  %v2987_v42 = vmax.f32 %v2667_v24, 0.0  ;;  %4142 = vmatmul.mubr.msk.bf16.gmra.mrb[236].mxu1 %vm2178_vm0, %v5497_v14  ;;  %v3561_v14 = vld [vmem:[%s6184_s5 + $0x30] sm:$0xff] }
 0x404   : > { %v3372_v53 = vrot.slane %v3371_v27, 2  ;;  %v2988_v56 = vmax.f32 %v2669_v63, 0.0  ;;  %2940 = vmatprep.mubr.bf16.mxu1 %v4864_v1  ;;  %v4235_v41 = vpack.c.bf16 %v3562_v21, %v3561_v14 }
 0x405   : > { %v3304_v37 = vadd.f32 %v3303_v38, %v3302_v49  ;;  %v3376_v40 = vadd.f32 %v2987_v42, %v2983_v57 }
 0x406   : > { %v3373_v62 = vadd.f32 %v3372_v53, %v3371_v27  ;;  %v3445_v32 = vadd.f32 %v2988_v56, %v2984_v54  ;;  %v2672_v44 = vpop.f32.mrb[132].mxu1  ;;  %4236 = vmatpush3.bf16.msra.mxu1 %v4235_v41 }
 0x407   : > { %v3305_v6 = vrot.slane %v3304_v37, 1  ;;  %v2673_v12 = vadd.f32 %v2672_v44, %v5777_v23  ;;  %v2674_v19 = vpop.f32.mrb[133].mxu1 }
 0x408   : > { %v3374_v35 = vrot.slane %v3373_v62, 1  ;;  %v2675_v60 = vadd.f32 %v2674_v19, %v5783_v55  ;;  %v2676_v11 = vpop.f32.mrb[134].mxu1 }
 0x409   : > { %v5807_v5 = vadd.f32 %v3305_v6, %v3304_v37  ;;  %v2991_v8 = vmax.f32 %v2673_v12, 0.0  ;;  %v2677_v13 = vadd.f32 %v2676_v11, %v5777_v23  ;;  %v2678_v46 = vpop.f32.mrb[135].mxu1 }
 0x40a   : > { %v5810_v17 = vadd.f32 %v3374_v35, %v3373_v62  ;;  %v2992_v26 = vmax.f32 %v2675_v60, 0.0  ;;  %v2679_v52 = vadd.f32 %v2678_v46, %v5783_v55 }
 0x40b   : > { %v3377_v47 = vadd.f32 %v3376_v40, %v2991_v8  ;;  %v2995_v16 = vmax.f32 %v2677_v13, 0.0  ;;  %4143 = vmatmul.mubr.msk.bf16.gmra.mrb[240].mxu1 %vm2178_vm0, %v5508_v3 }
 0x40c   : > { %v3518_v22 = vcombine.low %v5807_v5, %v5810_v17  ;;  %v3446_v45 = vadd.f32 %v3445_v32, %v2992_v26  ;;  %v2996_v20 = vmax.f32 %v2679_v52, 0.0  ;;  %2950 = vmatprep.mubr.bf16.mxu1 %v4864_v1  ;;  %v3588_v5 = vld [vmem:[%s6184_s5 + $0x108] sm:$0xff] }
 0x40d   : > { %v3378_v28 = vadd.f32 %v3377_v47, %v2995_v16 }
 0x40e   : > { %v3447_v59 = vadd.f32 %v3446_v45, %v2996_v20  ;;  %v2682_v58 = vpop.f32.mrb[136].mxu1  ;;  %v3579_v20 = vld [vmem:[%s6184_s5 + $0xc0] sm:$0xff] }
 0x40f   : > { %v2683_v29 = vadd.f32 %v2682_v58, %v5777_v23  ;;  %v2684_v10 = vpop.f32.mrb[137].mxu1 }
 0x410   : > { %v2685_v36 = vadd.f32 %v2684_v10, %v5783_v55  ;;  %v2686_v50 = vpop.f32.mrb[138].mxu1  ;;  %v3564_v10 = vld [vmem:[%s6184_s5 + $0x48] sm:$0xff] }
 0x411   : > { %v2999_v7 = vmax.f32 %v2683_v29, 0.0  ;;  %v2687_v18 = vadd.f32 %v2686_v50, %v5777_v23  ;;  %v2688_v3 = vpop.f32.mrb[139].mxu1 }
 0x412   : > { %v3000_v31 = vmax.f32 %v2685_v36, 0.0  ;;  %v2689_v51 = vadd.f32 %v2688_v3, %v5783_v55 }
 0x413   : > { %v3379_v49 = vadd.f32 %v3378_v28, %v2999_v7  ;;  %v3003_v24 = vmax.f32 %v2687_v18, 0.0  ;;  %4144 = vmatmul.mubr.msk.bf16.gmra.mrb[244].mxu1 %vm2178_vm0, %v5519_v0  ;;  %v3580_v28 = vld [vmem:[%s6184_s5 + $0xc8] sm:$0xff] }
 0x414   : > { %v3448_v30 = vadd.f32 %v3447_v59, %v3000_v31  ;;  %v3004_v27 = vmax.f32 %v2689_v51, 0.0  ;;  %2960 = vmatprep.mubr.bf16.mxu1 %v4864_v1  ;;  %v3563_v59 = vld [vmem:[%s6184_s5 + $0x40] sm:$0xff]  ;;  %v4237_v29 = vpack.c.bf16 %v3580_v28, %v3579_v20 }
 0x415   : > { %v3380_v63 = vadd.f32 %v3379_v49, %v3003_v24  ;;  %v4239_v7 = vpack.c.bf16 %v3564_v10, %v3563_v59 }
 0x416   : > { %v3449_v38 = vadd.f32 %v3448_v30, %v3004_v27  ;;  %v2692_v57 = vpop.f32.mrb[140].mxu1  ;;  %4238 = vmatprep.subr.bf16.mxu1 %v4237_v29 }
 0x417   : > { %v2693_v42 = vadd.f32 %v2692_v57, %v5777_v23  ;;  %v2694_v53 = vpop.f32.mrb[141].mxu1  ;;  %4240 = vmatpush3.bf16.msra.mxu1 %v4239_v7 }
 0x418   : > { %v2695_v54 = vadd.f32 %v2694_v53, %v5783_v55  ;;  %v2696_v56 = vpop.f32.mrb[142].mxu1 }
 0x419   : > { %v3007_v37 = vmax.f32 %v2693_v42, 0.0  ;;  %v2697_v40 = vadd.f32 %v2696_v56, %v5777_v23  ;;  %v2698_v62 = vpop.f32.mrb[143].mxu1 }
 0x41a   : > { %v3008_v32 = vmax.f32 %v2695_v54, 0.0  ;;  %v2699_v0 = vadd.f32 %v2698_v62, %v5783_v55 }
 0x41b   : > { %v3381_v44 = vadd.f32 %v3380_v63, %v3007_v37  ;;  %v3011_v2 = vmax.f32 %v2697_v40, 0.0  ;;  %4145 = vmatmul.mubr.msk.bf16.gmra.mrb[248].mxu1 %vm2178_vm0, %v5530_v61 }
 0x41c   : > { %v3450_v4 = vadd.f32 %v3449_v38, %v3008_v32  ;;  %v3012_v14 = vmax.f32 %v2699_v0, 0.0  ;;  %2970 = vmatprep.mubr.bf16.mxu1 %v4864_v1 }
 0x41d   : > { %v3382_v6 = vadd.f32 %v3381_v44, %v3011_v2 }
 0x41e   : > { %v3451_v12 = vadd.f32 %v3450_v4, %v3012_v14  ;;  %v2702_v19 = vpop.f32.mrb[144].mxu1 }
 0x41f   : > { %v2703_v33 = vadd.f32 %v2702_v19, %v5777_v23  ;;  %v2704_v21 = vpop.f32.mrb[145].mxu1 }
 0x420   : > { %v2705_v35 = vadd.f32 %v2704_v21, %v5783_v55  ;;  %v2706_v60 = vpop.f32.mrb[146].mxu1 }
 0x421   : > { %v3015_v11 = vmax.f32 %v2703_v33, 0.0  ;;  %v2707_v41 = vadd.f32 %v2706_v60, %v5777_v23  ;;  %v2708_v8 = vpop.f32.mrb[147].mxu1 }
 0x422   : > { %v3016_v13 = vmax.f32 %v2705_v35, 0.0  ;;  %v2709_v61 = vadd.f32 %v2708_v8, %v5783_v55 }
 0x423   : > { %v3383_v46 = vadd.f32 %v3382_v6, %v3015_v11  ;;  %v3019_v26 = vmax.f32 %v2707_v41, 0.0  ;;  %4146 = vmatmul.mubr.msk.bf16.gmra.mrb[252].mxu1 %vm2178_vm0, %v5541_v39 }
 0x424   : > { %v3452_v1 = vadd.f32 %v3451_v12, %v3016_v13  ;;  %v3020_v52 = vmax.f32 %v2709_v61, 0.0 }
 0x425   : > { %v3384_v47 = vadd.f32 %v3383_v46, %v3019_v26 }
 0x426   : > { %v3453_v16 = vadd.f32 %v3452_v1, %v3020_v52  ;;  %v2712_v45 = vpop.f32.mrb[148].mxu1 }
 0x427   : > { %v2713_v58 = vadd.f32 %v2712_v45, %v5777_v23  ;;  %v2714_v39 = vpop.f32.mrb[149].mxu1 }
 0x428   : > { %v2715_v36 = vadd.f32 %v2714_v39, %v5783_v55  ;;  %v2716_v50 = vpop.f32.mrb[150].mxu1 }
 0x429   : > { %v3023_v18 = vmax.f32 %v2713_v58, 0.0  ;;  %v2717_v3 = vadd.f32 %v2716_v50, %v5777_v23  ;;  %v2718_v31 = vpop.f32.mrb[151].mxu1 }
 0x42a   : > { %v3024_v51 = vmax.f32 %v2715_v36, 0.0  ;;  %v2719_v49 = vadd.f32 %v2718_v31, %v5783_v55 }
 0x42b   : > { %v3385_v24 = vadd.f32 %v3384_v47, %v3023_v18  ;;  %v3027_v30 = vmax.f32 %v2717_v3, 0.0 }
 0x42c   : > { %v3454_v27 = vadd.f32 %v3453_v16, %v3024_v51  ;;  %v3028_v63 = vmax.f32 %v2719_v49, 0.0 }
 0x42d   : > { %v3386_v38 = vadd.f32 %v3385_v24, %v3027_v30 }
 0x42e   : > { %v3455_v57 = vadd.f32 %v3454_v27, %v3028_v63  ;;  %v2722_v42 = vpop.f32.mrb[152].mxu1  ;;  %v3581_v27 = vld [vmem:[%s6184_s5 + $0xd0] sm:$0xff]  ;;  %v3582_v63 = vld [vmem:[%s6184_s5 + $0xd8] sm:$0xff] }
 0x42f   : > { %v2723_v53 = vadd.f32 %v2722_v42, %v5777_v23  ;;  %v2724_v54 = vpop.f32.mrb[153].mxu1 }
 0x430   : > { %v2725_v56 = vadd.f32 %v2724_v54, %v5783_v55  ;;  %v2726_v37 = vpop.f32.mrb[154].mxu1  ;;  %v3566_v54 = vld [vmem:[%s6184_s5 + $0x58] sm:$0xff] }
 0x431   : > { %v3031_v40 = vmax.f32 %v2723_v53, 0.0  ;;  %v2727_v62 = vadd.f32 %v2726_v37, %v5777_v23  ;;  %v2728_v32 = vpop.f32.mrb[155].mxu1  ;;  %v4241_v53 = vpack.c.bf16 %v3582_v63, %v3581_v27 }
 0x432   : > { %v3032_v0 = vmax.f32 %v2725_v56, 0.0  ;;  %v2729_v44 = vadd.f32 %v2728_v32, %v5783_v55 }
 0x433   : > { %v3387_v2 = vadd.f32 %v3386_v38, %v3031_v40  ;;  %v3035_v4 = vmax.f32 %v2727_v62, 0.0  ;;  %v3565_v38 = vld [vmem:[%s6184_s5 + $0x50] sm:$0xff]  ;;  %4242 = vmatprep.subr.bf16.mxu1 %v4241_v53 }
 0x434   : > { %v3456_v14 = vadd.f32 %v3455_v57, %v3032_v0  ;;  %v3036_v6 = vmax.f32 %v2729_v44, 0.0  ;;  %v4243_v40 = vpack.c.bf16 %v3566_v54, %v3565_v38 }
 0x435   : > { %v3388_v12 = vadd.f32 %v3387_v2, %v3035_v4 }
 0x436   : > { %v3457_v19 = vadd.f32 %v3456_v14, %v3036_v6  ;;  %v2732_v33 = vpop.f32.mrb[156].mxu1  ;;  %4244 = vmatpush3.bf16.msra.mxu1 %v4243_v40 }
 0x437   : > { %v2733_v21 = vadd.f32 %v2732_v33, %v5777_v23  ;;  %v2734_v35 = vpop.f32.mrb[157].mxu1 }
 0x438   : > { %v2735_v60 = vadd.f32 %v2734_v35, %v5783_v55  ;;  %v2736_v11 = vpop.f32.mrb[158].mxu1 }
 0x439   : > { %v3039_v41 = vmax.f32 %v2733_v21, 0.0  ;;  %v2737_v8 = vadd.f32 %v2736_v11, %v5777_v23  ;;  %v2738_v13 = vpop.f32.mrb[159].mxu1 }
 0x43a   : > { %v3040_v61 = vmax.f32 %v2735_v60, 0.0  ;;  %v2739_v46 = vadd.f32 %v2738_v13, %v5783_v55 }
 0x43b   : > { %v3389_v26 = vadd.f32 %v3388_v12, %v3039_v41  ;;  %v3043_v1 = vmax.f32 %v2737_v8, 0.0 }
 0x43c   : > { %v3458_v52 = vadd.f32 %v3457_v19, %v3040_v61  ;;  %v3044_v47 = vmax.f32 %v2739_v46, 0.0 }
 0x43d   : > { %v3390_v16 = vadd.f32 %v3389_v26, %v3043_v1 }
 0x43e   : > { %v3459_v45 = vadd.f32 %v3458_v52, %v3044_v47  ;;  %v2742_v20 = vpop.f32.mrb[160].mxu1 }
 0x43f   : > { %v2743_v28 = vadd.f32 %v2742_v20, %v5777_v23  ;;  %v2744_v59 = vpop.f32.mrb[161].mxu1 }
 0x440   : > { %v2745_v58 = vadd.f32 %v2744_v59, %v5783_v55  ;;  %v2746_v39 = vpop.f32.mrb[162].mxu1 }
 0x441   : > { %v3047_v29 = vmax.f32 %v2743_v28, 0.0  ;;  %v2747_v10 = vadd.f32 %v2746_v39, %v5777_v23  ;;  %v2748_v36 = vpop.f32.mrb[163].mxu1 }
 0x442   : > { %v3048_v50 = vmax.f32 %v2745_v58, 0.0  ;;  %v2749_v7 = vadd.f32 %v2748_v36, %v5783_v55 }
 0x443   : > { %v3391_v18 = vadd.f32 %v3390_v16, %v3047_v29  ;;  %v3051_v3 = vmax.f32 %v2747_v10, 0.0 }
 0x444   : > { %v3460_v31 = vadd.f32 %v3459_v45, %v3048_v50  ;;  %v3052_v51 = vmax.f32 %v2749_v7, 0.0 }
 0x445   : > { %v3392_v49 = vadd.f32 %v3391_v18, %v3051_v3 }
 0x446   : > { %v3461_v24 = vadd.f32 %v3460_v31, %v3052_v51  ;;  %v2752_v30 = vpop.f32.mrb[164].mxu1 }
 0x447   : > { %v2753_v57 = vadd.f32 %v2752_v30, %v5777_v23  ;;  %v2754_v42 = vpop.f32.mrb[165].mxu1 }
 0x448   : > { %v2755_v56 = vadd.f32 %v2754_v42, %v5783_v55  ;;  %v2756_v37 = vpop.f32.mrb[166].mxu1 }
 0x449   : > { %v3055_v62 = vmax.f32 %v2753_v57, 0.0  ;;  %v2757_v32 = vadd.f32 %v2756_v37, %v5777_v23  ;;  %v2758_v0 = vpop.f32.mrb[167].mxu1 }
 0x44a   : > { %v3056_v44 = vmax.f32 %v2755_v56, 0.0  ;;  %v2759_v2 = vadd.f32 %v2758_v0, %v5783_v55 }
 0x44b   : > { %v3393_v4 = vadd.f32 %v3392_v49, %v3055_v62  ;;  %v3059_v14 = vmax.f32 %v2757_v32, 0.0 }
 0x44c   : > { %v3462_v6 = vadd.f32 %v3461_v24, %v3056_v44  ;;  %v3060_v12 = vmax.f32 %v2759_v2, 0.0 }
 0x44d   : > { %v3394_v19 = vadd.f32 %v3393_v4, %v3059_v14 }
 0x44e   : > { %v3463_v33 = vadd.f32 %v3462_v6, %v3060_v12  ;;  %v2762_v21 = vpop.f32.mrb[168].mxu1  ;;  %v3583_v6 = vld [vmem:[%s6184_s5 + $0xe0] sm:$0xff]  ;;  %v3584_v12 = vld [vmem:[%s6184_s5 + $0xe8] sm:$0xff] }
 0x44f   : > { %v2763_v35 = vadd.f32 %v2762_v21, %v5777_v23  ;;  %v2764_v60 = vpop.f32.mrb[169].mxu1 }
 0x450   : > { %v2765_v11 = vadd.f32 %v2764_v60, %v5783_v55  ;;  %v2766_v41 = vpop.f32.mrb[170].mxu1  ;;  %v3568_v60 = vld [vmem:[%s6184_s5 + $0x68] sm:$0xff] }
 0x451   : > { %v3063_v8 = vmax.f32 %v2763_v35, 0.0  ;;  %v2767_v13 = vadd.f32 %v2766_v41, %v5777_v23  ;;  %v2768_v61 = vpop.f32.mrb[171].mxu1  ;;  %v4245_v35 = vpack.c.bf16 %v3584_v12, %v3583_v6 }
 0x452   : > { %v3064_v46 = vmax.f32 %v2765_v11, 0.0  ;;  %v2769_v26 = vadd.f32 %v2768_v61, %v5783_v55 }
 0x453   : > { %v3395_v1 = vadd.f32 %v3394_v19, %v3063_v8  ;;  %v3067_v52 = vmax.f32 %v2767_v13, 0.0  ;;  %v3567_v19 = vld [vmem:[%s6184_s5 + $0x60] sm:$0xff]  ;;  %4246 = vmatprep.subr.bf16.mxu1 %v4245_v35 }
 0x454   : > { %v3464_v47 = vadd.f32 %v3463_v33, %v3064_v46  ;;  %v3068_v16 = vmax.f32 %v2769_v26, 0.0  ;;  %v4247_v8 = vpack.c.bf16 %v3568_v60, %v3567_v19 }
 0x455   : > { %v3396_v45 = vadd.f32 %v3395_v1, %v3067_v52 }
 0x456   : > { %v3465_v20 = vadd.f32 %v3464_v47, %v3068_v16  ;;  %v2772_v28 = vpop.f32.mrb[172].mxu1  ;;  %4248 = vmatpush3.bf16.msra.mxu1 %v4247_v8 }
 0x457   : > { %v2773_v59 = vadd.f32 %v2772_v28, %v5777_v23  ;;  %v2774_v58 = vpop.f32.mrb[173].mxu1 }
 0x458   : > { %v2775_v39 = vadd.f32 %v2774_v58, %v5783_v55  ;;  %v2776_v29 = vpop.f32.mrb[174].mxu1 }
 0x459   : > { %v3071_v10 = vmax.f32 %v2773_v59, 0.0  ;;  %v2777_v36 = vadd.f32 %v2776_v29, %v5777_v23  ;;  %v2778_v50 = vpop.f32.mrb[175].mxu1 }
 0x45a   : > { %v3072_v7 = vmax.f32 %v2775_v39, 0.0  ;;  %v2779_v18 = vadd.f32 %v2778_v50, %v5783_v55 }
 0x45b   : > { %v3397_v3 = vadd.f32 %v3396_v45, %v3071_v10  ;;  %v3075_v31 = vmax.f32 %v2777_v36, 0.0 }
 0x45c   : > { %v3466_v51 = vadd.f32 %v3465_v20, %v3072_v7  ;;  %v3076_v49 = vmax.f32 %v2779_v18, 0.0 }
 0x45d   : > { %v3398_v24 = vadd.f32 %v3397_v3, %v3075_v31 }
 0x45e   : > { %v3467_v30 = vadd.f32 %v3466_v51, %v3076_v49  ;;  %v2782_v27 = vpop.f32.mrb[176].mxu1 }
 0x45f   : > { %v2783_v63 = vadd.f32 %v2782_v27, %v5777_v23  ;;  %v2784_v38 = vpop.f32.mrb[177].mxu1 }
 0x460   : > { %v2785_v57 = vadd.f32 %v2784_v38, %v5783_v55  ;;  %v2786_v42 = vpop.f32.mrb[178].mxu1 }
 0x461   : > { %v3079_v53 = vmax.f32 %v2783_v63, 0.0  ;;  %v2787_v54 = vadd.f32 %v2786_v42, %v5777_v23  ;;  %v2788_v56 = vpop.f32.mrb[179].mxu1 }
 0x462   : > { %v3080_v37 = vmax.f32 %v2785_v57, 0.0  ;;  %v2789_v40 = vadd.f32 %v2788_v56, %v5783_v55 }
 0x463   : > { %v3399_v62 = vadd.f32 %v3398_v24, %v3079_v53  ;;  %v3083_v32 = vmax.f32 %v2787_v54, 0.0 }
 0x464   : > { %v3468_v0 = vadd.f32 %v3467_v30, %v3080_v37  ;;  %v3084_v44 = vmax.f32 %v2789_v40, 0.0 }
 0x465   : > { %v3400_v2 = vadd.f32 %v3399_v62, %v3083_v32 }
 0x466   : > { %v3469_v4 = vadd.f32 %v3468_v0, %v3084_v44  ;;  %v2792_v14 = vpop.f32.mrb[180].mxu1 }
 0x467   : > { %v2793_v33 = vadd.f32 %v2792_v14, %v5777_v23  ;;  %v2794_v21 = vpop.f32.mrb[181].mxu1 }
 0x468   : > { %v2795_v11 = vadd.f32 %v2794_v21, %v5783_v55  ;;  %v2796_v41 = vpop.f32.mrb[182].mxu1 }
 0x469   : > { %v3087_v13 = vmax.f32 %v2793_v33, 0.0  ;;  %v2797_v61 = vadd.f32 %v2796_v41, %v5777_v23  ;;  %v2798_v46 = vpop.f32.mrb[183].mxu1 }
 0x46a   : > { %v3088_v26 = vmax.f32 %v2795_v11, 0.0  ;;  %v2799_v1 = vadd.f32 %v2798_v46, %v5783_v55 }
 0x46b   : > { %v3401_v52 = vadd.f32 %v3400_v2, %v3087_v13  ;;  %v3091_v47 = vmax.f32 %v2797_v61, 0.0 }
 0x46c   : > { %v3470_v16 = vadd.f32 %v3469_v4, %v3088_v26  ;;  %v3092_v45 = vmax.f32 %v2799_v1, 0.0 }
 0x46d   : > { %v3402_v20 = vadd.f32 %v3401_v52, %v3091_v47 }
 0x46e   : > { %v3471_v28 = vadd.f32 %v3470_v16, %v3092_v45  ;;  %v2802_v59 = vpop.f32.mrb[184].mxu1 }
 0x46f   : > { %v2803_v58 = vadd.f32 %v2802_v59, %v5777_v23  ;;  %v2804_v39 = vpop.f32.mrb[185].mxu1 }
 0x470   : > { %v2805_v29 = vadd.f32 %v2804_v39, %v5783_v55  ;;  %v2806_v10 = vpop.f32.mrb[186].mxu1 }
 0x471   : > { %v3095_v36 = vmax.f32 %v2803_v58, 0.0  ;;  %v2807_v50 = vadd.f32 %v2806_v10, %v5777_v23  ;;  %v2808_v7 = vpop.f32.mrb[187].mxu1 }
 0x472   : > { %v3096_v18 = vmax.f32 %v2805_v29, 0.0  ;;  %v2809_v3 = vadd.f32 %v2808_v7, %v5783_v55 }
 0x473   : > { %v3403_v31 = vadd.f32 %v3402_v20, %v3095_v36  ;;  %v3099_v51 = vmax.f32 %v2807_v50, 0.0  ;;  %v4865_v50 = vmov 0.0  }
 0x474   : > { %v3472_v49 = vadd.f32 %v3471_v28, %v3096_v18  ;;  %v3100_v24 = vmax.f32 %v2809_v3, 0.0  ;;  %354 = vst.msk [vmem:[#allocation2] sm:$0xf] %vm5926_vm1, %v4865_v50 }
 0x475   : > { %v3404_v30 = vadd.f32 %v3403_v31, %v3099_v51 }
 0x476   : > { %v3473_v27 = vadd.f32 %v3472_v49, %v3100_v24  ;;  %v2812_v63 = vpop.f32.mrb[188].mxu1 }
 0x477   : > { %v2813_v38 = vadd.f32 %v2812_v63, %v5777_v23  ;;  %v2814_v57 = vpop.f32.mrb[189].mxu1 }
 0x478   : > { %v2815_v42 = vadd.f32 %v2814_v57, %v5783_v55  ;;  %v2816_v53 = vpop.f32.mrb[190].mxu1 }
 0x479   : > { %v3103_v54 = vmax.f32 %v2813_v38, 0.0  ;;  %v2817_v56 = vadd.f32 %v2816_v53, %v5777_v23  ;;  %v2818_v37 = vpop.f32.mrb[191].mxu1 }
 0x47a   : > { %v3104_v40 = vmax.f32 %v2815_v42, 0.0  ;;  %v2819_v62 = vadd.f32 %v2818_v37, %v5783_v55 }
 0x47b   : > { %v3405_v32 = vadd.f32 %v3404_v30, %v3103_v54  ;;  %v3107_v0 = vmax.f32 %v2817_v56, 0.0 }
 0x47c   : > { %v3474_v44 = vadd.f32 %v3473_v27, %v3104_v40  ;;  %v3108_v2 = vmax.f32 %v2819_v62, 0.0 }
 0x47d   : > { %v3406_v4 = vadd.f32 %v3405_v32, %v3107_v0 }
 0x47e   : > { %v3475_v14 = vadd.f32 %v3474_v44, %v3108_v2  ;;  %v2822_v6 = vpop.f32.mrb[192].mxu1  ;;  %v3585_v2 = vld [vmem:[%s6184_s5 + $0xf0] sm:$0xff] }
 0x47f   : > { %v2823_v12 = vadd.f32 %v2822_v6, %v5777_v23  ;;  %v2824_v19 = vpop.f32.mrb[193].mxu1 }
 0x480   : > { %v2825_v33 = vadd.f32 %v2824_v19, %v5783_v55  ;;  %v2826_v21 = vpop.f32.mrb[194].mxu1 }
 0x481   : > { %v3111_v35 = vmax.f32 %v2823_v12, 0.0  ;;  %v2827_v60 = vadd.f32 %v2826_v21, %v5777_v23  ;;  %v2828_v11 = vpop.f32.mrb[195].mxu1 }
 0x482   : > { %v3112_v41 = vmax.f32 %v2825_v33, 0.0  ;;  %v2829_v8 = vadd.f32 %v2828_v11, %v5783_v55  ;;  %v3570_v33 = vld [vmem:[%s6184_s5 + $0x78] sm:$0xff] }
 0x483   : > { %v3407_v13 = vadd.f32 %v3406_v4, %v3111_v35  ;;  %v3115_v61 = vmax.f32 %v2827_v60, 0.0  ;;  %v3586_v4 = vld [vmem:[%s6184_s5 + $0xf8] sm:$0xff] }
 0x484   : > { %v3476_v46 = vadd.f32 %v3475_v14, %v3112_v41  ;;  %v3116_v26 = vmax.f32 %v2829_v8, 0.0  ;;  %v3569_v14 = vld [vmem:[%s6184_s5 + $0x70] sm:$0xff]  ;;  %v4249_v19 = vpack.c.bf16 %v3586_v4, %v3585_v2 }
 0x485   : > { %v3408_v1 = vadd.f32 %v3407_v13, %v3115_v61  ;;  %v4251_v60 = vpack.c.bf16 %v3570_v33, %v3569_v14 }
 0x486   : > { %v3477_v52 = vadd.f32 %v3476_v46, %v3116_v26  ;;  %v2832_v47 = vpop.f32.mrb[196].mxu1  ;;  %4250 = vmatprep.subr.bf16.mxu1 %v4249_v19 }
 0x487   : > { %v2833_v16 = vadd.f32 %v2832_v47, %v5777_v23  ;;  %v2834_v45 = vpop.f32.mrb[197].mxu1  ;;  %4252 = vmatpush3.bf16.msra.mxu1 %v4251_v60 }
 0x488   : > { %v2835_v20 = vadd.f32 %v2834_v45, %v5783_v55  ;;  %v2836_v28 = vpop.f32.mrb[198].mxu1 }
 0x489   : > { %v3119_v59 = vmax.f32 %v2833_v16, 0.0  ;;  %v2837_v58 = vadd.f32 %v2836_v28, %v5777_v23  ;;  %v2838_v39 = vpop.f32.mrb[199].mxu1 }
 0x48a   : > { %v3120_v10 = vmax.f32 %v2835_v20, 0.0  ;;  %v2839_v36 = vadd.f32 %v2838_v39, %v5783_v55 }
 0x48b   : > { %v3409_v7 = vadd.f32 %v3408_v1, %v3119_v59  ;;  %v3123_v18 = vmax.f32 %v2837_v58, 0.0  ;;  %v3603_v59 = vld [vmem:[%s6184_s5 + $0x180] sm:$0xff]  ;;  %v3604_v58 = vld [vmem:[%s6184_s5 + $0x188] sm:$0xff] }
 0x48c   : > { %v3478_v3 = vadd.f32 %v3477_v52, %v3120_v10  ;;  %v3124_v31 = vmax.f32 %v2839_v36, 0.0  ;;  %v4253_v36 = vpack.c.bf16 %v3604_v58, %v3603_v59 }
 0x48d   : > { %v3410_v51 = vadd.f32 %v3409_v7, %v3123_v18 }
 0x48e   : > { %v3479_v49 = vadd.f32 %v3478_v3, %v3124_v31  ;;  %v2842_v24 = vpop.f32.mrb[200].mxu1  ;;  %4254 = vmatprep.subr.bf16.mxu1 %v4253_v36 }
 0x48f   : > { %v2843_v30 = vadd.f32 %v2842_v24, %v5777_v23  ;;  %v2844_v25 = vpop.f32.mrb[201].mxu1 }
 0x490   : > { %v2845_v27 = vadd.f32 %v2844_v25, %v5783_v55  ;;  %v2846_v63 = vpop.f32.mrb[202].mxu1 }
 0x491   : > { %v3127_v38 = vmax.f32 %v2843_v30, 0.0  ;;  %v2847_v57 = vadd.f32 %v2846_v63, %v5777_v23  ;;  %v2848_v42 = vpop.f32.mrb[203].mxu1 }
 0x492   : > { %v3128_v53 = vmax.f32 %v2845_v27, 0.0  ;;  %v2849_v54 = vadd.f32 %v2848_v42, %v5783_v55 }
 0x493   : > { %v3411_v56 = vadd.f32 %v3410_v51, %v3127_v38  ;;  %v3131_v37 = vmax.f32 %v2847_v57, 0.0 }
 0x494   : > { %v3480_v40 = vadd.f32 %v3479_v49, %v3128_v53  ;;  %v3132_v62 = vmax.f32 %v2849_v54, 0.0 }
 0x495   : > { %v3412_v32 = vadd.f32 %v3411_v56, %v3131_v37 }
 0x496   : > { %v3481_v0 = vadd.f32 %v3480_v40, %v3132_v62  ;;  %v2852_v44 = vpop.f32.mrb[204].mxu1 }
 0x497   : > { %v2853_v6 = vadd.f32 %v2852_v44, %v5777_v23  ;;  %v2854_v12 = vpop.f32.mrb[205].mxu1 }
 0x498   : > { %v2855_v21 = vadd.f32 %v2854_v12, %v5783_v55  ;;  %v2856_v35 = vpop.f32.mrb[206].mxu1 }
 0x499   : > { %v3135_v11 = vmax.f32 %v2853_v6, 0.0  ;;  %v2857_v41 = vadd.f32 %v2856_v35, %v5777_v23  ;;  %v2858_v8 = vpop.f32.mrb[207].mxu1 }
 0x49a   : > { %v3136_v13 = vmax.f32 %v2855_v21, 0.0  ;;  %v2859_v61 = vadd.f32 %v2858_v8, %v5783_v55 }
 0x49b   : > { %v3413_v46 = vadd.f32 %v3412_v32, %v3135_v11  ;;  %v3139_v26 = vmax.f32 %v2857_v41, 0.0 }
 0x49c   : > { %v3482_v1 = vadd.f32 %v3481_v0, %v3136_v13  ;;  %v3140_v52 = vmax.f32 %v2859_v61, 0.0 }
 0x49d   : > { %v3414_v47 = vadd.f32 %v3413_v46, %v3139_v26 }
 0x49e   : > { %v3483_v16 = vadd.f32 %v3482_v1, %v3140_v52  ;;  %v2862_v45 = vpop.f32.mrb[208].mxu1 }
 0x49f   : > { %v2863_v20 = vadd.f32 %v2862_v45, %v5777_v23  ;;  %v2864_v28 = vpop.f32.mrb[209].mxu1 }
 0x4a0   : > { %v2865_v39 = vadd.f32 %v2864_v28, %v5783_v55  ;;  %v2866_v10 = vpop.f32.mrb[210].mxu1 }
 0x4a1   : > { %v3143_v50 = vmax.f32 %v2863_v20, 0.0  ;;  %v2867_v7 = vadd.f32 %v2866_v10, %v5777_v23  ;;  %v2868_v18 = vpop.f32.mrb[211].mxu1 }
 0x4a2   : > { %v3144_v3 = vmax.f32 %v2865_v39, 0.0  ;;  %v2869_v31 = vadd.f32 %v2868_v18, %v5783_v55 }
 0x4a3   : > { %v3415_v51 = vadd.f32 %v3414_v47, %v3143_v50  ;;  %v3147_v49 = vmax.f32 %v2867_v7, 0.0 }
 0x4a4   : > { %v3484_v24 = vadd.f32 %v3483_v16, %v3144_v3  ;;  %v3148_v30 = vmax.f32 %v2869_v31, 0.0 }
 0x4a5   : > { %v3416_v25 = vadd.f32 %v3415_v51, %v3147_v49 }
 0x4a6   : > { %v3485_v27 = vadd.f32 %v3484_v24, %v3148_v30  ;;  %v2872_v63 = vpop.f32.mrb[212].mxu1 }
 0x4a7   : > { %v2873_v38 = vadd.f32 %v2872_v63, %v5777_v23  ;;  %v2874_v57 = vpop.f32.mrb[213].mxu1 }
 0x4a8   : > { %v2875_v42 = vadd.f32 %v2874_v57, %v5783_v55  ;;  %v2876_v53 = vpop.f32.mrb[214].mxu1 }
 0x4a9   : > { %v3151_v54 = vmax.f32 %v2873_v38, 0.0  ;;  %v2877_v56 = vadd.f32 %v2876_v53, %v5777_v23  ;;  %v2878_v37 = vpop.f32.mrb[215].mxu1 }
 0x4aa   : > { %v3152_v40 = vmax.f32 %v2875_v42, 0.0  ;;  %v2879_v62 = vadd.f32 %v2878_v37, %v5783_v55 }
 0x4ab   : > { %v3417_v32 = vadd.f32 %v3416_v25, %v3151_v54  ;;  %v3155_v0 = vmax.f32 %v2877_v56, 0.0 }
 0x4ac   : > { %v3486_v44 = vadd.f32 %v3485_v27, %v3152_v40  ;;  %v3156_v2 = vmax.f32 %v2879_v62, 0.0 }
 0x4ad   : > { %v3418_v4 = vadd.f32 %v3417_v32, %v3155_v0 }
 0x4ae   : > { %v3487_v14 = vadd.f32 %v3486_v44, %v3156_v2  ;;  %v2882_v6 = vpop.f32.mrb[216].mxu1 }
 0x4af   : > { %v2883_v12 = vadd.f32 %v2882_v6, %v5777_v23  ;;  %v2884_v19 = vpop.f32.mrb[217].mxu1 }
 0x4b0   : > { %v2885_v33 = vadd.f32 %v2884_v19, %v5783_v55  ;;  %v2886_v21 = vpop.f32.mrb[218].mxu1 }
 0x4b1   : > { %v3159_v35 = vmax.f32 %v2883_v12, 0.0  ;;  %v2887_v60 = vadd.f32 %v2886_v21, %v5777_v23  ;;  %v2888_v11 = vpop.f32.mrb[219].mxu1 }
 0x4b2   : > { %v3160_v41 = vmax.f32 %v2885_v33, 0.0  ;;  %v2889_v8 = vadd.f32 %v2888_v11, %v5783_v55 }
 0x4b3   : > { %v3419_v13 = vadd.f32 %v3418_v4, %v3159_v35  ;;  %v3163_v61 = vmax.f32 %v2887_v60, 0.0 }
 0x4b4   : > { %v3488_v46 = vadd.f32 %v3487_v14, %v3160_v41  ;;  %v3164_v26 = vmax.f32 %v2889_v8, 0.0 }
 0x4b5   : > { %v3420_v1 = vadd.f32 %v3419_v13, %v3163_v61 }
 0x4b6   : > { %v3489_v52 = vadd.f32 %v3488_v46, %v3164_v26  ;;  %v2892_v47 = vpop.f32.mrb[220].mxu1 }
 0x4b7   : > { %v2893_v16 = vadd.f32 %v2892_v47, %v5777_v23  ;;  %v2894_v45 = vpop.f32.mrb[221].mxu1 }
 0x4b8   : > { %v2895_v20 = vadd.f32 %v2894_v45, %v5783_v55  ;;  %v2896_v28 = vpop.f32.mrb[222].mxu1 }
 0x4b9   : > { %v3167_v59 = vmax.f32 %v2893_v16, 0.0  ;;  %v2897_v58 = vadd.f32 %v2896_v28, %v5777_v23  ;;  %v2898_v39 = vpop.f32.mrb[223].mxu1 }
 0x4ba   : > { %v3168_v10 = vmax.f32 %v2895_v20, 0.0  ;;  %v2899_v36 = vadd.f32 %v2898_v39, %v5783_v55 }
 0x4bb   : > { %v3421_v50 = vadd.f32 %v3420_v1, %v3167_v59  ;;  %v3171_v7 = vmax.f32 %v2897_v58, 0.0 }
 0x4bc   : > { %v3490_v18 = vadd.f32 %v3489_v52, %v3168_v10  ;;  %v3172_v3 = vmax.f32 %v2899_v36, 0.0 }
 0x4bd   : > { %v3422_v31 = vadd.f32 %v3421_v50, %v3171_v7 }
 0x4be   : > { %v3491_v51 = vadd.f32 %v3490_v18, %v3172_v3  ;;  %v2902_v49 = vpop.f32.mrb[224].mxu1 }
 0x4bf   : > { %v2903_v24 = vadd.f32 %v2902_v49, %v5777_v23  ;;  %v2904_v30 = vpop.f32.mrb[225].mxu1 }
 0x4c0   : > { %v2905_v25 = vadd.f32 %v2904_v30, %v5783_v55  ;;  %v2906_v27 = vpop.f32.mrb[226].mxu1 }
 0x4c1   : > { %v3175_v63 = vmax.f32 %v2903_v24, 0.0  ;;  %v2907_v38 = vadd.f32 %v2906_v27, %v5777_v23  ;;  %v2908_v57 = vpop.f32.mrb[227].mxu1 }
 0x4c2   : > { %v3176_v42 = vmax.f32 %v2905_v25, 0.0  ;;  %v2909_v53 = vadd.f32 %v2908_v57, %v5783_v55 }
 0x4c3   : > { %v3423_v54 = vadd.f32 %v3422_v31, %v3175_v63  ;;  %v3179_v56 = vmax.f32 %v2907_v38, 0.0 }
 0x4c4   : > { %v3492_v37 = vadd.f32 %v3491_v51, %v3176_v42  ;;  %v3180_v40 = vmax.f32 %v2909_v53, 0.0 }
 0x4c5   : > { %v3424_v62 = vadd.f32 %v3423_v54, %v3179_v56 }
 0x4c6   : > { %v3493_v32 = vadd.f32 %v3492_v37, %v3180_v40  ;;  %v2912_v0 = vpop.f32.mrb[228].mxu1 }
 0x4c7   : > { %v2913_v44 = vadd.f32 %v2912_v0, %v5777_v23  ;;  %v2914_v2 = vpop.f32.mrb[229].mxu1 }
 0x4c8   : > { %v2915_v4 = vadd.f32 %v2914_v2, %v5783_v55  ;;  %v2916_v14 = vpop.f32.mrb[230].mxu1 }
 0x4c9   : > { %v3183_v6 = vmax.f32 %v2913_v44, 0.0  ;;  %v2917_v12 = vadd.f32 %v2916_v14, %v5777_v23  ;;  %v2918_v19 = vpop.f32.mrb[231].mxu1 }
 0x4ca   : > { %v3184_v33 = vmax.f32 %v2915_v4, 0.0  ;;  %v2919_v21 = vadd.f32 %v2918_v19, %v5783_v55 }
 0x4cb   : > { %v3425_v35 = vadd.f32 %v3424_v62, %v3183_v6  ;;  %v3187_v60 = vmax.f32 %v2917_v12, 0.0 }
 0x4cc   : > { %v3494_v11 = vadd.f32 %v3493_v32, %v3184_v33  ;;  %v3188_v41 = vmax.f32 %v2919_v21, 0.0 }
 0x4cd   : > { %v3426_v8 = vadd.f32 %v3425_v35, %v3187_v60 }
 0x4ce   : > { %v3495_v13 = vadd.f32 %v3494_v11, %v3188_v41  ;;  %v2922_v61 = vpop.f32.mrb[232].mxu1 }
 0x4cf   : > { %v2923_v46 = vadd.f32 %v2922_v61, %v5777_v23  ;;  %v2924_v26 = vpop.f32.mrb[233].mxu1 }
 0x4d0   : > { %v2925_v1 = vadd.f32 %v2924_v26, %v5783_v55  ;;  %v2926_v52 = vpop.f32.mrb[234].mxu1 }
 0x4d1   : > { %v3191_v47 = vmax.f32 %v2923_v46, 0.0  ;;  %v2927_v16 = vadd.f32 %v2926_v52, %v5777_v23  ;;  %v2928_v45 = vpop.f32.mrb[235].mxu1 }
 0x4d2   : > { %v3192_v20 = vmax.f32 %v2925_v1, 0.0  ;;  %v2929_v28 = vadd.f32 %v2928_v45, %v5783_v55 }
 0x4d3   : > { %v3427_v59 = vadd.f32 %v3426_v8, %v3191_v47  ;;  %v3195_v58 = vmax.f32 %v2927_v16, 0.0 }
 0x4d4   : > { %v3496_v39 = vadd.f32 %v3495_v13, %v3192_v20  ;;  %v3196_v10 = vmax.f32 %v2929_v28, 0.0 }
 0x4d5   : > { %v3428_v36 = vadd.f32 %v3427_v59, %v3195_v58 }
 0x4d6   : > { %v3497_v50 = vadd.f32 %v3496_v39, %v3196_v10  ;;  %v2932_v7 = vpop.f32.mrb[236].mxu1 }
 0x4d7   : > { %v2933_v18 = vadd.f32 %v2932_v7, %v5777_v23  ;;  %v2934_v3 = vpop.f32.mrb[237].mxu1 }
 0x4d8   : > { %v2935_v31 = vadd.f32 %v2934_v3, %v5783_v55  ;;  %v2936_v51 = vpop.f32.mrb[238].mxu1 }
 0x4d9   : > { %v3199_v49 = vmax.f32 %v2933_v18, 0.0  ;;  %v2937_v24 = vadd.f32 %v2936_v51, %v5777_v23  ;;  %v2938_v30 = vpop.f32.mrb[239].mxu1 }
 0x4da   : > { %v3200_v25 = vmax.f32 %v2935_v31, 0.0  ;;  %v2939_v27 = vadd.f32 %v2938_v30, %v5783_v55 }
 0x4db   : > { %v3429_v63 = vadd.f32 %v3428_v36, %v3199_v49  ;;  %v3203_v38 = vmax.f32 %v2937_v24, 0.0 }
 0x4dc   : > { %v3498_v57 = vadd.f32 %v3497_v50, %v3200_v25  ;;  %v3204_v42 = vmax.f32 %v2939_v27, 0.0 }
 0x4dd   : > { %v3430_v53 = vadd.f32 %v3429_v63, %v3203_v38 }
 0x4de   : > { %v3499_v54 = vadd.f32 %v3498_v57, %v3204_v42  ;;  %v2942_v56 = vpop.f32.mrb[240].mxu1 }
 0x4df   : > { %v2943_v37 = vadd.f32 %v2942_v56, %v5777_v23  ;;  %v2944_v40 = vpop.f32.mrb[241].mxu1 }
 0x4e0   : > { %v2945_v62 = vadd.f32 %v2944_v40, %v5783_v55  ;;  %v2946_v32 = vpop.f32.mrb[242].mxu1 }
 0x4e1   : > { %v3207_v0 = vmax.f32 %v2943_v37, 0.0  ;;  %v2947_v44 = vadd.f32 %v2946_v32, %v5777_v23  ;;  %v2948_v2 = vpop.f32.mrb[243].mxu1 }
 0x4e2   : > { %v3208_v4 = vmax.f32 %v2945_v62, 0.0  ;;  %v2949_v14 = vadd.f32 %v2948_v2, %v5783_v55 }
 0x4e3   : > { %v3431_v6 = vadd.f32 %v3430_v53, %v3207_v0  ;;  %v3211_v12 = vmax.f32 %v2947_v44, 0.0 }
 0x4e4   : > { %v3500_v19 = vadd.f32 %v3499_v54, %v3208_v4  ;;  %v3212_v33 = vmax.f32 %v2949_v14, 0.0 }
 0x4e5   : > { %v3432_v21 = vadd.f32 %v3431_v6, %v3211_v12 }
 0x4e6   : > { %v3501_v35 = vadd.f32 %v3500_v19, %v3212_v33  ;;  %v2952_v60 = vpop.f32.mrb[244].mxu1 }
 0x4e7   : > { %v2953_v11 = vadd.f32 %v2952_v60, %v5777_v23  ;;  %v2954_v41 = vpop.f32.mrb[245].mxu1 }
 0x4e8   : > { %v2955_v8 = vadd.f32 %v2954_v41, %v5783_v55  ;;  %v2956_v13 = vpop.f32.mrb[246].mxu1 }
 0x4e9   : > { %v3215_v61 = vmax.f32 %v2953_v11, 0.0  ;;  %v2957_v46 = vadd.f32 %v2956_v13, %v5777_v23  ;;  %v2958_v26 = vpop.f32.mrb[247].mxu1 }
 0x4ea   : > { %v3216_v1 = vmax.f32 %v2955_v8, 0.0  ;;  %v2959_v52 = vadd.f32 %v2958_v26, %v5783_v55 }
 0x4eb   : > { %v3433_v47 = vadd.f32 %v3432_v21, %v3215_v61  ;;  %v3219_v16 = vmax.f32 %v2957_v46, 0.0  ;;  %v4866_v21 = vmov 1966171168  }
 0x4ec   : > { %v3502_v45 = vadd.f32 %v3501_v35, %v3216_v1  ;;  %v3220_v20 = vmax.f32 %v2959_v52, 0.0  ;;  %v3521_v35 = vunpack.c.l.s4 %v4866_v21  ;;  %v3600_v21 = vld [vmem:[%s6184_s5 + $0x168] sm:$0xff] }
 0x4ed   : > { %v3434_v28 = vadd.f32 %v3433_v47, %v3219_v16 }
 0x4ee   : > { %v3503_v59 = vadd.f32 %v3502_v45, %v3220_v20  ;;  %v2962_v58 = vpop.f32.mrb[248].mxu1  ;;  %v3237_v20 = vld [vmem:[#allocation2] sm:$0xf] }
 0x4ef   : > { %v2963_v39 = vadd.f32 %v2962_v58, %v5777_v23  ;;  %v2964_v10 = vpop.f32.mrb[249].mxu1 }
 0x4f0   : > { %v2965_v36 = vadd.f32 %v2964_v10, %v5783_v55  ;;  %v2966_v50 = vpop.f32.mrb[250].mxu1  ;;  %v3606_v10 = vld [vmem:[%s6184_s5 + $0x198] sm:$0xff] }
 0x4f1   : > { %v3223_v7 = vmax.f32 %v2963_v39, 0.0  ;;  %v2967_v18 = vadd.f32 %v2966_v50, %v5777_v23  ;;  %v2968_v3 = vpop.f32.mrb[251].mxu1  ;;  %v3587_v39 = vld [vmem:[%s6184_s5 + $0x100] sm:$0xff] }
 0x4f2   : > { %v3224_v31 = vmax.f32 %v2965_v36, 0.0  ;;  %v2969_v51 = vadd.f32 %v2968_v3, %v5783_v55  ;;  %v3589_v3 = vld [vmem:[%s6184_s5 + $0x110] sm:$0xff] }
 0x4f3   : > { %v3435_v49 = vadd.f32 %v3434_v28, %v3223_v7  ;;  %v3227_v24 = vmax.f32 %v2967_v18, 0.0  ;;  %v4255_v7 = vpack.c.bf16 %v3588_v5, %v3587_v39 }
 0x4f4   : > { %v3504_v30 = vadd.f32 %v3503_v59, %v3224_v31  ;;  %v3228_v25 = vmax.f32 %v2969_v51, 0.0  ;;  %v3590_v31 = vld [vmem:[%s6184_s5 + $0x118] sm:$0xff] }
 0x4f5   : > { %v3436_v27 = vadd.f32 %v3435_v49, %v3227_v24  ;;  %v4259_v51 = vpack.c.bf16 %v3590_v31, %v3589_v3  ;;  %v3591_v24 = vld [vmem:[%s6184_s5 + $0x120] sm:$0xff] }
 0x4f6   : > { %v3505_v63 = vadd.f32 %v3504_v30, %v3228_v25  ;;  %v2972_v38 = vpop.f32.mrb[252].mxu1  ;;  %v3609_v30 = vld [vmem:[%s6184_s5 + $0x1b0] sm:$0xff]  ;;  %v3610_v25 = vld [vmem:[%s6184_s5 + $0x1b8] sm:$0xff] }
 0x4f7   : > { %v2973_v57 = vadd.f32 %v2972_v38, %v5777_v23  ;;  %v2974_v42 = vpop.f32.mrb[253].mxu1  ;;  %v3593_v38 = vld [vmem:[%s6184_s5 + $0x130] sm:$0xff] }
 0x4f8   : > { %v2975_v53 = vadd.f32 %v2974_v42, %v5783_v55  ;;  %v2976_v54 = vpop.f32.mrb[254].mxu1  ;;  %v3611_v42 = vld [vmem:[%s6184_s5 + $0x1c0] sm:$0xff] }
 0x4f9   : > { %v3231_v56 = vmax.f32 %v2973_v57, 0.0  ;;  %v2977_v37 = vadd.f32 %v2976_v54, %v5777_v23  ;;  %v2978_v40 = vpop.f32.mrb[255].mxu1  ;;  %v3522_v23 = vunpack.c.0.s8 %v3521_v35  ;;  %v3594_v57 = vld [vmem:[%s6184_s5 + $0x138] sm:$0xff]  ;;  %v3617_v35 = vld [vmem:[%s6184_s5 + $0x1f0] sm:$0xff] }
 0x4fa   : > { %v3232_v62 = vmax.f32 %v2975_v53, 0.0  ;;  %v2979_v32 = vadd.f32 %v2978_v40, %v5783_v55  ;;  %v3612_v53 = vld [vmem:[%s6184_s5 + $0x1c8] sm:$0xff]  ;;  %v4267_v54 = vpack.c.bf16 %v3594_v57, %v3593_v38 }
 0x4fb   : > { %v3437_v0 = vadd.f32 %v3436_v27, %v3231_v56  ;;  %v3235_v44 = vmax.f32 %v2977_v37, 0.0  ;;  %v3525_v26 = vsub.s32 %v3522_v23, %v5471_v34  ;;  %v4269_v56 = vpack.c.bf16 %v3612_v53, %v3611_v42  ;;  %v3595_v37 = vld [vmem:[%s6184_s5 + $0x140] sm:$0xff]  ;;  %v3596_v40 = vld [vmem:[%s6184_s5 + $0x148] sm:$0xff]  ;;  %v3602_v23 = vld [vmem:[%s6184_s5 + $0x178] sm:$0xff] }
 0x4fc   : > { %v3506_v2 = vadd.f32 %v3505_v63, %v3232_v62  ;;  %v3236_v4 = vmax.f32 %v2979_v32, 0.0  ;;  %v4265_v63 = vpack.c.bf16 %v3610_v25, %v3609_v30  ;;  %v3613_v62 = vld [vmem:[%s6184_s5 + $0x1d0] sm:$0xff]  ;;  %v3614_v32 = vld [vmem:[%s6184_s5 + $0x1d8] sm:$0xff] }
 0x4fd   : > { %v3438_v14 = vadd.f32 %v3437_v0, %v3235_v44  ;;  %v3526_v47 = vrot.slane %v3518_v22, %v3525_v26  ;;  %v3605_v22 = vld [vmem:[%s6184_s5 + $0x190] sm:$0xff]  ;;  %v4271_v0 = vpack.c.bf16 %v3596_v40, %v3595_v37  ;;  %v4273_v44 = vpack.c.bf16 %v3614_v32, %v3613_v62 }
 0x4fe   : > { %v3507_v6 = vadd.f32 %v3506_v2, %v3236_v4  ;;  %v4257_v18 = vpack.c.bf16 %v3606_v10, %v3605_v22  ;;  %v3597_v2 = vld [vmem:[%s6184_s5 + $0x150] sm:$0xff]  ;;  %v3598_v4 = vld [vmem:[%s6184_s5 + $0x158] sm:$0xff] }
 0x4ff   : > { %v3439_v12 = vrot.slane %v3438_v14, 4 }
 0x500   : > { %v3508_v19 = vrot.slane %v3507_v6, 4 }
 0x501   : > { %v3440_v33 = vadd.f32 %v3439_v12, %v3438_v14  ;;  %v3615_v14 = vld [vmem:[%s6184_s5 + $0x1e0] sm:$0xff]  ;;  %v4275_v12 = vpack.c.bf16 %v3598_v4, %v3597_v2 }
 0x502   : > { %v3509_v60 = vadd.f32 %v3508_v19, %v3507_v6  ;;  %v3616_v6 = vld [vmem:[%s6184_s5 + $0x1e8] sm:$0xff] }
 0x503   : > { %v3441_v11 = vrot.slane %v3440_v33, 2  ;;  %v4277_v19 = vpack.c.bf16 %v3616_v6, %v3615_v14 }
 0x504   : > { %v3510_v41 = vrot.slane %v3509_v60, 2 }
 0x505   : > { %v3442_v8 = vadd.f32 %v3441_v11, %v3440_v33  ;;  %v3599_v33 = vld [vmem:[%s6184_s5 + $0x160] sm:$0xff] }
 0x506   : > { %v3511_v13 = vadd.f32 %v3510_v41, %v3509_v60  ;;  %v3618_v60 = vld [vmem:[%s6184_s5 + $0x1f8] sm:$0xff]  ;;  %v4279_v11 = vpack.c.bf16 %v3600_v21, %v3599_v33 }
 0x507   : > { %v3443_v61 = vrot.slane %v3442_v8, 1  ;;  %v4281_v41 = vpack.c.bf16 %v3618_v60, %v3617_v35 }
 0x508   : > { %v3512_v55 = vrot.slane %v3511_v13, 1 }
 0x509   : > { %v3444_v46 = vadd.f32 %v3443_v61, %v3442_v8  ;;  %v3601_v8 = vld [vmem:[%s6184_s5 + $0x170] sm:$0xff] }
 0x50a   : > { %v3513_v1 = vadd.f32 %v3512_v55, %v3511_v13  ;;  %v4283_v13 = vpack.c.bf16 %v3602_v23, %v3601_v8 }
 0x50c   : > { %v3519_v52 = vcombine.low %v3444_v46, %v3513_v1  ;;  %v3619_v1 = vld [vmem:[%s6185_s6] sm:$0x1] }
 0x50e   : > { %v3533_v16 = vrot.slane %v3519_v52, %v3525_v26 }
 0x510   : > { %v3534_v45 = vcombine.low %v3526_v47, %v3533_v16 }
 0x512   : > { %v3541_v28 = vrot.slane %v3534_v45, %v3525_v26 }
 0x514   : > { %v3543_v59 = vadd.f32 %v3541_v28, %v3237_v20 }
 0x516   : > { %3548 = vst.msk [vmem:[#allocation2] sm:$0xf] %vm5926_vm1, %v3543_v59 }
 0x51d   : > { %v3552_v58 = vld [vmem:[#allocation2] sm:$0xf] }
 0x51e   : > { %v6023_v17 = vmul.f32 0.001953125, %v3552_v58 }
 0x520   : > { %3554 = vst.msk [vmem:[%s344_s12] sm:$0xf] %vm5926_vm1, %v6023_v17  ;;  %v3628_v36 = vrot.slane %v6023_v17, %v2084_v48  ;;  %v3624_v50 = vrot.slane %v6023_v17, %v2080_v43  ;;  %v3636_v29 = vrot.slane %v6023_v17, %v2092_v15  ;;  %v3607_v48 = vld [vmem:[%s6184_s5 + $0x1a0] sm:$0xff]  ;;  %v3608_v43 = vld [vmem:[%s6184_s5 + $0x1a8] sm:$0xff]  ;;  %v3632_v61 = vrot.slane %v6023_v17, %v2088_v9  ;;  %s328_s12 = sand.u32 1, %s4846_s28  }
 0x521   : > { %v4261_v49 = vpack.c.bf16 %v3608_v43, %v3607_v48  ;;  %v3592_v15 = vld [vmem:[%s6184_s5 + $0x128] sm:$0xff]  ;;  %s329_s22 = scalar_lea.vmem [#allocation3], %s328_s12  ;;  %s3787_s21 = scalar_lea.sflag [#allocation4], %s328_s12 }
 0x522   : > { %3705 = vmatprep.mubr.f32.mxu1 %v3628_v36  ;;  %v4263_v27 = vpack.c.bf16 %v3592_v15, %v3591_v24  ;;  %s3802_s23 = sshll.u32 %s329_s22, 4  ;;  %s6134_s23 = int_to_ptr.vmem [resolvable:$true] %s3802_s23 }
 0x523   : > { %3706 = vmatmul.mubr.f32.vlgmr.msra.gmra.mrb[0].mxu1 %v3624_v50  ;;  %s4784_s11 = scalar_lea.vmem %s6134_s23, 16  ;;  %p4791_p1 = scmp.lt.s32.totalorder %s6134_s23, %s4789_s14 }
 0x524   : > { %4256 = vmatpush3.bf16.msra.mxu1 %v4255_v7  ;;  %3775 = vmatprep.mubr.f32.mxu1 %v3636_v29  ;;  %p4785_p12 = scmp.ne.s32.totalorder %s6134_s23, %s4784_s11  ;;  %p4792_p2 = scmp.lt.s32.totalorder %s4790_s16, %s4784_s11 }
 0x525   : > { %4258 = vmatprep.subr.bf16.mxu1 %v4257_v18 }
 0x526   : > { %p4786_p13 = pnand %p4785_p12, %p4953_p4  ;;  %p4793_p3 = por %p4792_p2, %p4791_p1 }
 0x528   : > { %4260 = vmatpush3.bf16.msra.mxu1 %v4259_v51  ;;  %p4787_p0 = pneg %p4786_p13 }
 0x529   : > { %4262 = vmatprep.subr.bf16.mxu1 %v4261_v49 }
 0x52a   : > { %p4794_p5 = pnand %p4793_p3, %p4787_p0 }
 0x52c   : > { %4264 = vmatpush3.bf16.msra.mxu1 %v4263_v27 }
 0x52d   : > { %4266 = vmatprep.subr.bf16.mxu1 %v4265_v63 }
 0x530   : > { %4268 = vmatpush3.bf16.msra.mxu1 %v4267_v54 }
 0x531   : > { %4270 = vmatprep.subr.bf16.mxu1 %v4269_v56 }
 0x534   : > { %4272 = vmatpush3.bf16.msra.mxu1 %v4271_v0 }
 0x535   : > { %4274 = vmatprep.subr.bf16.mxu1 %v4273_v44 }
 0x538   : > { %4276 = vmatpush3.bf16.msra.mxu1 %v4275_v12 }
 0x539   : > { %4278 = vmatprep.subr.bf16.mxu1 %v4277_v19 }
 0x53c   : > { %4280 = vmatpush3.bf16.msra.mxu1 %v4279_v11 }
 0x53d   : > { %4282 = vmatprep.subr.bf16.mxu1 %v4281_v41 }
 0x540   : > { %4284 = vmatpush3.bf16.msra.mxu1 %v4283_v13 }
 0x543   : > { %3776 = vmatmul.mubr.f32.vlgmr.msra.gmra.mrb[2].mxu1 %v3632_v61 }
 0x5f6   : > { %v4183_v55 = vpop.f32.mrb[0].mxu1 }
 0x5f7   : > { %v4184_v46 = vpop.f32.mrb[1].mxu1 }
 0x5f8   : > { %v4185_v26 = vadd.f32 %v4184_v46, %v4183_v55 }
 0x5fa   : > { %v3708_v16 = vadd.f32 %v4185_v26, %v3619_v1 }
 0x616   : > { %v4218_v52 = vpop.f32.mrb[2].mxu1 }
 0x617   : > { %v4219_v47 = vpop.f32.mrb[3].mxu1 }
 0x618   : > { %v4220_v45 = vadd.f32 %v4219_v47, %v4218_v52 }
 0x61a   : > { %v3778_v34 = vadd.f32 %v4220_v45, %v3708_v16 }
 0x61c   : > { %3781 = vst [vmem:[%s329_s22] sm:$0x1] %v3778_v34 }
 0x61d   : > { %4797 = shalt.err (!%p4794_p5)
}
 0x61e   : > { %s4798_s12 = scalar_lea.hbm %s6132_s26, 16  ;;  %s4802_s22 = scalar_lea.hbm %s6187_s8, 32 }
 0x61f   : > { %p4799_p6 = scmp.ne.s32.totalorder %s6132_s26, %s4798_s12  ;;  %p4803_p10 = scmp.lt.u32.totalorder %s6132_s26, %s6187_s8 }
 0x620   : > { %p4804_p11 = scmp.lt.u32.totalorder %s4802_s22, %s4798_s12  ;;  %p4806_p13 = scmp.lt.u32.totalorder %s4798_s12, %s6132_s26 }
 0x621   : > { %p4800_p7 = pnand %p4799_p6, %p4953_p4 }
 0x622   : > { %p4805_p12 = por %p4804_p11, %p4803_p10 }
 0x623   : > { %p4801_p9 = pneg %p4800_p7 }
 0x624   : > { %p4807_p0 = por %p4806_p13, %p4805_p12 }
 0x626   : > { %p4808_p1 = pnand %p4807_p0, %p4801_p9 }
 0x628   : > { %4811 = shalt.err (!%p4808_p1)
}
 0x629   : > { %4477 = dma.vmem_to_hbm [thread:$0]  (%p4953_p4), %s6134_s23, 16, %s6132_s26, %s3787_s21  }
 0x62a PF: > { %p4483_p2 = scmp.ge.s32.totalorder %s4862_s10, 2  ;;  %s3821_s11 = sand.u32 1, %s4842_s27  }
 0x62b   : > { %s3822_s30 = scalar_lea.sflag [#allocation4], %s3821_s11 }
 0x62c   : > { %p4480_p3 = pnand %p4483_p2, %p4960_p8 }
 0x62e   : > { %4837 = dma.done.wait (!%p4480_p3), %s3822_s30, 16  }
 0x62f   : > { %4839 = vsyncadd (!%p4480_p3), %s3822_s30, 4294967280  ;;  %s22_s10 = sadd.s32 1, %s4862_s10   ;;  %s6192_s27 = smov %s4846_s28 }
 0x630   : > { %p19_p5 = scmp.ge.s32.totalorder %s22_s10, 4   ;;  %s6193_s28 = smov %s4850_s29 }
 0x631   : > { %s6194_s29 = smov %s4966_s18  ;;  %s6195_s30 = smov %s4858_s9 }
 0x632   : > { %s6196_s9 = smov %s6198_s13  ;;  %21 = sbr.rel (!%p19_p5) target bundleno = 4 (0x4), region = 103 }
 0x639   :  { %3826 = vsyncpa [#allocation4], 1 }
 0x63a   :  { %3828 = vsyncpa [#allocation4 + $0x1], 1 }

</bundles_post_ra>
